<compile_context>
chip_gen: v7x
topology: tpu7x:2x2x1
jax: 0.10.0
libtpu: 0.0.40
codegen_flags: <defaults>
</compile_context>

<pallas_src>
import jax
import jax.numpy as jnp
from jax.experimental import pallas as pl
from jax.experimental.pallas import tpu as pltpu

_BN_EPS = 1e-5


def _encoder_kernel(x_ref, w1_ref, b1_ref, w2_ref, b2_ref,
                    w3g_ref, w3x_ref, b3_ref, w4_ref, b4_ref, out_ref):
    gt, n, _ = x_ref.shape          # Gt groups, N points each (static block shape)
    m = gt * n

    x = x_ref[...].reshape(m, 3)    # all points of this group tile, row-major

    # ---- first_conv: Conv1d(3,128,1) + folded BN + ReLU -------------------
    # K=3 is far too narrow for the MXU -> three lane-broadcast FMAs on the VPU.
    w1 = w1_ref[...]                                   # (3, 128)
    h1 = (x[:, 0:1] * w1[0:1, :]
          + x[:, 1:2] * w1[1:2, :]
          + x[:, 2:3] * w1[2:3, :]
          + b1_ref[...])                               # (M, 128)
    h1 = jnp.maximum(h1, 0.0)

    # Conv1d(128,256,1): one fused big-M GEMM over every point in the tile.
    h2 = jnp.dot(h1, w2_ref[...], preferred_element_type=jnp.float32) + b2_ref[...]   # (M, 256)

    # ---- global max-pool over the points of each group ---------------------
    g1 = jnp.max(h2.reshape(gt, n, 256), axis=1)                                       # (Gt, 256)

    # ---- second_conv: concat([global, local]) @ W3 as a split matmul --------
    # Pre-combine the per-group global row with the (BN-folded) bias so the
    # per-point path is a single broadcast add.
    g_row = jnp.dot(g1, w3g_ref[...], preferred_element_type=jnp.float32) + b3_ref[...]  # (Gt, 512)
    loc = jnp.dot(h2, w3x_ref[...], preferred_element_type=jnp.float32)                 # (M, 512)
    u = jnp.maximum(loc.reshape(gt, n, 512) + g_row[:, None, :], 0.0)                   # (Gt, N, 512)

    v = jnp.dot(u.reshape(m, 512), w4_ref[...], preferred_element_type=jnp.float32) + b4_ref[...]  # (M, C)

    out_ref[...] = jnp.max(v.reshape(gt, n, -1), axis=1).astype(out_ref.dtype)          # (Gt, C)


def prepare_encoder_params(raw):
    """One-time parameter prep (hoisted out of the per-call path).

    Folds each BatchNorm1d (eval mode, running stats) into the preceding 1x1 conv,
    splits the second block's first conv into its [global | local] input halves,
    and reshapes biases to lane rows.
    """
    s1 = raw["bn1_gamma"] * jax.lax.rsqrt(raw["bn1_var"] + _BN_EPS)
    t1 = raw["bn1_beta"] - raw["bn1_mean"] * s1
    w1 = raw["w1"] * s1[None, :]
    b1 = raw["b1"] * s1 + t1

    s2 = raw["bn2_gamma"] * jax.lax.rsqrt(raw["bn2_var"] + _BN_EPS)
    t2 = raw["bn2_beta"] - raw["bn2_mean"] * s2
    w3 = raw["w3"] * s2[None, :]
    b3 = raw["b3"] * s2 + t2

    return dict(
        w1=w1, b1=b1.reshape(1, -1),
        w2=raw["w2"], b2=raw["b2"].reshape(1, -1),
        w3g=w3[:256], w3x=w3[256:], b3=b3.reshape(1, -1),   # concat order: [global, local]
        w4=raw["w4"], b4=raw["b4"].reshape(1, -1),
    )


def _pick_group_tile(bg, n, row_cap=1024):
    """Pick Gt (groups per grid step): divisor of bg, output-block friendly
    (Gt % 8 == 0 or Gt == bg), Gt*N rows bounded for VMEM (fits v7x's 64 MiB
    with large headroom), preferring >= 2 grid steps while keeping M >= 256."""
    divisors = [d for d in range(1, bg + 1) if bg % d == 0]
    ok = [d for d in divisors if (d % 8 == 0 or d == bg) and d * n <= row_cap]
    if not ok:
        return bg
    gt = max(ok)
    if bg // gt < 2:
        alt = [d for d in ok if bg // d >= 2 and d * n >= 256]
        if alt:
            gt = max(alt)
    return gt


def encoder_forward(point_groups, params):
    """point_groups: (B, G, N, 3) -> (B, G, encoder_channel)."""
    B, G, N, D = point_groups.shape
    assert D == 3
    assert N % 8 == 0, "N (points per group) must be a multiple of 8"
    # TODO(synk): for N % 8 != 0, pad N with duplicated points (max-invariant) in the wrapper.

    bg = B * G
    C = params["w4"].shape[1]
    x = point_groups.reshape(bg, N, 3)

    gt = _pick_group_tile(bg, N)
    grid = bg // gt

    def full(arr):
        nd = arr.ndim
        return pl.BlockSpec(arr.shape, lambda i, _nd=nd: (0,) * _nd)

    out = pl.pallas_call(
        _encoder_kernel,
        out_shape=jax.ShapeDtypeStruct((bg, C), point_groups.dtype),
        grid_spec=pltpu.PrefetchScalarGridSpec(
            num_scalar_prefetch=0,
            grid=(grid,),
            in_specs=[
                pl.BlockSpec((gt, N, 3), lambda i: (i, 0, 0)),
                full(params["w1"]), full(params["b1"]),
                full(params["w2"]), full(params["b2"]),
                full(params["w3g"]), full(params["w3x"]), full(params["b3"]),
                full(params["w4"]), full(params["b4"]),
            ],
            out_specs=pl.BlockSpec((gt, C), lambda i: (i, 0)),
        ),
        compiler_params=pltpu.CompilerParams(dimension_semantics=("parallel",)),
    )(x, params["w1"], params["b1"], params["w2"], params["b2"],
      params["w3g"], params["w3x"], params["b3"], params["w4"], params["b4"])

    return out.reshape(B, G, C)


def _reference(point_groups, raw):
    """Pure-JAX reference mirroring the PyTorch forward (BN in eval mode)."""
    B, G, N, _ = point_groups.shape
    x = point_groups.reshape(B * G, N, 3)
    f = x @ raw["w1"] + raw["b1"]
    f = (f - raw["bn1_mean"]) * jax.lax.rsqrt(raw["bn1_var"] + _BN_EPS) * raw["bn1_gamma"] + raw["bn1_beta"]
    f = jnp.maximum(f, 0.0)
    f = f @ raw["w2"] + raw["b2"]                                   # (BG, N, 256)
    gmax = jnp.max(f, axis=1, keepdims=True)                        # (BG, 1, 256)
    feat = jnp.concatenate([jnp.broadcast_to(gmax, f.shape), f], axis=-1)   # [global, local]
    u = feat @ raw["w3"] + raw["b3"]
    u = (u - raw["bn2_mean"]) * jax.lax.rsqrt(raw["bn2_var"] + _BN_EPS) * raw["bn2_gamma"] + raw["bn2_beta"]
    u = jnp.maximum(u, 0.0)
    v = u @ raw["w4"] + raw["b4"]                                   # (BG, N, C)
    out = jnp.max(v, axis=1)
    return out.reshape(B, G, -1)


if __name__ == "__main__":
    # Small shapes consistent with the module: point groups of 32 xyz points,
    # fixed internal widths 3->128->256->(concat 512)->512->encoder_channel.
    B, G, N = 2, 8, 32
    encoder_channel = 256          # lane-dense output (multiple of 128)

    key = jax.random.PRNGKey(0)
    keys = jax.random.split(key, 16)

    def w(k, i, o, s=0.05):
        return jax.random.normal(k, (i, o), jnp.float32) * s

    def b(k, o, s=0.01):
        return jax.random.normal(k, (o,), jnp.float32) * s

    # Synthetic parameters (stored as (in, out) so y = x @ W + b), incl. BN stats.
    raw = dict(
        w1=w(keys[0], 3, 128), b1=b(keys[1], 128),
        bn1_gamma=1.0 + 0.1 * jax.random.normal(keys[2], (128,), jnp.float32),
        bn1_beta=0.05 * jax.random.normal(keys[3], (128,), jnp.float32),
        bn1_mean=0.05 * jax.random.normal(keys[4], (128,), jnp.float32),
        bn1_var=jax.random.uniform(keys[5], (128,), jnp.float32, 0.5, 1.5),
        w2=w(keys[6], 128, 256), b2=b(keys[7], 256),
        w3=w(keys[8], 512, 512), b3=b(keys[9], 512),
        bn2_gamma=1.0 + 0.1 * jax.random.normal(keys[10], (512,), jnp.float32),
        bn2_beta=0.05 * jax.random.normal(keys[11], (512,), jnp.float32),
        bn2_mean=0.05 * jax.random.normal(keys[12], (512,), jnp.float32),
        bn2_var=jax.random.uniform(keys[13], (512,), jnp.float32, 0.5, 1.5),
        w4=w(keys[14], 512, encoder_channel), b4=b(keys[15], encoder_channel),
    )

    point_groups = jax.random.normal(jax.random.PRNGKey(1), (B, G, N, 3), jnp.float32)

    params = prepare_encoder_params(raw)      # one-time prep (BN fold, splits, bias rows)
    out = encoder_forward(point_groups, params)
    out = jax.block_until_ready(out)

    with jax.default_matmul_precision("highest"):
        ref = _reference(point_groups, raw)
    ref = jax.block_until_ready(ref)

    assert out.shape == (B, G, encoder_channel)
    max_err = float(jnp.max(jnp.abs(out - ref)))
    assert jnp.allclose(out, ref, atol=3e-3, rtol=3e-3), f"max abs err {max_err}"

    print("KERNEL_OK")
</pallas_src>

<mosaic_0001>
module attributes {stable_mosaic.version = 11 : i64} {
  func.func @_encoder_kernel(%arg0: i32, %arg1: memref<8x32x3xf32, #tpu.memory_space<vmem>>, %arg2: memref<3x128xf32, #tpu.memory_space<vmem>>, %arg3: memref<1x128xf32, #tpu.memory_space<vmem>>, %arg4: memref<128x256xf32, #tpu.memory_space<vmem>>, %arg5: memref<1x256xf32, #tpu.memory_space<vmem>>, %arg6: memref<256x512xf32, #tpu.memory_space<vmem>>, %arg7: memref<256x512xf32, #tpu.memory_space<vmem>>, %arg8: memref<1x512xf32, #tpu.memory_space<vmem>>, %arg9: memref<512x256xf32, #tpu.memory_space<vmem>>, %arg10: memref<1x256xf32, #tpu.memory_space<vmem>>, %arg11: memref<8x256xf32, #tpu.memory_space<vmem>>) attributes {dimension_semantics = [#tpu.dimension_semantics<parallel>], iteration_bounds = array<i64: 2>, scalar_prefetch = 0 : i64, scratch_operands = 0 : i64, tpu.core_type = #tpu.core_type<tc>, window_params = [{transform_indices = @transform_0, window_bounds = array<i64: 8, 32, 3>}, {pipeline_mode = #tpu.pipeline_mode<synchronous>, transform_indices = @transform_1, window_bounds = array<i64: 3, 128>}, {pipeline_mode = #tpu.pipeline_mode<synchronous>, transform_indices = @transform_2, window_bounds = array<i64: 1, 128>}, {pipeline_mode = #tpu.pipeline_mode<synchronous>, transform_indices = @transform_3, window_bounds = array<i64: 128, 256>}, {pipeline_mode = #tpu.pipeline_mode<synchronous>, transform_indices = @transform_4, window_bounds = array<i64: 1, 256>}, {pipeline_mode = #tpu.pipeline_mode<synchronous>, transform_indices = @transform_5, window_bounds = array<i64: 256, 512>}, {pipeline_mode = #tpu.pipeline_mode<synchronous>, transform_indices = @transform_6, window_bounds = array<i64: 256, 512>}, {pipeline_mode = #tpu.pipeline_mode<synchronous>, transform_indices = @transform_7, window_bounds = array<i64: 1, 512>}, {pipeline_mode = #tpu.pipeline_mode<synchronous>, transform_indices = @transform_8, window_bounds = array<i64: 512, 256>}, {pipeline_mode = #tpu.pipeline_mode<synchronous>, transform_indices = @transform_9, window_bounds = array<i64: 1, 256>}, {transform_indices = @transform_10, window_bounds = array<i64: 8, 256>}]} {
    %c0 = arith.constant 0 : index
    %c0_0 = arith.constant 0 : index
    %c0_1 = arith.constant 0 : index
    %0 = vector.load %arg1[%c0, %c0_0, %c0_1] : memref<8x32x3xf32, #tpu.memory_space<vmem>>, vector<8x32x3xf32>
    %1 = vector.shape_cast %0 : vector<8x32x3xf32> to vector<256x3xf32>
    %c0_2 = arith.constant 0 : index
    %c0_3 = arith.constant 0 : index
    %2 = vector.load %arg2[%c0_2, %c0_3] : memref<3x128xf32, #tpu.memory_space<vmem>>, vector<3x128xf32>
    %3 = vector.extract_strided_slice %1 {offsets = [0, 0], sizes = [256, 1], strides = [1, 1]} : vector<256x3xf32> to vector<256x1xf32>
    %4 = vector.extract_strided_slice %2 {offsets = [0, 0], sizes = [1, 128], strides = [1, 1]} : vector<3x128xf32> to vector<1x128xf32>
    %5 = vector.broadcast %3 : vector<256x1xf32> to vector<256x128xf32>
    %6 = vector.broadcast %4 : vector<1x128xf32> to vector<256x128xf32>
    %7 = arith.mulf %5, %6 : vector<256x128xf32>
    %8 = vector.extract_strided_slice %1 {offsets = [0, 1], sizes = [256, 1], strides = [1, 1]} : vector<256x3xf32> to vector<256x1xf32>
    %9 = vector.extract_strided_slice %2 {offsets = [1, 0], sizes = [1, 128], strides = [1, 1]} : vector<3x128xf32> to vector<1x128xf32>
    %10 = vector.broadcast %8 : vector<256x1xf32> to vector<256x128xf32>
    %11 = vector.broadcast %9 : vector<1x128xf32> to vector<256x128xf32>
    %12 = arith.mulf %10, %11 : vector<256x128xf32>
    %13 = arith.addf %7, %12 : vector<256x128xf32>
    %14 = vector.extract_strided_slice %1 {offsets = [0, 2], sizes = [256, 1], strides = [1, 1]} : vector<256x3xf32> to vector<256x1xf32>
    %15 = vector.extract_strided_slice %2 {offsets = [2, 0], sizes = [1, 128], strides = [1, 1]} : vector<3x128xf32> to vector<1x128xf32>
    %16 = vector.broadcast %14 : vector<256x1xf32> to vector<256x128xf32>
    %17 = vector.broadcast %15 : vector<1x128xf32> to vector<256x128xf32>
    %18 = arith.mulf %16, %17 : vector<256x128xf32>
    %19 = arith.addf %13, %18 : vector<256x128xf32>
    %c0_4 = arith.constant 0 : index
    %c0_5 = arith.constant 0 : index
    %20 = vector.load %arg3[%c0_4, %c0_5] : memref<1x128xf32, #tpu.memory_space<vmem>>, vector<1x128xf32>
    %21 = vector.broadcast %20 : vector<1x128xf32> to vector<256x128xf32>
    %22 = arith.addf %19, %21 : vector<256x128xf32>
    %cst = arith.constant 0.000000e+00 : f32
    %23 = vector.broadcast %cst : f32 to vector<256x128xf32>
    %24 = arith.maximumf %22, %23 : vector<256x128xf32>
    %c0_6 = arith.constant 0 : index
    %c0_7 = arith.constant 0 : index
    %25 = vector.load %arg4[%c0_6, %c0_7] : memref<128x256xf32, #tpu.memory_space<vmem>>, vector<128x256xf32>
    %cst_8 = arith.constant dense<0.000000e+00> : vector<256x256xf32>
    %26 = tpu.matmul %24, %25, %cst_8 {dimension_numbers = #tpu.dot_dimension_numbers<[1], [0], [0], [1], [0, 0, 1, 1], [], []>} : vector<256x128xf32>, vector<128x256xf32>, vector<256x256xf32> -> vector<256x256xf32>
    %c0_9 = arith.constant 0 : index
    %c0_10 = arith.constant 0 : index
    %27 = vector.load %arg5[%c0_9, %c0_10] : memref<1x256xf32, #tpu.memory_space<vmem>>, vector<1x256xf32>
    %28 = vector.broadcast %27 : vector<1x256xf32> to vector<256x256xf32>
    %29 = arith.addf %26, %28 : vector<256x256xf32>
    %30 = vector.shape_cast %29 : vector<256x256xf32> to vector<8x32x256xf32>
    %cst_11 = arith.constant dense<0xFF800000> : vector<8x256xf32>
    %31 = vector.multi_reduction <maximumf>, %30, %cst_11 [1] : vector<8x32x256xf32> to vector<8x256xf32>
    %c0_12 = arith.constant 0 : index
    %c0_13 = arith.constant 0 : index
    %32 = vector.load %arg6[%c0_12, %c0_13] : memref<256x512xf32, #tpu.memory_space<vmem>>, vector<256x512xf32>
    %cst_14 = arith.constant dense<0.000000e+00> : vector<8x512xf32>
    %33 = tpu.matmul %31, %32, %cst_14 {dimension_numbers = #tpu.dot_dimension_numbers<[1], [0], [0], [1], [0, 0, 1, 1], [], []>} : vector<8x256xf32>, vector<256x512xf32>, vector<8x512xf32> -> vector<8x512xf32>
    %c0_15 = arith.constant 0 : index
    %c0_16 = arith.constant 0 : index
    %34 = vector.load %arg8[%c0_15, %c0_16] : memref<1x512xf32, #tpu.memory_space<vmem>>, vector<1x512xf32>
    %35 = vector.broadcast %34 : vector<1x512xf32> to vector<8x512xf32>
    %36 = arith.addf %33, %35 : vector<8x512xf32>
    %c0_17 = arith.constant 0 : index
    %c0_18 = arith.constant 0 : index
    %37 = vector.load %arg7[%c0_17, %c0_18] : memref<256x512xf32, #tpu.memory_space<vmem>>, vector<256x512xf32>
    %cst_19 = arith.constant dense<0.000000e+00> : vector<256x512xf32>
    %38 = tpu.matmul %29, %37, %cst_19 {dimension_numbers = #tpu.dot_dimension_numbers<[1], [0], [0], [1], [0, 0, 1, 1], [], []>} : vector<256x256xf32>, vector<256x512xf32>, vector<256x512xf32> -> vector<256x512xf32>
    %39 = vector.shape_cast %38 : vector<256x512xf32> to vector<8x32x512xf32>
    %40 = vector.shape_cast %36 : vector<8x512xf32> to vector<8x1x512xf32>
    %41 = vector.broadcast %40 : vector<8x1x512xf32> to vector<8x32x512xf32>
    %42 = arith.addf %39, %41 : vector<8x32x512xf32>
    %cst_20 = arith.constant 0.000000e+00 : f32
    %43 = vector.broadcast %cst_20 : f32 to vector<8x32x512xf32>
    %44 = arith.maximumf %42, %43 : vector<8x32x512xf32>
    %45 = vector.shape_cast %44 : vector<8x32x512xf32> to vector<256x512xf32>
    %c0_21 = arith.constant 0 : index
    %c0_22 = arith.constant 0 : index
    %46 = vector.load %arg9[%c0_21, %c0_22] : memref<512x256xf32, #tpu.memory_space<vmem>>, vector<512x256xf32>
    %cst_23 = arith.constant dense<0.000000e+00> : vector<256x256xf32>
    %47 = tpu.matmul %45, %46, %cst_23 {dimension_numbers = #tpu.dot_dimension_numbers<[1], [0], [0], [1], [0, 0, 1, 1], [], []>} : vector<256x512xf32>, vector<512x256xf32>, vector<256x256xf32> -> vector<256x256xf32>
    %c0_24 = arith.constant 0 : index
    %c0_25 = arith.constant 0 : index
    %48 = vector.load %arg10[%c0_24, %c0_25] : memref<1x256xf32, #tpu.memory_space<vmem>>, vector<1x256xf32>
    %49 = vector.broadcast %48 : vector<1x256xf32> to vector<256x256xf32>
    %50 = arith.addf %47, %49 : vector<256x256xf32>
    %51 = vector.shape_cast %50 : vector<256x256xf32> to vector<8x32x256xf32>
    %cst_26 = arith.constant dense<0xFF800000> : vector<8x256xf32>
    %52 = vector.multi_reduction <maximumf>, %51, %cst_26 [1] : vector<8x32x256xf32> to vector<8x256xf32>
    %c0_27 = arith.constant 0 : index
    %c0_28 = arith.constant 0 : index
    %53 = vector.load %arg11[%c0_27, %c0_28] : memref<8x256xf32, #tpu.memory_space<vmem>>, vector<8x256xf32>
    tpu.vector_store %arg11[%c0_27, %c0_28], %52 {strides = array<i32>} : memref<8x256xf32, #tpu.memory_space<vmem>>, vector<8x256xf32>,
    return
  }
  func.func @transform_0(%arg0: i32) -> (i32, i32, i32) {
    %c0_i32 = arith.constant 0 : i32
    %c0_i32_0 = arith.constant 0 : i32
    %c0_i32_1 = arith.constant 0 : i32
    return %arg0, %c0_i32, %c0_i32_0 : i32, i32, i32
  }
  func.func @transform_1(%arg0: i32) -> (i32, i32) {
    %c0_i32 = arith.constant 0 : i32
    %c0_i32_0 = arith.constant 0 : i32
    %c0_i32_1 = arith.constant 0 : i32
    return %c0_i32, %c0_i32_0 : i32, i32
  }
  func.func @transform_2(%arg0: i32) -> (i32, i32) {
    %c0_i32 = arith.constant 0 : i32
    %c0_i32_0 = arith.constant 0 : i32
    %c0_i32_1 = arith.constant 0 : i32
    return %c0_i32, %c0_i32_0 : i32, i32
  }
  func.func @transform_3(%arg0: i32) -> (i32, i32) {
    %c0_i32 = arith.constant 0 : i32
    %c0_i32_0 = arith.constant 0 : i32
    %c0_i32_1 = arith.constant 0 : i32
    return %c0_i32, %c0_i32_0 : i32, i32
  }
  func.func @transform_4(%arg0: i32) -> (i32, i32) {
    %c0_i32 = arith.constant 0 : i32
    %c0_i32_0 = arith.constant 0 : i32
    %c0_i32_1 = arith.constant 0 : i32
    return %c0_i32, %c0_i32_0 : i32, i32
  }
  func.func @transform_5(%arg0: i32) -> (i32, i32) {
    %c0_i32 = arith.constant 0 : i32
    %c0_i32_0 = arith.constant 0 : i32
    %c0_i32_1 = arith.constant 0 : i32
    return %c0_i32, %c0_i32_0 : i32, i32
  }
  func.func @transform_6(%arg0: i32) -> (i32, i32) {
    %c0_i32 = arith.constant 0 : i32
    %c0_i32_0 = arith.constant 0 : i32
    %c0_i32_1 = arith.constant 0 : i32
    return %c0_i32, %c0_i32_0 : i32, i32
  }
  func.func @transform_7(%arg0: i32) -> (i32, i32) {
    %c0_i32 = arith.constant 0 : i32
    %c0_i32_0 = arith.constant 0 : i32
    %c0_i32_1 = arith.constant 0 : i32
    return %c0_i32, %c0_i32_0 : i32, i32
  }
  func.func @transform_8(%arg0: i32) -> (i32, i32) {
    %c0_i32 = arith.constant 0 : i32
    %c0_i32_0 = arith.constant 0 : i32
    %c0_i32_1 = arith.constant 0 : i32
    return %c0_i32, %c0_i32_0 : i32, i32
  }
  func.func @transform_9(%arg0: i32) -> (i32, i32) {
    %c0_i32 = arith.constant 0 : i32
    %c0_i32_0 = arith.constant 0 : i32
    %c0_i32_1 = arith.constant 0 : i32
    return %c0_i32, %c0_i32_0 : i32, i32
  }
  func.func @transform_10(%arg0: i32) -> (i32, i32) {
    %c0_i32 = arith.constant 0 : i32
    %c0_i32_0 = arith.constant 0 : i32
    return %arg0, %c0_i32 : i32, i32
  }
}

</mosaic_0001>

<bundles_post_ra>
// kernel: tpu_custom_call.1
= control target key start
LH: loop header
LB: loop body
LE: loop exit
PB: predicated region body
PF: predicated region fallthrough
CT: control target
= control target key end

     0   :  { %15 = vsyncpa [#allocation3], 0  ;;  %s7002_s0 = inlined_call_operand.vmem [shape: f32[16,32,3], index: 0, kind: input, shape index: {}]   ;;  %s7003_s1 = inlined_call_operand.vmem [shape: f32[3,128], index: 1, kind: input, shape index: {}]   ;;  %s7004_s2 = inlined_call_operand.vmem [shape: f32[1,128], index: 2, kind: input, shape index: {}]   ;;  %s7005_s3 = inlined_call_operand.vmem [shape: f32[128,256], index: 3, kind: input, shape index: {}]   ;;  %s7006_s4 = inlined_call_operand.vmem [shape: f32[1,256], index: 4, kind: input, shape index: {}]   ;;  %s7007_s5 = inlined_call_operand.hbm [shape: f32[256,512], index: 5, kind: input, shape index: {}]   ;;  %s7008_s6 = inlined_call_operand.hbm [shape: f32[256,512], index: 6, kind: input, shape index: {}]   ;;  %s7009_s7 = inlined_call_operand.vmem [shape: f32[1,512], index: 7, kind: input, shape index: {}]   ;;  %s7010_s8 = inlined_call_operand.hbm [shape: f32[512,256], index: 8, kind: input, shape index: {}]   ;;  %s7011_s9 = inlined_call_operand.vmem [shape: f32[1,256], index: 9, kind: input, shape index: {}]   ;;  %s7012_s10 = inlined_call_operand.hbm [shape: f32[16,256], index: 10, kind: output, shape index: {}]  }
   0x1   :  { %16 = vsyncpa [#allocation6], 0 }
   0x2   :  { %17 = vsyncpa [#allocation4], 0 }
   0x3   :  { %19 = vsyncpa [#allocation4 + $0x1], 0  ;;  %s4911_s13 = smov 0   ;;  %s4913_s14 = smov 0  }
   0x4   :  { %s4915_s15 = smov 0   ;;  %s4917_s16 = smov 0  }
   0x5 LB: > { %7095 = sst [smem:[#allocation12_spill]] %s4829_s13  ;;  %s4932_s17 = sadd.s32 4294967295, %s4841_s16   ;;  %s4841_s16 = sphi %s4917_s16, %s7332_s16   ;;  %s4837_s15 = sphi %s4915_s15, %s7334_s15   ;;  %s4833_s14 = sphi %s4913_s14, %s7336_s14   ;;  %s4829_s13 = sphi %s4911_s13, %s7335_s13  }
   0x6   : > { %7096 = sst [smem:[#allocation13_spill]] %s4837_s15  ;;  %s3942_s18 = sadd.s32 4294967294, %s4841_s16  }
   0x7   : > { %7097 = sst [smem:[#allocation14_spill]] %s4841_s16  ;;  %s4936_s19 = sadd.s32 1, %s4841_s16  }
   0x8   : > { %7098 = sst [smem:[#allocation15_spill]] %s4936_s19  ;;  %s247_s20 = sadd.s32 1, %s4837_s15 }
   0x9   : > { %s244_s21 = ssub.s32 %s4841_s16, %s4936_s19  ;;  %p257_p0 = scmp.ne.s32.totalorder %s4837_s15, %s4833_s14 }
   0xa   : > { %p245_p1 = scmp.eq.s32.totalorder %s244_s21, 0  ;;  %p258_p2 = scmp.eq.s32.totalorder %s4932_s17, 1 }
   0xb   : > { %p263_p3 = scmp.ne.s32.totalorder %s4833_s14, %s4829_s13  ;;  %p264_p4 = scmp.eq.s32.totalorder %s3942_s18, 1 }
   0xc   : > { %s4947_s22 = scalar_select %p245_p1, %s4837_s15, %s247_s20  }
   0xd   : > { %p4949_p5 = por %p258_p2, %p257_p0  ;;  %p4953_p6 = por %p264_p4, %p263_p3 }
   0xe   : > { %7099 = sst [smem:[#allocation16_spill]] %s4947_s22  ;;  %p3943_p7 = scmp.ge.s32.totalorder %s4841_s16, 1 }
   0xf   : > { %s7100_s23 = scalar_select %p4949_p5, 1, 0 }
  0x10   : > { %s7101_s24 = scalar_select %p4953_p6, 1, 0 }
  0x11   : > { %p271_p8 = scmp.lt.s32.totalorder %s4841_s16, 3  ;;  %p7014_p9 = scmp.eq.s32.totalorder %s4932_s17, 0 }
  0x12   : > { %7102 = sst [smem:[#allocation17_spill]] %s7101_s24  ;;  %s4843_s26 = smov [#allocation5]  }
  0x13   : > { %p4960_p10 = pnand %p3943_p7, %p271_p8  ;;  %s308_s27 = sshll.u32 %s4843_s26, 4  ;;  %s4966_s27 = int_to_ptr.vmem [resolvable:$true] %s308_s27 }
  0x14   : > { %s4844_s29 = smov [#allocation2]   ;;  %s4845_s11 = smov [#allocation7]  }
  0x15   : > { %s7103_s25 = scalar_select %p4960_p10, 1, 0 }
  0x16   : > { %p4554_p11 = pneg %p4960_p10  ;;  %s295_s30 = sshll.u32 %s4844_s29, 4  ;;  %s4974_s30 = int_to_ptr.vmem [resolvable:$true] %s295_s30 }
  0x17   : > { %s4976_s12 = sshll.u32 %s4845_s11, 4  ;;  %s4687_s21 = scalar_lea.hbm %s7008_s6, 16384  ;;  %s325_s12 = int_to_ptr.vmem [resolvable:$true] %s4976_s12 }
  0x18   : > { %p4970_p12 = pnand %p7014_p9, %p4554_p11  ;;  %p4688_p13 = scmp.ne.s32.totalorder %s7008_s6, %s4687_s21 }
  0x19   : > { %p4694_p3 = scmp.lt.u32.totalorder %s4687_s21, %s7008_s6 }
  0x1a   : > { %p4986_p0 = pneg %p4970_p12 }
  0x1c   : > { %p4690_p1 = pnand %p4986_p0, %p4688_p13 }
  0x1e   : > { %p4691_p2 = pneg %p4690_p1 }
  0x20   : > { %p4696_p4 = pnand %p4694_p3, %p4691_p2 }
  0x22   : > { %4699 = shalt.err (!%p4696_p4)
}
  0x23   : > { %s4700_s22 = scalar_lea.vmem %s4966_s27, 16384  ;;  %p4708_p9 = scmp.lt.s32.totalorder %s4966_s27, %s4966_s27 }
  0x24   : > { %p4701_p7 = scmp.ne.s32.totalorder %s4966_s27, %s4700_s22  ;;  %p4709_p6 = scmp.lt.s32.totalorder %s4700_s22, %s4700_s22 }
  0x26   : > { %p4703_p8 = pnand %p4701_p7, %p4986_p0  ;;  %p4710_p13 = por %p4709_p6, %p4708_p9 }
  0x28   : > { %p4704_p11 = pneg %p4703_p8 }
  0x2a   : > { %p4711_p1 = pnand %p4710_p13, %p4704_p11 }
  0x2c   : > { %4714 = shalt.err (!%p4711_p1)
}
  0x2d   : > { %s4846_s18 = smov 512   ;;  %s4847_s20 = smov 32  }
  0x2e   : > { %4560 = dma.hbm_to_vmem [thread:$0]  (!%p4970_p12), %s7008_s6, 16384, %s4966_s27, [#allocation6], %s4846_s18, %s4846_s18, %s4847_s20  }
  0x2f   : > { %s4715_s19 = scalar_lea.hbm %s7007_s5, 16384 }
  0x30   : > { %p4716_p6 = scmp.ne.s32.totalorder %s7007_s5, %s4715_s19  ;;  %p4722_p3 = scmp.lt.u32.totalorder %s4715_s19, %s7007_s5 }
  0x32   : > { %p4718_p9 = pnand %p4716_p6, %p4986_p0 }
  0x34   : > { %p4719_p2 = pneg %p4718_p9 }
  0x36   : > { %p4724_p4 = pnand %p4722_p3, %p4719_p2 }
  0x38   : > { %4727 = shalt.err (!%p4724_p4)
}
  0x39   : > { %s4728_s27 = scalar_lea.vmem %s4974_s30, 16384  ;;  %p4736_p13 = scmp.lt.s32.totalorder %s4974_s30, %s4974_s30 }
  0x3a   : > { %p4729_p7 = scmp.ne.s32.totalorder %s4974_s30, %s4728_s27  ;;  %p4737_p1 = scmp.lt.s32.totalorder %s4728_s27, %s4728_s27 }
  0x3c   : > { %p4731_p8 = pnand %p4729_p7, %p4986_p0  ;;  %p4738_p6 = por %p4737_p1, %p4736_p13 }
  0x3e   : > { %p4732_p11 = pneg %p4731_p8 }
  0x40   : > { %p4739_p9 = pnand %p4738_p6, %p4732_p11 }
  0x42   : > { %4742 = shalt.err (!%p4739_p9)
}
  0x43   : > { %4557 = dma.hbm_to_vmem [thread:$0]  (!%p4970_p12), %s7007_s5, 16384, %s4974_s30, [#allocation3], %s4846_s18, %s4846_s18, %s4847_s20  }
  0x44   : > { %s4743_s21 = scalar_lea.hbm %s7010_s8, 16384 }
  0x45   : > { %p4744_p2 = scmp.ne.s32.totalorder %s7010_s8, %s4743_s21  ;;  %p4750_p7 = scmp.lt.u32.totalorder %s4743_s21, %s7010_s8 }
  0x47   : > { %p4746_p3 = pnand %p4744_p2, %p4986_p0 }
  0x49   : > { %p4747_p4 = pneg %p4746_p3 }
  0x4b   : > { %p4752_p8 = pnand %p4750_p7, %p4747_p4 }
  0x4d   : > { %4755 = shalt.err (!%p4752_p8)
}
  0x4e   : > { %s4756_s27 = scalar_lea.vmem %s325_s12, 16384  ;;  %p4764_p6 = scmp.lt.s32.totalorder %s325_s12, %s325_s12 }
  0x4f   : > { %p4757_p11 = scmp.ne.s32.totalorder %s325_s12, %s4756_s27  ;;  %p4765_p9 = scmp.lt.s32.totalorder %s4756_s27, %s4756_s27 }
  0x51   : > { %p4759_p13 = pnand %p4757_p11, %p4986_p0  ;;  %p4766_p5 = por %p4765_p9, %p4764_p6 }
  0x53   : > { %p4760_p1 = pneg %p4759_p13 }
  0x55   : > { %p4767_p10 = pnand %p4766_p5, %p4760_p1 }
  0x57   : > { %4770 = shalt.err (!%p4767_p10)
}
  0x58   : > { %s4848_s30 = smov 256   ;;  %s4849_s18 = smov 16  }
  0x59   : > { %4563 = dma.hbm_to_vmem [thread:$0]  (!%p4970_p12), %s7010_s8, 16384, %s325_s12, [#allocation6], %s4848_s30, %s4848_s30, %s4849_s18  }
  0x5a   : > { %p7106_p2 = scmp.ne.s32.totalorder %s7103_s25, 0 }
  0x5c   : > { %353 = sbr.rel (%p7106_p2) target bundleno = 1476 (0x5c4), region = 60 }
  0x63   : > { %p7107_p3 = scmp.eq.s32.totalorder %s4932_s17, 0 }
  0x65   : > { %4816 = dma.done.wait (%p7107_p3), [#allocation3], 16384   ;;  %p7108_p0 = pmov %p7107_p3 }
  0x67   : > { %4818 = vsyncadd (%p7108_p0), [#allocation3], 4294950912  ;;  %p7109_p5 = pmov %p7108_p0 }
  0x68   : > { %p7110_p10 = pmov %p7108_p0 }
  0x69   : > { %4820 = dma.done.wait (%p7109_p5), [#allocation6], 32768  }
  0x6a   : > { %4822 = vsyncadd (%p7110_p10), [#allocation6], 4294934528  ;;  %s3953_s15 = sshll.u32 %s4932_s17, 3  ;;  %v4850_v0 = vmov 2   ;;  %v4851_v1 = vmov 0   ;;  %v4852_v4 = vmov 1  }
  0x6b   : > { %4621 = vset.pattern.permute.xlu1 %v4850_v0  ;;  %4619 = vset.pattern.permute.xlu0 %v4851_v1  ;;  %p401_p12 = scmp.lt.s32.totalorder %s3953_s15, 15  ;;  %v1100_v5 = vld [vmem:[%s7005_s3 + $0x8] sm:$0xff]  ;;  %v1102_v6 = vld [vmem:[%s7005_s3 + $0x18] sm:$0xff]  ;;  %v1099_v8 = vld [vmem:[%s7005_s3] sm:$0xff]  ;;  %v4853_v34 = vmov 0.0   ;;  %vm1710_vm0 = vcmask 1041409  }
  0x6c   : > { %v3964_v7 = vpack.c.bf16 %v1102_v6, %v1100_v5  ;;  %v1101_v9 = vld [vmem:[%s7005_s3 + $0x10] sm:$0xff]  ;;  %v1104_v11 = vld [vmem:[%s7005_s3 + $0x28] sm:$0xff]  ;;  %v1106_v12 = vld [vmem:[%s7005_s3 + $0x38] sm:$0xff]  ;;  %1207 = vmatprep.mubr.f32.mxu0 %v4853_v34  ;;  %vm1712_vm1 = vcmask 1042434   ;;  %vm1714_vm2 = vcmask 1043459   ;;  %vm1716_vm3 = vcmask 1044484  }
  0x6d   : > { %s7338_s15 = smov (!%p401_p12, %s3953_s15), 15  ;;  %v3966_v10 = vpack.c.bf16 %v1101_v9, %v1099_v8  ;;  %v1103_v13 = vld [vmem:[%s7005_s3 + $0x20] sm:$0xff]  ;;  %v3968_v15 = vpack.c.bf16 %v1106_v12, %v1104_v11  ;;  %v1105_v16 = vld [vmem:[%s7005_s3 + $0x30] sm:$0xff]  ;;  %v1108_v17 = vld [vmem:[%s7005_s3 + $0x48] sm:$0xff]  ;;  %vm1718_vm4 = vcmask 1045509   ;;  %vm1720_vm5 = vcmask 1046534  }
  0x6e   : > { %s3962_s25 = sshll.u32 %s7338_s15, 5  ;;  %3965 = vmatprep.subr.bf16.mxu0 %v3964_v7  ;;  %v3970_v18 = vpack.c.bf16 %v1105_v16, %v1103_v13  ;;  %v1110_v19 = vld [vmem:[%s7005_s3 + $0x58] sm:$0xff]  ;;  %v1107_v21 = vld [vmem:[%s7005_s3 + $0x40] sm:$0xff]  ;;  %v1109_v22 = vld [vmem:[%s7005_s3 + $0x50] sm:$0xff]  ;;  %v600_v16 = vlaneseq  ;;  %vm1722_vm6 = vcmask 1047559   ;;  %s397_s13 = sand.u32 1, %s4833_s14  }
  0x6f   : > { %s5065_s16 = scalar_lea.vmem %s7002_s0, %s3962_s25  ;;  %3967 = vmatpush1.bf16.msra.mxu0 %v3966_v10  ;;  %v3972_v20 = vpack.c.bf16 %v1110_v19, %v1108_v17  ;;  %v1112_v23 = vld [vmem:[%s7005_s3 + $0x68] sm:$0xff]  ;;  %v1114_v24 = vld [vmem:[%s7005_s3 + $0x78] sm:$0xff]  ;;  %v3974_v27 = vpack.c.bf16 %v1109_v22, %v1107_v21  ;;  %v1111_v29 = vld [vmem:[%s7005_s3 + $0x60] sm:$0xff]  ;;  %s3952_s15 = sshll.u32 %s397_s13, 4 }
  0x70   : > { %v407_v2 = vld [vmem:[%s5065_s16] sm:$0xff]  ;;  %v5069_v3 = vld [vmem:[%s5065_s16 + $0x8] sm:$0xff]  ;;  %v5124_v25 = vld [vmem:[%s5065_s16 + $0x30] sm:$0xff]  ;;  %3969 = vmatprep.subr.bf16.mxu0 %v3968_v15  ;;  %v3976_v28 = vpack.c.bf16 %v1114_v24, %v1112_v23  ;;  %s3963_s25 = sshll.u32 %s4932_s17, 8  ;;  %s399_s28 = scalar_lea.vmem [#allocation8], %s3952_s15 }
  0x71   : > { %833 = vperm.xlu1 %4621, %v407_v2   ;;  %442 = vperm.xlu0 %4619, %v407_v2   ;;  %v5096_v14 = vld [vmem:[%s5065_s16 + $0x28] sm:$0xff]  ;;  %v409_v26 = vld [vmem:[%s5065_s16 + $0x10] sm:$0xff]  ;;  %v1118_v32 = vld [vmem:[%s7005_s3 + $0x98] sm:$0xff]  ;;  %s3852_s12 = sshll.u32 %s399_s28, 4  ;;  %s6959_s21 = scalar_lea.hbm %s7012_s10, %s3963_s25  ;;  %s6961_s12 = int_to_ptr.vmem [resolvable:$true] %s3852_s12 }
  0x72   : > { %v1113_v30 = vld [vmem:[%s7005_s3 + $0x70] sm:$0xff]  ;;  %v1116_v31 = vld [vmem:[%s7005_s3 + $0x88] sm:$0xff]  ;;  %v1115_v37 = vld [vmem:[%s7005_s3 + $0x80] sm:$0xff]  ;;  %s3838_s17 = scalar_lea.sflag [#allocation4], %s397_s13  ;;  %s4771_s26 = scalar_lea.vmem %s6961_s12, 256 }
  0x73   : > { %3971 = vmatpush1.bf16.msra.mxu0 %v3970_v18  ;;  %v5142_v33 = vld [vmem:[%s5065_s16 + $0x50] sm:$0xff]  ;;  %v3978_v35 = vpack.c.bf16 %v1113_v30, %v1111_v29  ;;  %v3980_v36 = vpack.c.bf16 %v1118_v32, %v1116_v31  ;;  %v1120_v39 = vld [vmem:[%s7005_s3 + $0xa8] sm:$0xff]  ;;  %v1122_v40 = vld [vmem:[%s7005_s3 + $0xb8] sm:$0xff]  ;;  %v5274_v18 = vshrl.u32 %v600_v16, 7  ;;  %p4772_p4 = scmp.ne.s32.totalorder %s6961_s12, %s4771_s26  ;;  %p7327_p7 = scmp.ne.s32.totalorder %s7100_s23, 0 }
  0x74   : > { %3973 = vmatprep.subr.bf16.mxu0 %v3972_v20  ;;  %v1117_v38 = vld [vmem:[%s7005_s3 + $0x90] sm:$0xff]  ;;  %v5160_v41 = vld [vmem:[%s5065_s16 + $0x58] sm:$0xff]  ;;  %v3984_v43 = vpack.c.bf16 %v1122_v40, %v1120_v39  ;;  %v1119_v44 = vld [vmem:[%s7005_s3 + $0xa0] sm:$0xff] }
  0x75   : > { %4622 = vset.pattern.permute.xlu1 %v4851_v1  ;;  %4620 = vset.pattern.permute.xlu0 %v4852_v4  ;;  %v3982_v42 = vpack.c.bf16 %v1117_v38, %v1115_v37  ;;  %v1121_v45 = vld [vmem:[%s7005_s3 + $0xb0] sm:$0xff]  ;;  %v410_v46 = vld [vmem:[%s5065_s16 + $0x18] sm:$0xff]  ;;  %v1124_v47 = vld [vmem:[%s7005_s3 + $0xc8] sm:$0xff]  ;;  %7111 = vst [vmem:[#allocation18_spill] sm:$0xff] %v5274_v18  ;;  %v5278_v19 = vsub.s32 0, %v5274_v18  ;;  %v5282_v20 = vsub.s32 1, %v5274_v18  ;;  %p4773_p8 = pnand %p4772_p4, %p7327_p7 }
  0x76   : > { %447 = vperm.xlu1 %4622, %v5069_v3   ;;  %637 = vperm.xlu0 %4620, %v407_v2   ;;  %v1126_v48 = vld [vmem:[%s7005_s3 + $0xd8] sm:$0xff]  ;;  %v3986_v49 = vpack.c.bf16 %v1121_v45, %v1119_v44  ;;  %v1123_v51 = vld [vmem:[%s7005_s3 + $0xc0] sm:$0xff]  ;;  %v1125_v52 = vld [vmem:[%s7005_s3 + $0xd0] sm:$0xff]  ;;  %v5290_v22 = vsub.s32 2, %v5274_v18 }
  0x77   : > { %3975 = vmatpush1.bf16.msra.mxu0 %v3974_v27  ;;  %v3988_v50 = vpack.c.bf16 %v1126_v48, %v1124_v47  ;;  %v1128_v53 = vld [vmem:[%s7005_s3 + $0xe8] sm:$0xff]  ;;  %v1130_v54 = vld [vmem:[%s7005_s3 + $0xf8] sm:$0xff]  ;;  %v3990_v55 = vpack.c.bf16 %v1125_v52, %v1123_v51  ;;  %v1127_v57 = vld [vmem:[%s7005_s3 + $0xe0] sm:$0xff]  ;;  %7112 = vst [vmem:[#allocation19_spill] sm:$0xff] %v5278_v19  ;;  %p4774_p11 = pneg %p4773_p8 }
  0x78   : > { %3977 = vmatprep.subr.bf16.mxu0 %v3976_v28  ;;  %v3992_v56 = vpack.c.bf16 %v1130_v54, %v1128_v53  ;;  %v1129_v58 = vld [vmem:[%s7005_s3 + $0xf0] sm:$0xff]  ;;  %v411_v59 = vld [vmem:[%s5065_s16 + $0x20] sm:$0xff]  ;;  %v414_v61 = vld [vmem:[%s5065_s16 + $0x38] sm:$0xff]  ;;  %7113 = vst [vmem:[#allocation20_spill] sm:$0xff] %v5282_v20 }
  0x79   : > { %v3994_v60 = vpack.c.bf16 %v1129_v58, %v1127_v57  ;;  %v419_v62 = vld [vmem:[%s5065_s16 + $0x60] sm:$0xff]  ;;  %v5214_v2 = vld [vmem:[%s5065_s16 + $0x88] sm:$0xff]  ;;  %v421_v7 = vld [vmem:[%s5065_s16 + $0x70] sm:$0xff]  ;;  %7114 = vst [vmem:[#allocation21_spill] sm:$0xff] %v5290_v22 }
  0x7a   : > { %4623 = vset.pattern.permute.xlu1 %v4852_v4  ;;  %4630 = vset.pattern.permute.xlu0 %v4851_v1  ;;  %v5208_v63 = vld [vmem:[%s5065_s16 + $0x80] sm:$0xff]  ;;  %v416_v5 = vld [vmem:[%s5065_s16 + $0x48] sm:$0xff]  ;;  %v5230_v8 = vld [vmem:[%s5065_s16 + $0x90] sm:$0xff] }
  0x7b   : > { %641 = vperm.xlu1 %4623, %v5069_v3   ;;  %467 = vperm.xlu0 %4630, %v5096_v14   ;;  %v420_v6 = vld [vmem:[%s5065_s16 + $0x68] sm:$0xff]  ;;  %v5235_v9 = vld [vmem:[%s5065_s16 + $0x98] sm:$0xff]  ;;  %v5245_v11 = vld [vmem:[%s5065_s16 + $0xc0] sm:$0xff] }
  0x7c   : > { %3979 = vmatpush1.bf16.msra.mxu0 %v3978_v35  ;;  %v5240_v10 = vld [vmem:[%s5065_s16 + $0xb8] sm:$0xff]  ;;  %v5257_v13 = vld [vmem:[%s5065_s16 + $0xa0] sm:$0xff]  ;;  %v5267_v15 = vld [vmem:[%s5065_s16 + $0xc8] sm:$0xff] }
  0x7d   : > { %3981 = vmatprep.subr.bf16.mxu0 %v3980_v36  ;;  %v422_v12 = vld [vmem:[%s5065_s16 + $0x78] sm:$0xff]  ;;  %v5271_v17 = vld [vmem:[%s5065_s16 + $0xd0] sm:$0xff]  ;;  %v439_v21 = vld [vmem:[%s7003_s1] sm:$0x7] }
  0x7e   : > { %v5293_v24 = vrot.slane %v439_v21, %v5278_v19  ;;  %v5300_v27 = vld [vmem:[%s5065_s16 + $0xb0] sm:$0xff]  ;;  %v5304_v28 = vrot.slane %v439_v21, %v5290_v22  ;;  %v5314_v36 = vld [vmem:[%s7004_s2] ss:$0 sm:$0xff]  ;;  %v5319_v40 = vld [vmem:[%s5065_s16 + $0xd8] sm:$0xff] }
  0x7f   : > { %4624 = vset.pattern.permute.xlu1 %v4851_v1  ;;  %472 = vperm.xlu0 %4630, %v5124_v25   ;;  %v5352_v54 = vld [vmem:[%s5065_s16 + $0xf8] sm:$0xff] }
  0x80   : > { %452 = vperm.xlu1 %4624, %v409_v26   ;;  %3983 = vmatpush1.bf16.msra.mxu0 %v3982_v42  ;;  %v5325_v42 = vld [vmem:[%s5065_s16 + $0xe0] sm:$0xff] }
  0x81   : > { %3985 = vmatprep.subr.bf16.mxu0 %v3984_v43 }
  0x83   : > { %492 = vperm.xlu0 %4630, %v5142_v33  }
  0x84   : > { %4625 = vset.pattern.permute.xlu1 %v4852_v4  ;;  %3987 = vmatpush1.bf16.msra.mxu0 %v3986_v49 }
  0x85   : > { %645 = vperm.xlu1 %4625, %v409_v26   ;;  %3989 = vmatprep.subr.bf16.mxu0 %v3988_v50  ;;  %v5344_v50 = vld [vmem:[%s5065_s16 + $0xf0] sm:$0xff] }
  0x87   : > { %497 = vperm.xlu0 %4630, %v5160_v41  }
  0x88   : > { %3991 = vmatpush1.bf16.msra.mxu0 %v3990_v55 }
  0x89   : > { %4626 = vset.pattern.permute.xlu1 %v4851_v1  ;;  %3993 = vmatprep.subr.bf16.mxu0 %v3992_v56 }
  0x8a   : > { %457 = vperm.xlu1 %4626, %v410_v46  }
  0x8b   : > { %4642 = vset.pattern.permute.xlu0 %v4850_v0 }
  0x8c   : > { %837 = vperm.xlu0 %4642, %v5069_v3   ;;  %3995 = vmatpush1.bf16.msra.mxu0 %v3994_v60  ;;  %v415_v3 = vld [vmem:[%s5065_s16 + $0x40] sm:$0xff] }
  0x8e   : > { %4627 = vset.pattern.permute.xlu1 %v4850_v0 }
  0x8f   : > { %845 = vperm.xlu1 %4627, %v410_v46  }
  0x90   : > { %841 = vperm.xlu0 %4642, %v409_v26   ;;  %v5297_v26 = vrot.slane %v439_v21, %v5282_v20 }
  0x93   : > { %4628 = vset.pattern.permute.xlu1 %v4851_v1 }
  0x94   : > { %462 = vperm.xlu1 %4628, %v411_v59   ;;  %857 = vperm.xlu0 %4642, %v5124_v25  }
  0x98   : > { %4629 = vset.pattern.permute.xlu1 %v4850_v0  ;;  %861 = vperm.xlu0 %4642, %v414_v61  }
  0x99   : > { %849 = vperm.xlu1 %4629, %v411_v59  }
  0x9c   : > { %877 = vperm.xlu0 %4642, %v5160_v41  }
  0x9d   : > { %4631 = vset.pattern.permute.xlu1 %v4852_v4 }
  0x9e   : > { %657 = vperm.xlu1 %4631, %v5096_v14  }
  0xa0   : > { %881 = vperm.xlu0 %4642, %v419_v62  }
  0xa2   : > { %4632 = vset.pattern.permute.xlu1 %v4850_v0 }
  0xa3   : > { %853 = vperm.xlu1 %4632, %v5096_v14   ;;  %v5262_v14 = vld [vmem:[%s5065_s16 + $0xa8] sm:$0xff] }
  0xa4   : > { %897 = vperm.xlu0 %4642, %v5208_v63  }
  0xa7   : > { %4633 = vset.pattern.permute.xlu1 %v4852_v4 }
  0xa8   : > { %661 = vperm.xlu1 %4633, %v5124_v25   ;;  %901 = vperm.xlu0 %4642, %v5214_v2  }
  0xac   : > { %4634 = vset.pattern.permute.xlu1 %v4851_v1  ;;  %4655 = vset.pattern.permute.xlu0 %v4852_v4 }
  0xad   : > { %477 = vperm.xlu1 %4634, %v414_v61   ;;  %649 = vperm.xlu0 %4655, %v410_v46   ;;  %v5334_v46 = vld [vmem:[%s5065_s16 + $0xe8] sm:$0xff]  ;;  %s4855_s16 = smov [#allocation8]  }
  0xae   : > { %s4775_s29 = sshll.u32 %s4855_s16, 4  ;;  %s4776_s29 = int_to_ptr.vmem [resolvable:$false] %s4775_s29 }
  0xaf   : > { %s4777_s11 = scalar_lea.vmem %s4776_s29, 512  ;;  %p4778_p13 = scmp.lt.s32.totalorder %s6961_s12, %s4776_s29 }
  0xb0   : > { %p4779_p1 = scmp.lt.s32.totalorder %s4777_s11, %s4771_s26 }
  0xb1   : > { %4635 = vset.pattern.permute.xlu1 %v4852_v4  ;;  %653 = vperm.xlu0 %4655, %v411_v59  }
  0xb2   : > { %665 = vperm.xlu1 %4635, %v414_v61   ;;  %p4780_p6 = por %p4779_p1, %p4778_p13 }
  0xb4   : > { %p4781_p9 = pnand %p4780_p6, %p4774_p11 }
  0xb5   : > { %669 = vperm.xlu0 %4655, %v415_v3  }
  0xb6   : > { %4636 = vset.pattern.permute.xlu1 %v4851_v1 }
  0xb7   : > { %482 = vperm.xlu1 %4636, %v415_v3  }
  0xb9   : > { %673 = vperm.xlu0 %4655, %v416_v5  }
  0xbb   : > { %4637 = vset.pattern.permute.xlu1 %v4850_v0 }
  0xbc   : > { %865 = vperm.xlu1 %4637, %v415_v3  }
  0xbd   : > { %689 = vperm.xlu0 %4655, %v420_v6  }
  0xc0   : > { %4638 = vset.pattern.permute.xlu1 %v4851_v1 }
  0xc1   : > { %487 = vperm.xlu1 %4638, %v416_v5   ;;  %693 = vperm.xlu0 %4655, %v421_v7  }
  0xc5   : > { %4639 = vset.pattern.permute.xlu1 %v4850_v0  ;;  %709 = vperm.xlu0 %4655, %v5230_v8  }
  0xc6   : > { %869 = vperm.xlu1 %4639, %v416_v5  }
  0xc9   : > { %713 = vperm.xlu0 %4655, %v5235_v9  }
  0xca   : > { %4640 = vset.pattern.permute.xlu1 %v4852_v4 }
  0xcb   : > { %677 = vperm.xlu1 %4640, %v5142_v33  }
  0xcd   : > { %729 = vperm.xlu0 %4655, %v5240_v10  }
  0xcf   : > { %4641 = vset.pattern.permute.xlu1 %v4850_v0 }
  0xd0   : > { %873 = vperm.xlu1 %4641, %v5142_v33  }
  0xd1   : > { %733 = vperm.xlu0 %4655, %v5245_v11  }
  0xd4   : > { %4643 = vset.pattern.permute.xlu1 %v4852_v4 }
  0xd5   : > { %681 = vperm.xlu1 %4643, %v5160_v41   ;;  %4668 = vset.pattern.permute.xlu0 %v4851_v1 }
  0xd6   : > { %517 = vperm.xlu0 %4668, %v422_v12  }
  0xd9   : > { %4644 = vset.pattern.permute.xlu1 %v4851_v1 }
  0xda   : > { %502 = vperm.xlu1 %4644, %v419_v62   ;;  %522 = vperm.xlu0 %4668, %v5208_v63  }
  0xde   : > { %4645 = vset.pattern.permute.xlu1 %v4852_v4  ;;  %542 = vperm.xlu0 %4668, %v5257_v13  }
  0xdf   : > { %685 = vperm.xlu1 %4645, %v419_v62  }
  0xe2   : > { %547 = vperm.xlu0 %4668, %v5262_v14  }
  0xe3   : > { %4646 = vset.pattern.permute.xlu1 %v4851_v1 }
  0xe4   : > { %507 = vperm.xlu1 %4646, %v420_v6  }
  0xe6   : > { %567 = vperm.xlu0 %4668, %v5267_v15  }
  0xe8   : > { %4647 = vset.pattern.permute.xlu1 %v4850_v0 }
  0xe9   : > { %885 = vperm.xlu1 %4647, %v420_v6  }
  0xea   : > { %572 = vperm.xlu0 %4668, %v5271_v17  }
  0xed   : > { %4648 = vset.pattern.permute.xlu1 %v4851_v1 }
  0xee   : > { %512 = vperm.xlu1 %4648, %v421_v7   ;;  %4672 = vset.pattern.permute.xlu0 %v4850_v0 }
  0xef   : > { %917 = vperm.xlu0 %4672, %v5262_v14  }
  0xf0   : > { %v834_v23 = vpop.permute.xlu1 %833  ;;  %v443_v25 = vpop.permute.xlu0 %442 }
  0xf1   : > { %v604_v29 = vmul.f32 %v5293_v24, %v443_v25  ;;  %v964_v33 = vmul.f32 %v5304_v28, %v834_v23 }
  0xf2   : > { %4649 = vset.pattern.permute.xlu1 %v4850_v0 }
  0xf3   : > { %889 = vperm.xlu1 %4649, %v421_v7   ;;  %921 = vperm.xlu0 %4672, %v5300_v27  }
  0xf5   : > { %v448_v30 = vpop.permute.xlu1 %447  ;;  %v638_v31 = vpop.permute.xlu0 %637 }
  0xf6   : > { %v768_v32 = vmul.f32 %v5297_v26, %v638_v31  ;;  %v605_v53 = vmul.f32 %v5293_v24, %v448_v30 }
  0xf7   : > { %4650 = vset.pattern.permute.xlu1 %v4852_v4  ;;  %937 = vperm.xlu0 %4672, %v5271_v17  }
  0xf8   : > { %v800_v35 = vadd.f32 %v768_v32, %v604_v29  ;;  %697 = vperm.xlu1 %4650, %v422_v12  }
  0xfa   : > { %v996_v37 = vadd.f32 %v964_v33, %v800_v35  ;;  %v642_v38 = vpop.permute.xlu1 %641  ;;  %v5316_v39 = vpop.permute.xlu0 %467 }
  0xfb   : > { %941 = vperm.xlu0 %4672, %v5319_v40   ;;  %v769_v51 = vmul.f32 %v5297_v26, %v642_v38 }
  0xfc   : > { %4651 = vset.pattern.permute.xlu1 %v4850_v0  ;;  %v1035_v41 = vadd.f32 %v5314_v36, %v996_v37 }
  0xfd   : > { %893 = vperm.xlu1 %4651, %v422_v12   ;;  %v801_v56 = vadd.f32 %v769_v51, %v605_v53 }
  0xfe   : > { %v5327_v43 = vpop.permute.xlu0 %472  ;;  %v1067_v44 = vmax.f32 %v1035_v41, 0.0 }
  0xff   : > { %v453_v45 = vpop.permute.xlu1 %452  ;;  %4677 = vset.pattern.permute.xlu0 %v4852_v4 }
 0x100   : > { %1208 = vmatmul.mubr.f32.vlgmr.msra.gmra.mrb[0].mxu0 %v1067_v44  ;;  %749 = vperm.xlu0 %4677, %v5325_v42   ;;  %v606_v59 = vmul.f32 %v5293_v24, %v453_v45  ;;  %v609_v44 = vmul.f32 %v5293_v24, %v5316_v39 }
 0x101   : > { %4652 = vset.pattern.permute.xlu1 %v4852_v4  ;;  %1213 = vmatprep.mubr.f32.mxu0 %v4853_v34 }
 0x102   : > { %701 = vperm.xlu1 %4652, %v5208_v63   ;;  %v5337_v47 = vpop.permute.xlu0 %492 }
 0x104   : > { %v646_v48 = vpop.permute.xlu1 %645  ;;  %753 = vperm.xlu0 %4677, %v5334_v46  }
 0x105   : > { %v770_v57 = vmul.f32 %v5297_v26, %v646_v48 }
 0x106   : > { %4653 = vset.pattern.permute.xlu1 %v4851_v1  ;;  %v5341_v49 = vpop.permute.xlu0 %497 }
 0x107   : > { %527 = vperm.xlu1 %4653, %v5214_v2   ;;  %v802_v63 = vadd.f32 %v770_v57, %v606_v59 }
 0x108   : > { %4681 = vset.pattern.permute.xlu0 %v4851_v1 }
 0x109   : > { %v458_v52 = vpop.permute.xlu1 %457  ;;  %592 = vperm.xlu0 %4681, %v5344_v50  }
 0x10a   : > { %v607_v41 = vmul.f32 %v5293_v24, %v458_v52 }
 0x10b   : > { %4654 = vset.pattern.permute.xlu1 %v4852_v4  ;;  %v838_v55 = vpop.permute.xlu0 %837 }
 0x10c   : > { %v965_v58 = vmul.f32 %v5304_v28, %v838_v55  ;;  %705 = vperm.xlu1 %4654, %v5214_v2  }
 0x10d   : > { %597 = vperm.xlu0 %4681, %v5352_v54  }
 0x10e   : > { %v997_v60 = vadd.f32 %v965_v58, %v801_v56  ;;  %v846_v61 = vpop.permute.xlu1 %845 }
 0x10f   : > { %v842_v62 = vpop.permute.xlu0 %841  ;;  %v967_v48 = vmul.f32 %v5304_v28, %v846_v61 }
 0x110   : > { %v966_v3 = vmul.f32 %v5304_v28, %v842_v62  ;;  %4656 = vset.pattern.permute.xlu1 %v4851_v1  ;;  %v1036_v5 = vadd.f32 %v5314_v36, %v997_v60 }
 0x111   : > { %532 = vperm.xlu1 %4656, %v5230_v8   ;;  %4685 = vset.pattern.permute.xlu0 %v4850_v0 }
 0x112   : > { %v998_v6 = vadd.f32 %v966_v3, %v802_v63  ;;  %v1068_v2 = vmax.f32 %v1036_v5, 0.0  ;;  %957 = vperm.xlu0 %4685, %v5352_v54  }
 0x113   : > { %v463_v7 = vpop.permute.xlu1 %462  ;;  %v858_v12 = vpop.permute.xlu0 %857 }
 0x114   : > { %1214 = vmatmul.mubr.f32.gmra.mrb[2].mxu0 %v1068_v2  ;;  %v1037_v16 = vadd.f32 %v5314_v36, %v998_v6  ;;  %v608_v55 = vmul.f32 %v5293_v24, %v463_v7 }
 0x115   : > { %4657 = vset.pattern.permute.xlu1 %v4850_v0  ;;  %1219 = vmatprep.mubr.f32.mxu0 %v4853_v34 }
 0x116   : > { %905 = vperm.xlu1 %4657, %v5230_v8   ;;  %v1069_v21 = vmax.f32 %v1037_v16, 0.0 }
 0x117   : > { %v862_v23 = vpop.permute.xlu0 %861 }
 0x118   : > { %v850_v25 = vpop.permute.xlu1 %849  ;;  %1220 = vmatmul.mubr.f32.gmra.mrb[4].mxu0 %v1069_v21  ;;  %v971_v21 = vmul.f32 %v5304_v28, %v862_v23 }
 0x119   : > { %1225 = vmatprep.mubr.f32.mxu0 %v4853_v34  ;;  %v968_v60 = vmul.f32 %v5304_v28, %v850_v25 }
 0x11a   : > { %4658 = vset.pattern.permute.xlu1 %v4851_v1 }
 0x11b   : > { %537 = vperm.xlu1 %4658, %v5235_v9   ;;  %v5373_v29 = vpop.permute.xlu0 %877 }
 0x11d   : > { %v658_v30 = vpop.permute.xlu1 %657 }
 0x11e   : > { %v773_v45 = vmul.f32 %v5297_v26, %v658_v30 }
 0x11f   : > { %4659 = vset.pattern.permute.xlu1 %v4850_v0  ;;  %v5376_v31 = vpop.permute.xlu0 %881 }
 0x120   : > { %909 = vperm.xlu1 %4659, %v5235_v9   ;;  %v805_v59 = vadd.f32 %v773_v45, %v609_v44 }
 0x122   : > { %v854_v8 = vpop.permute.xlu1 %853 }
 0x123   : > { %v5379_v32 = vpop.permute.xlu0 %897  ;;  %v969_v53 = vmul.f32 %v5304_v28, %v854_v8 }
 0x124   : > { %4660 = vset.pattern.permute.xlu1 %v4852_v4 }
 0x125   : > { %717 = vperm.xlu1 %4660, %v5257_v13   ;;  %v1001_v62 = vadd.f32 %v969_v53, %v805_v59 }
 0x127   : > { %v662_v33 = vpop.permute.xlu1 %661  ;;  %v5383_v35 = vpop.permute.xlu0 %901 }
 0x128   : > { %v774_v56 = vmul.f32 %v5297_v26, %v662_v33  ;;  %v1040_v33 = vadd.f32 %v5314_v36, %v1001_v62  ;;  %v614_v62 = vmul.f32 %v5293_v24, %v5337_v47 }
 0x129   : > { %4661 = vset.pattern.permute.xlu1 %v4850_v0 }
 0x12a   : > { %913 = vperm.xlu1 %4661, %v5257_v13   ;;  %v610_v13 = vmul.f32 %v5293_v24, %v5327_v43  ;;  %v970_v43 = vmul.f32 %v5304_v28, %v858_v12  ;;  %v1072_v44 = vmax.f32 %v1040_v33, 0.0 }
 0x12c   : > { %v478_v37 = vpop.permute.xlu1 %477  ;;  %v650_v38 = vpop.permute.xlu0 %649  ;;  %v806_v63 = vadd.f32 %v774_v56, %v610_v13 }
 0x12d   : > { %v771_v9 = vmul.f32 %v5297_v26, %v650_v38  ;;  %v611_v7 = vmul.f32 %v5293_v24, %v478_v37 }
 0x12e   : > { %4662 = vset.pattern.permute.xlu1 %v4852_v4  ;;  %v1002_v12 = vadd.f32 %v970_v43, %v806_v63 }
 0x12f   : > { %v803_v51 = vadd.f32 %v771_v9, %v607_v41  ;;  %721 = vperm.xlu1 %4662, %v5262_v14  }
 0x130   : > { %v654_v52 = vpop.permute.xlu0 %653  ;;  %v1041_v45 = vadd.f32 %v5314_v36, %v1002_v12  ;;  %v1880_v12 = vld [vmem:[#allocation5 + $0x28] sm:$0xff] }
 0x131   : > { %v999_v39 = vadd.f32 %v967_v48, %v803_v51  ;;  %v772_v57 = vmul.f32 %v5297_v26, %v654_v52  ;;  %v666_v58 = vpop.permute.xlu1 %665 }
 0x132   : > { %v775_v5 = vmul.f32 %v5297_v26, %v666_v58  ;;  %v1073_v53 = vmax.f32 %v1041_v45, 0.0  ;;  %v1888_v45 = vld [vmem:[#allocation5 + $0x68] sm:$0xff] }
 0x133   : > { %v804_v61 = vadd.f32 %v772_v57, %v608_v55  ;;  %4663 = vset.pattern.permute.xlu1 %v4851_v1  ;;  %v1038_v14 = vadd.f32 %v5314_v36, %v999_v39 }
 0x134   : > { %552 = vperm.xlu1 %4663, %v5300_v27   ;;  %v670_v25 = vpop.permute.xlu0 %669  ;;  %v807_v30 = vadd.f32 %v775_v5, %v611_v7 }
 0x135   : > { %v1000_v3 = vadd.f32 %v968_v60, %v804_v61  ;;  %v1070_v6 = vmax.f32 %v1038_v14, 0.0  ;;  %v776_v37 = vmul.f32 %v5297_v26, %v670_v25 }
 0x136   : > { %v483_v2 = vpop.permute.xlu1 %482  ;;  %v1003_v23 = vadd.f32 %v971_v21, %v807_v30  ;;  %v975_v30 = vmul.f32 %v5304_v28, %v5373_v29 }
 0x137   : > { %1226 = vmatmul.mubr.f32.gmra.mrb[6].mxu0 %v1070_v6  ;;  %v1039_v16 = vadd.f32 %v5314_v36, %v1000_v3  ;;  %v612_v38 = vmul.f32 %v5293_v24, %v483_v2 }
 0x138   : > { %4664 = vset.pattern.permute.xlu1 %v4852_v4  ;;  %1231 = vmatprep.mubr.f32.mxu0 %v4853_v34  ;;  %v674_v48 = vpop.permute.xlu0 %673  ;;  %v1042_v52 = vadd.f32 %v5314_v36, %v1003_v23 }
 0x139   : > { %725 = vperm.xlu1 %4664, %v5300_v27   ;;  %v1071_v8 = vmax.f32 %v1039_v16, 0.0  ;;  %v808_v27 = vadd.f32 %v776_v37, %v612_v38  ;;  %v777_v56 = vmul.f32 %v5297_v26, %v674_v48  ;;  %v615_v16 = vmul.f32 %v5293_v24, %v5341_v49  ;;  %v1875_v38 = vld [vmem:[#allocation5] sm:$0xff] }
 0x13a   : > { %v1074_v57 = vmax.f32 %v1042_v52, 0.0  ;;  %v1879_v37 = vld [vmem:[#allocation5 + $0x20] sm:$0xff] }
 0x13b   : > { %v866_v41 = vpop.permute.xlu1 %865  ;;  %1232 = vmatmul.mubr.f32.gmra.mrb[8].mxu0 %v1071_v8  ;;  %v4126_v23 = vpack.c.bf16 %v1879_v37, %v1875_v38  ;;  %v1911_v38 = vld [vmem:[#allocation5 + $0x120] sm:$0xff] }
 0x13c   : > { %1237 = vmatprep.mubr.f32.mxu0 %v4853_v34  ;;  %v972_v9 = vmul.f32 %v5304_v28, %v866_v41  ;;  %v690_v47 = vpop.permute.xlu0 %689 }
 0x13d   : > { %4665 = vset.pattern.permute.xlu1 %v4851_v1 }
 0x13e   : > { %557 = vperm.xlu1 %4665, %v5240_v10   ;;  %v1004_v13 = vadd.f32 %v972_v9, %v808_v27 }
 0x13f   : > { %1238 = vmatmul.mubr.f32.gmra.mrb[10].mxu0 %v1072_v44  ;;  %v1884_v44 = vld [vmem:[#allocation5 + $0x48] sm:$0xff] }
 0x140   : > { %v488_v51 = vpop.permute.xlu1 %487  ;;  %1243 = vmatprep.mubr.f32.mxu0 %v4853_v34  ;;  %v1043_v58 = vadd.f32 %v5314_v36, %v1004_v13  ;;  %v5452_v49 = vpop.permute.xlu0 %693  ;;  %v4128_v48 = vpack.c.bf16 %v1888_v45, %v1884_v44  ;;  %v1887_v13 = vld [vmem:[#allocation5 + $0x60] sm:$0xff] }
 0x141   : > { %v613_v55 = vmul.f32 %v5293_v24, %v488_v51  ;;  %v1883_v51 = vld [vmem:[#allocation5 + $0x40] sm:$0xff] }
 0x142   : > { %4666 = vset.pattern.permute.xlu1 %v4850_v0  ;;  %v1075_v14 = vmax.f32 %v1043_v58, 0.0  ;;  %v1895_v58 = vld [vmem:[#allocation5 + $0xa0] sm:$0xff] }
 0x143   : > { %925 = vperm.xlu1 %4666, %v5240_v10   ;;  %1244 = vmatmul.mubr.f32.gmra.mrb[12].mxu0 %v1073_v53  ;;  %v809_v59 = vadd.f32 %v777_v56, %v613_v55  ;;  %v4130_v53 = vpack.c.bf16 %v1887_v13, %v1883_v51  ;;  %v1896_v55 = vld [vmem:[#allocation5 + $0xa8] sm:$0xff] }
 0x144   : > { %1249 = vmatprep.mubr.f32.mxu0 %v4853_v34 }
 0x145   : > { %v870_v39 = vpop.permute.xlu1 %869 }
 0x146   : > { %v973_v60 = vmul.f32 %v5304_v28, %v870_v39 }
 0x147   : > { %4667 = vset.pattern.permute.xlu1 %v4851_v1  ;;  %1250 = vmatmul.mubr.f32.gmra.mrb[14].mxu0 %v1074_v57  ;;  %v1891_v57 = vld [vmem:[#allocation5 + $0x80] sm:$0xff] }
 0x148   : > { %v1005_v61 = vadd.f32 %v973_v60, %v809_v59  ;;  %562 = vperm.xlu1 %4667, %v5245_v11   ;;  %1255 = vmatprep.mubr.f32.mxu0 %v4853_v34  ;;  %v5458_v60 = vpop.permute.xlu0 %709 }
 0x14a   : > { %v678_v10 = vpop.permute.xlu1 %677  ;;  %v1044_v43 = vadd.f32 %v5314_v36, %v1005_v61  ;;  %v4134_v61 = vpack.c.bf16 %v1895_v58, %v1891_v57  ;;  %v1927_v57 = vld [vmem:[#allocation5 + $0x1a0] sm:$0xff]  ;;  %v782_v58 = vmul.f32 %v5297_v26, %v5452_v49 }
 0x14b   : > { %1256 = vmatmul.mubr.f32.gmra.mrb[16].mxu0 %v1075_v14  ;;  %v778_v63 = vmul.f32 %v5297_v26, %v678_v10  ;;  %v976_v14 = vmul.f32 %v5304_v28, %v5376_v31 }
 0x14c   : > { %4669 = vset.pattern.permute.xlu1 %v4850_v0  ;;  %1261 = vmatprep.mubr.f32.mxu0 %v4853_v34  ;;  %v1076_v3 = vmax.f32 %v1044_v43, 0.0 }
 0x14d   : > { %929 = vperm.xlu1 %4669, %v5245_v11   ;;  %v810_v6 = vadd.f32 %v778_v63, %v614_v62  ;;  %v1876_v11 = vld [vmem:[#allocation5 + $0x8] sm:$0xff] }
 0x14e   : > { %v4124_v33 = vpack.c.bf16 %v1880_v12, %v1876_v11  ;;  %v1904_v62 = vld [vmem:[#allocation5 + $0xe8] sm:$0xff] }
 0x14f   : > { %v874_v5 = vpop.permute.xlu1 %873  ;;  %1262 = vmatmul.mubr.f32.gmra.mrb[18].mxu0 %v1076_v3  ;;  %v1912_v11 = vld [vmem:[#allocation5 + $0x128] sm:$0xff] }
 0x150   : > { %v974_v2 = vmul.f32 %v5304_v28, %v874_v5  ;;  %1267 = vmatprep.mubr.f32.mxu0 %v4853_v34  ;;  %4125 = vmatprep.subr.bf16.mxu0 %v4124_v33  ;;  %v1899_v5 = vld [vmem:[#allocation5 + $0xc0] sm:$0xff] }
 0x151   : > { %4670 = vset.pattern.permute.xlu1 %v4852_v4  ;;  %4127 = vmatpush1.bf16.msra.mxu0 %v4126_v23  ;;  %v1907_v33 = vld [vmem:[#allocation5 + $0x100] sm:$0xff]  ;;  %v1916_v23 = vld [vmem:[#allocation5 + $0x148] sm:$0xff] }
 0x152   : > { %v1006_v7 = vadd.f32 %v974_v2, %v810_v6  ;;  %737 = vperm.xlu1 %4670, %v5267_v15   ;;  %4129 = vmatprep.subr.bf16.mxu0 %v4128_v48  ;;  %v1903_v6 = vld [vmem:[#allocation5 + $0xe0] sm:$0xff] }
 0x153   : > { %v4138_v31 = vpack.c.bf16 %v1903_v6, %v1899_v5  ;;  %v1919_v48 = vld [vmem:[#allocation5 + $0x160] sm:$0xff] }
 0x154   : > { %v682_v21 = vpop.permute.xlu1 %681  ;;  %v1045_v25 = vadd.f32 %v5314_v36, %v1006_v7 }
 0x155   : > { %v779_v8 = vmul.f32 %v5297_v26, %v682_v21  ;;  %4131 = vmatpush1.bf16.msra.mxu0 %v4130_v53  ;;  %v5468_v21 = vpop.permute.xlu0 %713  ;;  %v1924_v53 = vld [vmem:[#allocation5 + $0x188] sm:$0xff] }
 0x156   : > { %4671 = vset.pattern.permute.xlu1 %v4850_v0  ;;  %v1077_v41 = vmax.f32 %v1045_v25, 0.0  ;;  %v1908_v25 = vld [vmem:[#allocation5 + $0x108] sm:$0xff] }
 0x157   : > { %v811_v9 = vadd.f32 %v779_v8, %v615_v16  ;;  %933 = vperm.xlu1 %4671, %v5267_v15   ;;  %v1892_v15 = vld [vmem:[#allocation5 + $0x88] sm:$0xff]  ;;  %v781_v16 = vmul.f32 %v5297_v26, %v690_v47  ;;  %v4140_v8 = vpack.c.bf16 %v1912_v11, %v1908_v25  ;;  %v1939_v25 = vld [vmem:[#allocation5 + $0x200] sm:$0xff] }
 0x158   : > { %1268 = vmatmul.mubr.f32.gmra.mrb[20].mxu0 %v1077_v41  ;;  %v4132_v39 = vpack.c.bf16 %v1896_v55, %v1892_v15  ;;  %v4142_v41 = vpack.c.bf16 %v1911_v38, %v1907_v33  ;;  %v1943_v11 = vld [vmem:[#allocation5 + $0x220] sm:$0xff]  ;;  %v1948_v38 = vld [vmem:[#allocation5 + $0x248] sm:$0xff] }
 0x159   : > { %v1007_v27 = vadd.f32 %v975_v30, %v811_v9  ;;  %v503_v29 = vpop.permute.xlu1 %502  ;;  %1273 = vmatprep.mubr.f32.mxu0 %v4853_v34  ;;  %v1920_v9 = vld [vmem:[#allocation5 + $0x168] sm:$0xff]  ;;  %v5476_v51 = vpop.permute.xlu0 %729  ;;  %v4158_v33 = vpack.c.bf16 %v1943_v11, %v1939_v25 }
 0x15a   : > { %v616_v10 = vmul.f32 %v5293_v24, %v503_v29  ;;  %4133 = vmatprep.subr.bf16.mxu0 %v4132_v39  ;;  %v1915_v29 = vld [vmem:[#allocation5 + $0x140] sm:$0xff]  ;;  %v1980_v25 = vld [vmem:[#allocation5 + $0x348] sm:$0xff] }
 0x15b   : > { %4673 = vset.pattern.permute.xlu1 %v4852_v4  ;;  %v1046_v52 = vadd.f32 %v5314_v36, %v1007_v27  ;;  %4135 = vmatpush1.bf16.msra.mxu0 %v4134_v61  ;;  %v4144_v27 = vpack.c.bf16 %v1920_v9, %v1916_v23  ;;  %v4146_v13 = vpack.c.bf16 %v1919_v48, %v1915_v29  ;;  %v1923_v39 = vld [vmem:[#allocation5 + $0x180] sm:$0xff]  ;;  %v1956_v29 = vld [vmem:[#allocation5 + $0x288] sm:$0xff] }
 0x15c   : > { %741 = vperm.xlu1 %4673, %v5271_v17   ;;  %v1900_v17 = vld [vmem:[#allocation5 + $0xc8] sm:$0xff]  ;;  %v1947_v9 = vld [vmem:[#allocation5 + $0x240] sm:$0xff] }
 0x15d   : > { %v1078_v56 = vmax.f32 %v1046_v52, 0.0  ;;  %v4136_v3 = vpack.c.bf16 %v1904_v62, %v1900_v17  ;;  %v1928_v52 = vld [vmem:[#allocation5 + $0x1a8] sm:$0xff] }
 0x15e   : > { %v686_v59 = vpop.permute.xlu1 %685  ;;  %v1936_v17 = vld [vmem:[#allocation5 + $0x1e8] sm:$0xff] }
 0x15f   : > { %v780_v43 = vmul.f32 %v5297_v26, %v686_v59  ;;  %1274 = vmatmul.mubr.f32.gmra.mrb[22].mxu0 %v1078_v56  ;;  %4137 = vmatprep.subr.bf16.mxu0 %v4136_v3  ;;  %v4148_v56 = vpack.c.bf16 %v1928_v52, %v1924_v53  ;;  %v1935_v3 = vld [vmem:[#allocation5 + $0x1e0] sm:$0xff]  ;;  %v1960_v48 = vld [vmem:[#allocation5 + $0x2a8] sm:$0xff] }
 0x160   : > { %4674 = vset.pattern.permute.xlu1 %v4851_v1  ;;  %1279 = vmatprep.mubr.f32.mxu0 %v4853_v34  ;;  %v4164_v52 = vpack.c.bf16 %v1960_v48, %v1956_v29  ;;  %v1996_v48 = vld [vmem:[#allocation5 + $0x3c8] sm:$0xff] }
 0x161   : > { %v812_v63 = vadd.f32 %v780_v43, %v616_v10  ;;  %577 = vperm.xlu1 %4674, %v5319_v40   ;;  %4139 = vmatpush1.bf16.msra.mxu0 %v4138_v31  ;;  %v5486_v10 = vpop.permute.xlu0 %733  ;;  %v1932_v43 = vld [vmem:[#allocation5 + $0x1c8] sm:$0xff] }
 0x162   : > { %4141 = vmatprep.subr.bf16.mxu0 %v4140_v8  ;;  %v4152_v62 = vpack.c.bf16 %v1936_v17, %v1932_v43  ;;  %v1963_v43 = vld [vmem:[#allocation5 + $0x2c0] sm:$0xff] }
 0x163   : > { %v1008_v2 = vadd.f32 %v976_v14, %v812_v63  ;;  %v508_v7 = vpop.permute.xlu1 %507  ;;  %v4150_v14 = vpack.c.bf16 %v1927_v57, %v1923_v39  ;;  %v1931_v63 = vld [vmem:[#allocation5 + $0x1c0] sm:$0xff]  ;;  %v1964_v57 = vld [vmem:[#allocation5 + $0x2c8] sm:$0xff] }
 0x164   : > { %v617_v12 = vmul.f32 %v5293_v24, %v508_v7  ;;  %v4154_v31 = vpack.c.bf16 %v1935_v3, %v1931_v63  ;;  %v1967_v17 = vld [vmem:[#allocation5 + $0x2e0] sm:$0xff]  ;;  %v980_v3 = vmul.f32 %v5304_v28, %v5379_v32 }
 0x165   : > { %4675 = vset.pattern.permute.xlu1 %v4852_v4  ;;  %v1047_v30 = vadd.f32 %v5314_v36, %v1008_v2  ;;  %4143 = vmatpush1.bf16.msra.mxu0 %v4142_v41  ;;  %v1944_v2 = vld [vmem:[#allocation5 + $0x228] sm:$0xff] }
 0x166   : > { %745 = vperm.xlu1 %4675, %v5319_v40   ;;  %v813_v44 = vadd.f32 %v781_v16, %v617_v12  ;;  %4145 = vmatprep.subr.bf16.mxu0 %v4144_v27  ;;  %v518_v12 = vpop.permute.xlu0 %517 }
 0x167   : > { %v1079_v37 = vmax.f32 %v1047_v30, 0.0  ;;  %v619_v41 = vmul.f32 %v5293_v24, %v518_v12 }
 0x168   : > { %v886_v47 = vpop.permute.xlu1 %885 }
 0x169   : > { %v977_v45 = vmul.f32 %v5304_v28, %v886_v47  ;;  %1280 = vmatmul.mubr.f32.gmra.mrb[24].mxu0 %v1079_v37  ;;  %v1952_v37 = vld [vmem:[#allocation5 + $0x268] sm:$0xff] }
 0x16a   : > { %4676 = vset.pattern.permute.xlu1 %v4851_v1  ;;  %1285 = vmatprep.mubr.f32.mxu0 %v4853_v34  ;;  %v4160_v23 = vpack.c.bf16 %v1952_v37, %v1948_v38  ;;  %v523_v53 = vpop.permute.xlu0 %522 }
 0x16b   : > { %v1009_v40 = vadd.f32 %v977_v45, %v813_v44  ;;  %582 = vperm.xlu1 %4676, %v5325_v42   ;;  %4147 = vmatpush1.bf16.msra.mxu0 %v4146_v13  ;;  %v1951_v44 = vld [vmem:[#allocation5 + $0x260] sm:$0xff] }
 0x16c   : > { %4149 = vmatprep.subr.bf16.mxu0 %v4148_v56  ;;  %v4162_v27 = vpack.c.bf16 %v1951_v44, %v1947_v9  ;;  %v1987_v44 = vld [vmem:[#allocation5 + $0x380] sm:$0xff] }
 0x16d   : > { %v513_v15 = vpop.permute.xlu1 %512  ;;  %v1048_v55 = vadd.f32 %v5314_v36, %v1009_v40 }
 0x16e   : > { %v618_v59 = vmul.f32 %v5293_v24, %v513_v15  ;;  %v1955_v15 = vld [vmem:[#allocation5 + $0x280] sm:$0xff] }
 0x16f   : > { %4678 = vset.pattern.permute.xlu1 %v4850_v0  ;;  %v1080_v61 = vmax.f32 %v1048_v55, 0.0  ;;  %4151 = vmatpush1.bf16.msra.mxu0 %v4150_v14  ;;  %v1959_v55 = vld [vmem:[#allocation5 + $0x2a0] sm:$0xff] }
 0x170   : > { %945 = vperm.xlu1 %4678, %v5325_v42   ;;  %v814_v49 = vadd.f32 %v782_v58, %v618_v59  ;;  %4153 = vmatprep.subr.bf16.mxu0 %v4152_v62  ;;  %v1940_v42 = vld [vmem:[#allocation5 + $0x208] sm:$0xff]  ;;  %v4166_v39 = vpack.c.bf16 %v1959_v55, %v1955_v15  ;;  %v1995_v55 = vld [vmem:[#allocation5 + $0x3c0] sm:$0xff] }
 0x171   : > { %1286 = vmatmul.mubr.f32.gmra.mrb[26].mxu0 %v1080_v61  ;;  %v4156_v16 = vpack.c.bf16 %v1944_v2, %v1940_v42  ;;  %v1968_v58 = vld [vmem:[#allocation5 + $0x2e8] sm:$0xff] }
 0x172   : > { %v890_v5 = vpop.permute.xlu1 %889  ;;  %1291 = vmatprep.mubr.f32.mxu0 %v4853_v34  ;;  %v4168_v14 = vpack.c.bf16 %v1968_v58, %v1964_v57 }
 0x173   : > { %v978_v6 = vmul.f32 %v5304_v28, %v890_v5  ;;  %4155 = vmatpush1.bf16.msra.mxu0 %v4154_v31  ;;  %v1976_v31 = vld [vmem:[#allocation5 + $0x328] sm:$0xff] }
 0x174   : > { %4679 = vset.pattern.permute.xlu1 %v4851_v1  ;;  %4157 = vmatprep.subr.bf16.mxu0 %v4156_v16  ;;  %v1971_v16 = vld [vmem:[#allocation5 + $0x300] sm:$0xff] }
 0x175   : > { %v1010_v7 = vadd.f32 %v978_v6, %v814_v49  ;;  %587 = vperm.xlu1 %4679, %v5334_v46   ;;  %v4170_v49 = vpack.c.bf16 %v1967_v17, %v1963_v43  ;;  %v1972_v6 = vld [vmem:[#allocation5 + $0x308] sm:$0xff] }
 0x176   : > { %v4172_v42 = vpack.c.bf16 %v1976_v31, %v1972_v6 }
 0x177   : > { %v698_v30 = vpop.permute.xlu1 %697  ;;  %v1049_v8 = vadd.f32 %v5314_v36, %v1010_v7  ;;  %4159 = vmatpush1.bf16.msra.mxu0 %v4158_v33  ;;  %v1983_v33 = vld [vmem:[#allocation5 + $0x360] sm:$0xff] }
 0x178   : > { %v783_v1 = vmul.f32 %v5297_v26, %v698_v30  ;;  %4161 = vmatprep.subr.bf16.mxu0 %v4160_v23 }
 0x179   : > { %4680 = vset.pattern.permute.xlu1 %v4850_v0  ;;  %v1081_v47 = vmax.f32 %v1049_v8, 0.0  ;;  %v1979_v8 = vld [vmem:[#allocation5 + $0x340] sm:$0xff] }
 0x17a   : > { %949 = vperm.xlu1 %4680, %v5334_v46   ;;  %v815_v40 = vadd.f32 %v783_v1, %v619_v41  ;;  %v620_v46 = vmul.f32 %v5293_v24, %v523_v53  ;;  %v1992_v41 = vld [vmem:[#allocation5 + $0x3a8] sm:$0xff]  ;;  %v786_v53 = vmul.f32 %v5297_v26, %v5458_v60 }
 0x17b   : > { %1292 = vmatmul.mubr.f32.gmra.mrb[28].mxu0 %v1081_v47  ;;  %v4178_v47 = vpack.c.bf16 %v1983_v33, %v1979_v8 }
 0x17c   : > { %v894_v45 = vpop.permute.xlu1 %893  ;;  %1297 = vmatprep.mubr.f32.mxu0 %v4853_v34  ;;  %4163 = vmatpush1.bf16.msra.mxu0 %v4162_v27 }
 0x17d   : > { %v979_v13 = vmul.f32 %v5304_v28, %v894_v45  ;;  %4165 = vmatprep.subr.bf16.mxu0 %v4164_v52  ;;  %v1991_v45 = vld [vmem:[#allocation5 + $0x3a0] sm:$0xff] }
 0x17e   : > { %4682 = vset.pattern.permute.xlu1 %v4852_v4 }
 0x17f   : > { %v1011_v56 = vadd.f32 %v979_v13, %v815_v40  ;;  %757 = vperm.xlu1 %4682, %v5344_v50   ;;  %v2000_v40 = vld [vmem:[#allocation5 + $0x3e8] sm:$0xff]  ;;  %v4182_v13 = vpack.c.bf16 %v1991_v45, %v1987_v44 }
 0x180   : > { %4167 = vmatpush1.bf16.msra.mxu0 %v4166_v39  ;;  %v543_v39 = vpop.permute.xlu0 %542 }
 0x181   : > { %v702_v59 = vpop.permute.xlu1 %701  ;;  %v1050_v61 = vadd.f32 %v5314_v36, %v1011_v56  ;;  %4169 = vmatprep.subr.bf16.mxu0 %v4168_v14  ;;  %v1999_v56 = vld [vmem:[#allocation5 + $0x3e0] sm:$0xff] }
 0x182   : > { %v784_v62 = vmul.f32 %v5297_v26, %v702_v59  ;;  %v4186_v58 = vpack.c.bf16 %v1999_v56, %v1995_v55 }
 0x183   : > { %4683 = vset.pattern.permute.xlu1 %v4850_v0  ;;  %v1082_v63 = vmax.f32 %v1050_v61, 0.0  ;;  %v1975_v0 = vld [vmem:[#allocation5 + $0x320] sm:$0xff] }
 0x184   : > { %v816_v5 = vadd.f32 %v784_v62, %v620_v46  ;;  %953 = vperm.xlu1 %4683, %v5344_v50   ;;  %4171 = vmatpush1.bf16.msra.mxu0 %v4170_v49  ;;  %v1984_v50 = vld [vmem:[#allocation5 + $0x368] sm:$0xff]  ;;  %v4174_v11 = vpack.c.bf16 %v1975_v0, %v1971_v16  ;;  %v548_v17 = vpop.permute.xlu0 %547  ;;  %v624_v16 = vmul.f32 %v5293_v24, %v543_v39 }
 0x185   : > { %1298 = vmatmul.mubr.f32.gmra.mrb[30].mxu0 %v1082_v63  ;;  %4173 = vmatprep.subr.bf16.mxu0 %v4172_v42  ;;  %v4176_v30 = vpack.c.bf16 %v1984_v50, %v1980_v25  ;;  %v625_v8 = vmul.f32 %v5293_v24, %v548_v17 }
 0x186   : > { %v1012_v2 = vadd.f32 %v980_v3, %v816_v5  ;;  %v528_v7 = vpop.permute.xlu1 %527  ;;  %1303 = vmatprep.mubr.f32.mxu0 %v4853_v34  ;;  %v787_v3 = vmul.f32 %v5297_v26, %v5468_v21 }
 0x187   : > { %v621_v37 = vmul.f32 %v5293_v24, %v528_v7 }
 0x188   : > { %4684 = vset.pattern.permute.xlu1 %v4852_v4  ;;  %v1051_v32 = vadd.f32 %v5314_v36, %v1012_v2  ;;  %v1988_v4 = vld [vmem:[#allocation5 + $0x388] sm:$0xff]  ;;  %4175 = vmatpush1.bf16.msra.mxu0 %v4174_v11  ;;  %v5529_v31 = vpop.permute.xlu0 %567 }
 0x189   : > { %761 = vperm.xlu1 %4684, %v5352_v54   ;;  %v981_v54 = vmul.f32 %v5304_v28, %v5383_v35  ;;  %4177 = vmatprep.subr.bf16.mxu0 %v4176_v30  ;;  %v4180_v9 = vpack.c.bf16 %v1992_v41, %v1988_v4  ;;  %v4184_v35 = vpack.c.bf16 %v2000_v40, %v1996_v48 }
 0x18a   : > { %v1083_v12 = vmax.f32 %v1051_v32, 0.0 }
 0x18b   : > { %v706_v38 = vpop.permute.xlu1 %705 }
 0x18c   : > { %v785_v1 = vmul.f32 %v5297_v26, %v706_v38  ;;  %1304 = vmatmul.mubr.f32.gmra.mrb[32].mxu0 %v1083_v12  ;;  %v5534_v25 = vpop.permute.xlu0 %572 }
 0x18d   : > { %1309 = vmatprep.mubr.f32.mxu0 %v4853_v34  ;;  %4179 = vmatpush1.bf16.msra.mxu0 %v4178_v47 }
 0x18e   : > { %v817_v23 = vadd.f32 %v785_v1, %v621_v37  ;;  %4181 = vmatprep.subr.bf16.mxu0 %v4180_v9 }
 0x190   : > { %v1013_v27 = vadd.f32 %v981_v54, %v817_v23  ;;  %v533_v29 = vpop.permute.xlu1 %532  ;;  %v918_v30 = vpop.permute.xlu0 %917 }
 0x191   : > { %v622_v52 = vmul.f32 %v5293_v24, %v533_v29  ;;  %4183 = vmatpush1.bf16.msra.mxu0 %v4182_v13  ;;  %v985_v1 = vmul.f32 %v5304_v28, %v918_v30 }
 0x192   : > { %v1052_v15 = vadd.f32 %v5314_v36, %v1013_v27  ;;  %4185 = vmatprep.subr.bf16.mxu0 %v4184_v35  ;;  %v791_v35 = vmul.f32 %v5297_v26, %v5476_v51 }
 0x193   : > { %v818_v59 = vadd.f32 %v786_v53, %v622_v52 }
 0x194   : > { %v1084_v46 = vmax.f32 %v1052_v15, 0.0  ;;  %v922_v9 = vpop.permute.xlu0 %921 }
 0x195   : > { %v906_v57 = vpop.permute.xlu1 %905  ;;  %4187 = vmatpush1.bf16.msra.mxu0 %v4186_v58  ;;  %v986_v48 = vmul.f32 %v5304_v28, %v922_v9 }
 0x196   : > { %v982_v61 = vmul.f32 %v5304_v28, %v906_v57  ;;  %1310 = vmatmul.mubr.f32.gmra.mrb[34].mxu0 %v1084_v46 }
 0x197   : > { %1315 = vmatprep.mubr.f32.mxu0 %v4853_v34 }
 0x198   : > { %v1014_v60 = vadd.f32 %v982_v61, %v818_v59 }
 0x19a   : > { %v538_v14 = vpop.permute.xlu1 %537  ;;  %v1053_v43 = vadd.f32 %v5314_v36, %v1014_v60 }
 0x19b   : > { %v623_v62 = vmul.f32 %v5293_v24, %v538_v14  ;;  %v792_v14 = vmul.f32 %v5297_v26, %v5486_v10  ;;  %v629_v10 = vmul.f32 %v5293_v24, %v5529_v31 }
 0x19c   : > { %v1085_v63 = vmax.f32 %v1053_v43, 0.0 }
 0x19d   : > { %v819_v49 = vadd.f32 %v787_v3, %v623_v62 }
 0x19e   : > { %1316 = vmatmul.mubr.f32.gmra.mrb[36].mxu0 %v1085_v63 }
 0x19f   : > { %v910_v5 = vpop.permute.xlu1 %909  ;;  %1321 = vmatprep.mubr.f32.mxu0 %v4853_v34 }
 0x1a0   : > { %v983_v6 = vmul.f32 %v5304_v28, %v910_v5 }
 0x1a2   : > { %v1015_v42 = vadd.f32 %v983_v6, %v819_v49 }
 0x1a4   : > { %v718_v2 = vpop.permute.xlu1 %717  ;;  %v1054_v7 = vadd.f32 %v5314_v36, %v1015_v42 }
 0x1a5   : > { %v788_v0 = vmul.f32 %v5297_v26, %v718_v2 }
 0x1a6   : > { %v1086_v32 = vmax.f32 %v1054_v7, 0.0 }
 0x1a7   : > { %v820_v50 = vadd.f32 %v788_v0, %v624_v16 }
 0x1a8   : > { %1322 = vmatmul.mubr.f32.gmra.mrb[38].mxu0 %v1086_v32  ;;  %v938_v32 = vpop.permute.xlu0 %937 }
 0x1a9   : > { %v914_v21 = vpop.permute.xlu1 %913  ;;  %1327 = vmatprep.mubr.f32.mxu0 %v4853_v34  ;;  %v990_v30 = vmul.f32 %v5304_v28, %v938_v32 }
 0x1aa   : > { %v984_v11 = vmul.f32 %v5304_v28, %v914_v21 }
 0x1ac   : > { %v1016_v12 = vadd.f32 %v984_v11, %v820_v50  ;;  %v630_v11 = vmul.f32 %v5293_v24, %v5534_v25  ;;  %v942_v25 = vpop.permute.xlu0 %941 }
 0x1ae   : > { %v722_v33 = vpop.permute.xlu1 %721  ;;  %v1055_v38 = vadd.f32 %v5314_v36, %v1016_v12 }
 0x1af   : > { %v789_v37 = vmul.f32 %v5297_v26, %v722_v33 }
 0x1b0   : > { %v1087_v4 = vmax.f32 %v1055_v38, 0.0 }
 0x1b1   : > { %v821_v41 = vadd.f32 %v789_v37, %v625_v8  ;;  %v5579_v37 = vld [vmem:[%s7004_s2] ss:$0 sm:$0xff] }
 0x1b2   : > { %1328 = vmatmul.mubr.f32.gmra.mrb[40].mxu0 %v1087_v4 }
 0x1b3   : > { %v1017_v47 = vadd.f32 %v985_v1, %v821_v41  ;;  %v553_v54 = vpop.permute.xlu1 %552  ;;  %1333 = vmatprep.mubr.f32.mxu0 %v4853_v34 }
 0x1b4   : > { %v626_v27 = vmul.f32 %v5293_v24, %v553_v54 }
 0x1b5   : > { %v1056_v23 = vadd.f32 %v5314_v36, %v1017_v47 }
 0x1b7   : > { %v1088_v44 = vmax.f32 %v1056_v23, 0.0  ;;  %v991_v23 = vmul.f32 %v5304_v28, %v942_v25 }
 0x1b8   : > { %v726_v45 = vpop.permute.xlu1 %725 }
 0x1b9   : > { %v790_v29 = vmul.f32 %v5297_v26, %v726_v45  ;;  %1334 = vmatmul.mubr.f32.gmra.mrb[42].mxu0 %v1088_v44  ;;  %v750_v45 = vpop.permute.xlu0 %749 }
 0x1ba   : > { %1339 = vmatprep.mubr.f32.mxu0 %v4853_v34 }
 0x1bb   : > { %v822_v40 = vadd.f32 %v790_v29, %v626_v27 }
 0x1bd   : > { %v1018_v13 = vadd.f32 %v986_v48, %v822_v40  ;;  %v558_v53 = vpop.permute.xlu1 %557 }
 0x1be   : > { %v627_v52 = vmul.f32 %v5293_v24, %v558_v53 }
 0x1bf   : > { %v1057_v15 = vadd.f32 %v5314_v36, %v1018_v13  ;;  %v796_v13 = vmul.f32 %v5297_v26, %v750_v45 }
 0x1c0   : > { %v823_v46 = vadd.f32 %v791_v35, %v627_v52 }
 0x1c1   : > { %v1089_v55 = vmax.f32 %v1057_v15, 0.0 }
 0x1c2   : > { %v926_v56 = vpop.permute.xlu1 %925 }
 0x1c3   : > { %v987_v39 = vmul.f32 %v5304_v28, %v926_v56  ;;  %1340 = vmatmul.mubr.f32.gmra.mrb[44].mxu0 %v1089_v55 }
 0x1c4   : > { %1345 = vmatprep.mubr.f32.mxu0 %v4853_v34 }
 0x1c5   : > { %v1019_v57 = vadd.f32 %v987_v39, %v823_v46  ;;  %v754_v39 = vpop.permute.xlu0 %753 }
 0x1c7   : > { %v563_v58 = vpop.permute.xlu1 %562  ;;  %v1058_v59 = vadd.f32 %v5314_v36, %v1019_v57 }
 0x1c8   : > { %v628_v61 = vmul.f32 %v5293_v24, %v563_v58 }
 0x1c9   : > { %v1090_v60 = vmax.f32 %v1058_v59, 0.0 }
 0x1ca   : > { %v824_v43 = vadd.f32 %v792_v14, %v628_v61  ;;  %v797_v61 = vmul.f32 %v5297_v26, %v754_v39 }
 0x1cb   : > { %1346 = vmatmul.mubr.f32.gmra.mrb[46].mxu0 %v1090_v60 }
 0x1cc   : > { %v930_v51 = vpop.permute.xlu1 %929  ;;  %1351 = vmatprep.mubr.f32.mxu0 %v4853_v34 }
 0x1cd   : > { %v988_v17 = vmul.f32 %v5304_v28, %v930_v51 }
 0x1cf   : > { %v1020_v62 = vadd.f32 %v988_v17, %v824_v43 }
 0x1d1   : > { %v738_v63 = vpop.permute.xlu1 %737  ;;  %v1059_v3 = vadd.f32 %v5314_v36, %v1020_v62  ;;  %v593_v62 = vpop.permute.xlu0 %592 }
 0x1d2   : > { %v793_v5 = vmul.f32 %v5297_v26, %v738_v63 }
 0x1d3   : > { %v5562_v49 = vpop.f32.mrb[0].mxu0  ;;  %v1091_v6 = vmax.f32 %v1059_v3, 0.0 }
 0x1d4   : > { %v5564_v42 = vpop.f32.mrb[1].mxu0  ;;  %v825_v7 = vadd.f32 %v793_v5, %v629_v10  ;;  %v634_v5 = vmul.f32 %v5293_v24, %v593_v62 }
 0x1d5   : > { %1352 = vmatmul.mubr.f32.gmra.mrb[48].mxu0 %v1091_v6 }
 0x1d6   : > { %v934_v2 = vpop.permute.xlu1 %933  ;;  %1357 = vmatprep.mubr.f32.mxu0 %v4853_v34 }
 0x1d7   : > { %v989_v16 = vmul.f32 %v5304_v28, %v934_v2  ;;  %v598_v2 = vpop.permute.xlu0 %597 }
 0x1d9   : > { %v1021_v0 = vadd.f32 %v989_v16, %v825_v7 }
 0x1db   : > { %v742_v21 = vpop.permute.xlu1 %741  ;;  %v1060_v50 = vadd.f32 %v5314_v36, %v1021_v0 }
 0x1dc   : > { %v794_v12 = vmul.f32 %v5297_v26, %v742_v21  ;;  %v958_v21 = vpop.permute.xlu0 %957 }
 0x1dd   : > { %v1092_v31 = vmax.f32 %v1060_v50, 0.0 }
 0x1de   : > { %v826_v8 = vadd.f32 %v794_v12, %v630_v11  ;;  %v635_v12 = vmul.f32 %v5293_v24, %v598_v2  ;;  %v1548_v2 = vld [vmem:[#allocation2 + $0x20] sm:$0xff] }
 0x1df   : > { %1358 = vmatmul.mubr.f32.gmra.mrb[50].mxu0 %v1092_v31  ;;  %v995_v31 = vmul.f32 %v5304_v28, %v958_v21  ;;  %v1557_v21 = vld [vmem:[#allocation2 + $0x68] sm:$0xff] }
 0x1e0   : > { %v1022_v33 = vadd.f32 %v990_v30, %v826_v8  ;;  %v578_v38 = vpop.permute.xlu1 %577  ;;  %1363 = vmatprep.mubr.f32.mxu0 %v4853_v34 }
 0x1e1   : > { %v631_v41 = vmul.f32 %v5293_v24, %v578_v38  ;;  %v1131_v38 = vld [vmem:[%s7006_s4] sm:$0x3] }
 0x1e2   : > { %v1061_v36 = vadd.f32 %v5579_v37, %v1022_v33 }
 0x1e4   : > { %v1093_v1 = vmax.f32 %v1061_v36, 0.0 }
 0x1e5   : > { %v746_v4 = vpop.permute.xlu1 %745 }
 0x1e6   : > { %v795_v47 = vmul.f32 %v5297_v26, %v746_v4  ;;  %1364 = vmatmul.mubr.f32.gmra.mrb[52].mxu0 %v1093_v1  ;;  %v5618_v4 = vrot.slane %v1131_v38, %v5282_v20 }
 0x1e7   : > { %v5584_v54 = vpop.f32.mrb[2].mxu0  ;;  %1369 = vmatprep.mubr.f32.mxu0 %v4853_v34 }
 0x1e8   : > { %v827_v9 = vadd.f32 %v795_v47, %v631_v41  ;;  %v5588_v44 = vpop.f32.mrb[3].mxu0 }
 0x1ea   : > { %v1023_v27 = vadd.f32 %v991_v23, %v827_v9  ;;  %v583_v29 = vpop.permute.xlu1 %582  ;;  %v5626_v23 = vadd.f32 %v5564_v42, %v5618_v4 }
 0x1eb   : > { %v5590_v48 = vpop.f32.mrb[4].mxu0  ;;  %v632_v40 = vmul.f32 %v5293_v24, %v583_v29 }
 0x1ec   : > { %v5594_v53 = vpop.f32.mrb[5].mxu0  ;;  %v1062_v52 = vadd.f32 %v5579_v37, %v1023_v27 }
 0x1ed   : > { %v828_v55 = vadd.f32 %v796_v13, %v632_v40  ;;  %v5645_v40 = vadd.f32 %v5594_v53, %v5618_v4 }
 0x1ee   : > { %v1094_v15 = vmax.f32 %v1062_v52, 0.0 }
 0x1ef   : > { %v946_v35 = vpop.permute.xlu1 %945  ;;  %7117 = vst [vmem:[#allocation24_spill] sm:$0xff] %v5645_v40 }
 0x1f0   : > { %v992_v56 = vmul.f32 %v5304_v28, %v946_v35  ;;  %1370 = vmatmul.mubr.f32.gmra.mrb[54].mxu0 %v1094_v15 }
 0x1f1   : > { %1375 = vmatprep.mubr.f32.mxu0 %v4853_v34 }
 0x1f2   : > { %v1024_v46 = vadd.f32 %v992_v56, %v828_v55 }
 0x1f4   : > { %v588_v57 = vpop.permute.xlu1 %587  ;;  %v1063_v58 = vadd.f32 %v5579_v37, %v1024_v46 }
 0x1f5   : > { %v633_v59 = vmul.f32 %v5293_v24, %v588_v57 }
 0x1f6   : > { %v1095_v60 = vmax.f32 %v1063_v58, 0.0 }
 0x1f7   : > { %v829_v51 = vadd.f32 %v797_v61, %v633_v59 }
 0x1f8   : > { %1376 = vmatmul.mubr.f32.gmra.mrb[56].mxu0 %v1095_v60 }
 0x1f9   : > { %v950_v14 = vpop.permute.xlu1 %949  ;;  %1381 = vmatprep.mubr.f32.mxu0 %v4853_v34 }
 0x1fa   : > { %v993_v43 = vmul.f32 %v5304_v28, %v950_v14 }
 0x1fc   : > { %v1025_v17 = vadd.f32 %v993_v43, %v829_v51 }
 0x1fe   : > { %v758_v63 = vpop.permute.xlu1 %757  ;;  %v1064_v3 = vadd.f32 %v5579_v37, %v1025_v17 }
 0x1ff   : > { %v798_v6 = vmul.f32 %v5297_v26, %v758_v63 }
 0x200   : > { %v1096_v10 = vmax.f32 %v1064_v3, 0.0  ;;  %v1545_v3 = vld [vmem:[#allocation2 + $0x8] sm:$0xff] }
 0x201   : > { %v830_v16 = vadd.f32 %v798_v6, %v634_v5  ;;  %v1549_v5 = vld [vmem:[#allocation2 + $0x28] sm:$0xff] }
 0x202   : > { %1382 = vmatmul.mubr.f32.gmra.mrb[58].mxu0 %v1096_v10  ;;  %v3996_v6 = vpack.c.bf16 %v1549_v5, %v1545_v3  ;;  %v1544_v10 = vld [vmem:[#allocation2] sm:$0xff] }
 0x203   : > { %v954_v7 = vpop.permute.xlu1 %953  ;;  %1387 = vmatprep.mubr.f32.mxu0 %v4853_v34  ;;  %v1576_v3 = vld [vmem:[#allocation2 + $0x100] sm:$0xff] }
 0x204   : > { %v994_v0 = vmul.f32 %v5304_v28, %v954_v7  ;;  %v5622_v28 = vrot.slane %v1131_v38, %v5278_v19  ;;  %v3998_v7 = vpack.c.bf16 %v1548_v2, %v1544_v10  ;;  %3997 = vmatprep.subr.bf16.mxu1 %v3996_v6  ;;  %v1580_v5 = vld [vmem:[#allocation2 + $0x120] sm:$0xff]  ;;  %v1585_v2 = vld [vmem:[#allocation2 + $0x148] sm:$0xff] }
 0x205   : > { %v4014_v6 = vpack.c.bf16 %v1580_v5, %v1576_v3 }
 0x206   : > { %v1026_v32 = vadd.f32 %v994_v0, %v830_v16  ;;  %v5641_v42 = vadd.f32 %v5584_v54, %v5622_v28  ;;  %3999 = vmatpush1.bf16.msra.mxu1 %v3998_v7  ;;  %v1589_v7 = vld [vmem:[#allocation2 + $0x168] sm:$0xff] }
 0x208   : > { %v762_v50 = vpop.permute.xlu1 %761  ;;  %v1065_v11 = vadd.f32 %v5579_v37, %v1026_v32  ;;  %7116 = vst [vmem:[#allocation23_spill] sm:$0xff] %v5641_v42  ;;  %v1553_v32 = vld [vmem:[#allocation2 + $0x48] sm:$0xff] }
 0x209   : > { %v799_v30 = vmul.f32 %v5297_v26, %v762_v50  ;;  %v4000_v50 = vpack.c.bf16 %v1557_v21, %v1553_v32  ;;  %v4016_v32 = vpack.c.bf16 %v1589_v7, %v1585_v2  ;;  %v1584_v21 = vld [vmem:[#allocation2 + $0x140] sm:$0xff]  ;;  %v1617_v7 = vld [vmem:[#allocation2 + $0x248] sm:$0xff] }
 0x20a   : > { %v1227_v8 = vpop.f32.mrb[6].mxu0  ;;  %v1097_v33 = vmax.f32 %v1065_v11, 0.0  ;;  %v1552_v11 = vld [vmem:[#allocation2 + $0x40] sm:$0xff] }
 0x20b   : > { %v831_v36 = vadd.f32 %v799_v30, %v635_v12  ;;  %v1229_v1 = vpop.f32.mrb[7].mxu0  ;;  %v5659_v53 = vadd.f32 %v1227_v8, %v5622_v28  ;;  %v1556_v12 = vld [vmem:[#allocation2 + $0x60] sm:$0xff]  ;;  %4001 = vmatprep.subr.bf16.mxu1 %v4000_v50 }
 0x20c   : > { %1388 = vmatmul.mubr.f32.gmra.mrb[60].mxu0 %v1097_v33  ;;  %v5654_v52 = vadd.f32 %v1229_v1, %v5618_v4  ;;  %v1565_v1 = vld [vmem:[#allocation2 + $0xa8] sm:$0xff]  ;;  %v1588_v50 = vld [vmem:[#allocation2 + $0x160] sm:$0xff] }
 0x20d   : > { %v1027_v25 = vadd.f32 %v995_v31, %v831_v36  ;;  %1393 = vmatprep.mubr.f32.mxu0 %v4853_v34  ;;  %v5631_v34 = vadd.f32 %v5562_v49, %v5622_v28  ;;  %7119 = vst [vmem:[#allocation26_spill] sm:$0xff] %v5659_v53  ;;  %v4002_v31 = vpack.c.bf16 %v1556_v12, %v1552_v11  ;;  %v1561_v36 = vld [vmem:[#allocation2 + $0x88] sm:$0xff] }
 0x20e   : > { %v1233_v24 = vpop.f32.mrb[8].mxu0  ;;  %v4018_v11 = vpack.c.bf16 %v1588_v50, %v1584_v21  ;;  %v1616_v21 = vld [vmem:[#allocation2 + $0x240] sm:$0xff] }
 0x20f   : > { %v1235_v41 = vpop.f32.mrb[9].mxu0  ;;  %v1066_v26 = vadd.f32 %v5579_v37, %v1027_v25  ;;  %v5635_v37 = vadd.f32 %v5588_v44, %v5618_v4  ;;  %v5651_v44 = vadd.f32 %v5590_v48, %v5622_v28  ;;  %v5667_v48 = vadd.f32 %v1233_v24, %v5622_v28  ;;  %4003 = vmatpush1.bf16.msra.mxu1 %v4002_v31  ;;  %v1560_v25 = vld [vmem:[#allocation2 + $0x80] sm:$0xff]  ;;  %v1597_v31 = vld [vmem:[#allocation2 + $0x1a8] sm:$0xff] }
 0x210   : > { %v5662_v35 = vadd.f32 %v1235_v41, %v5618_v4  ;;  %v4004_v24 = vpack.c.bf16 %v1565_v1, %v1561_v36  ;;  %v1564_v41 = vld [vmem:[#allocation2 + $0xa0] sm:$0xff] }
 0x211   : > { %v1098_v47 = vmax.f32 %v1066_v26, 0.0  ;;  %7115 = vst [vmem:[#allocation22_spill] sm:$0xff] %v5635_v37  ;;  %7118 = vst [vmem:[#allocation25_spill] sm:$0xff] %v5651_v44  ;;  %v4006_v26 = vpack.c.bf16 %v1564_v41, %v1560_v25  ;;  %v1592_v1 = vld [vmem:[#allocation2 + $0x180] sm:$0xff]  ;;  %v1409_v22 = vmax.f32 %v5626_v23, %v5635_v37 }
 0x212   : > { %v1239_v9 = vpop.f32.mrb[10].mxu0  ;;  %7120 = vst [vmem:[#allocation27_spill] sm:$0xff] %v5667_v48  ;;  %4005 = vmatprep.subr.bf16.mxu1 %v4004_v24  ;;  %v1596_v25 = vld [vmem:[#allocation2 + $0x1a0] sm:$0xff] }
 0x213   : > { %v1241_v45 = vpop.f32.mrb[11].mxu0  ;;  %1394 = vmatmul.mubr.f32.gmra.mrb[62].mxu0 %v1098_v47  ;;  %v5675_v39 = vadd.f32 %v1239_v9, %v5622_v28  ;;  %4007 = vmatpush1.bf16.msra.mxu1 %v4006_v26  ;;  %v4022_v41 = vpack.c.bf16 %v1596_v25, %v1592_v1  ;;  %v1624_v25 = vld [vmem:[#allocation2 + $0x280] sm:$0xff] }
 0x214   : > { %2067 = vmatprep.mubr.f32.mxu0 %v5626_v23  ;;  %v5670_v46 = vadd.f32 %v1241_v45, %v5618_v4  ;;  %v1569_v45 = vld [vmem:[#allocation2 + $0xc8] sm:$0xff] }
 0x215   : > { %7122 = vst [vmem:[#allocation29_spill] sm:$0xff] %v5675_v39 }
 0x216   : > { %v1245_v27 = vpop.f32.mrb[12].mxu0  ;;  %7121 = vst [vmem:[#allocation28_spill] sm:$0xff] %v5670_v46 }
 0x217   : > { %v1247_v29 = vpop.f32.mrb[13].mxu0  ;;  %2068 = vmatmul.mubr.f32.vlgmr.msra.gmra.mrb[64].mxu0 %v5631_v34  ;;  %v5683_v61 = vadd.f32 %v1245_v27, %v5622_v28  ;;  %v1573_v27 = vld [vmem:[#allocation2 + $0xe8] sm:$0xff] }
 0x218   : > { %2073 = vmatprep.mubr.f32.mxu0 %v5635_v37  ;;  %v5678_v57 = vadd.f32 %v1247_v29, %v5618_v4  ;;  %v4008_v29 = vpack.c.bf16 %v1573_v27, %v1569_v45  ;;  %v1601_v45 = vld [vmem:[#allocation2 + $0x1c8] sm:$0xff]  ;;  %v1418_v37 = vmax.f32 %v5667_v48, %v5675_v39 }
 0x219   : > { %7124 = vst [vmem:[#allocation31_spill] sm:$0xff] %v5683_v61  ;;  %v1605_v27 = vld [vmem:[#allocation2 + $0x1e8] sm:$0xff] }
 0x21a   : > { %v1251_v49 = vpop.f32.mrb[14].mxu0  ;;  %7123 = vst [vmem:[#allocation30_spill] sm:$0xff] %v5678_v57  ;;  %4009 = vmatprep.subr.bf16.mxu1 %v4008_v29  ;;  %v4024_v29 = vpack.c.bf16 %v1605_v27, %v1601_v45 }
 0x21b   : > { %v1253_v13 = vpop.f32.mrb[15].mxu0  ;;  %2074 = vmatmul.mubr.f32.gmra.mrb[66].mxu0 %v5641_v42  ;;  %v5691_v14 = vadd.f32 %v1251_v49, %v5622_v28  ;;  %v1568_v49 = vld [vmem:[#allocation2 + $0xc0] sm:$0xff] }
 0x21c   : > { %2079 = vmatprep.mubr.f32.mxu0 %v5645_v40  ;;  %v5686_v60 = vadd.f32 %v1253_v13, %v5618_v4  ;;  %v1572_v13 = vld [vmem:[#allocation2 + $0xe0] sm:$0xff] }
 0x21d   : > { %7125 = vst [vmem:[#allocation32_spill] sm:$0xff] %v5691_v14 }
 0x21e   : > { %v1257_v15 = vpop.f32.mrb[16].mxu0 }
 0x21f   : > { %v1259_v54 = vpop.f32.mrb[17].mxu0  ;;  %2080 = vmatmul.mubr.f32.gmra.mrb[68].mxu0 %v5651_v44  ;;  %v5699_v62 = vadd.f32 %v1257_v15, %v5622_v28 }
 0x220   : > { %2085 = vmatprep.mubr.f32.mxu0 %v5654_v52  ;;  %v5694_v51 = vadd.f32 %v1259_v54, %v5618_v4  ;;  %v4010_v54 = vpack.c.bf16 %v1572_v13, %v1568_v49  ;;  %v1600_v49 = vld [vmem:[#allocation2 + $0x1c0] sm:$0xff] }
 0x221   : > { %7126 = vst [vmem:[#allocation33_spill] sm:$0xff] %v5699_v62  ;;  %v1604_v13 = vld [vmem:[#allocation2 + $0x1e0] sm:$0xff] }
 0x222   : > { %v1263_v55 = vpop.f32.mrb[18].mxu0  ;;  %4011 = vmatpush1.bf16.msra.mxu1 %v4010_v54  ;;  %v1609_v54 = vld [vmem:[#allocation2 + $0x208] sm:$0xff] }
 0x223   : > { %v1265_v56 = vpop.f32.mrb[19].mxu0  ;;  %2086 = vmatmul.mubr.f32.gmra.mrb[70].mxu0 %v5659_v53  ;;  %v5707_v16 = vadd.f32 %v1263_v55, %v5622_v28 }
 0x224   : > { %2091 = vmatprep.mubr.f32.mxu0 %v5662_v35  ;;  %v5702_v63 = vadd.f32 %v1265_v56, %v5618_v4 }
 0x225   : > { %7127 = vst [vmem:[#allocation34_spill] sm:$0xff] %v5707_v16 }
 0x227   : > { %2092 = vmatmul.mubr.f32.gmra.mrb[72].mxu0 %v5667_v48 }
 0x228   : > { %2097 = vmatprep.mubr.f32.mxu0 %v5670_v46 }
 0x22b   : > { %v1269_v58 = vpop.f32.mrb[20].mxu0  ;;  %2098 = vmatmul.mubr.f32.gmra.mrb[74].mxu0 %v5675_v39  ;;  %v1436_v39 = vmax.f32 %v5699_v62, %v5707_v16 }
 0x22c   : > { %v1271_v59 = vpop.f32.mrb[21].mxu0  ;;  %2103 = vmatprep.mubr.f32.mxu0 %v5678_v57  ;;  %v5715_v8 = vadd.f32 %v1269_v58, %v5622_v28 }
 0x22d   : > { %v5710_v0 = vadd.f32 %v1271_v59, %v5618_v4  ;;  %v1577_v59 = vld [vmem:[#allocation2 + $0x108] sm:$0xff] }
 0x22e   : > { %7128 = vst [vmem:[#allocation35_spill] sm:$0xff] %v5715_v8 }
 0x22f   : > { %2104 = vmatmul.mubr.f32.gmra.mrb[76].mxu0 %v5683_v61 }
 0x230   : > { %2109 = vmatprep.mubr.f32.mxu0 %v5686_v60 }
 0x232   : > { %v1275_v43 = vpop.f32.mrb[22].mxu0 }
 0x233   : > { %v1277_v17 = vpop.f32.mrb[23].mxu0  ;;  %2110 = vmatmul.mubr.f32.gmra.mrb[78].mxu0 %v5691_v14  ;;  %v5723_v47 = vadd.f32 %v1275_v43, %v5622_v28  ;;  %v1581_v43 = vld [vmem:[#allocation2 + $0x128] sm:$0xff] }
 0x234   : > { %2115 = vmatprep.mubr.f32.mxu0 %v5694_v51  ;;  %v5718_v38 = vadd.f32 %v1277_v17, %v5618_v4  ;;  %v4012_v17 = vpack.c.bf16 %v1581_v43, %v1577_v59  ;;  %v1608_v43 = vld [vmem:[#allocation2 + $0x200] sm:$0xff] }
 0x235   : > { %7129 = vst [vmem:[#allocation36_spill] sm:$0xff] %v5723_v47 }
 0x236   : > { %4013 = vmatprep.subr.bf16.mxu1 %v4012_v17  ;;  %v1612_v17 = vld [vmem:[#allocation2 + $0x220] sm:$0xff] }
 0x237   : > { %2116 = vmatmul.mubr.f32.gmra.mrb[80].mxu0 %v5699_v62  ;;  %4015 = vmatpush1.bf16.msra.mxu1 %v4014_v6  ;;  %v4030_v5 = vpack.c.bf16 %v1612_v17, %v1608_v43  ;;  %v1641_v17 = vld [vmem:[#allocation2 + $0x308] sm:$0xff] }
 0x238   : > { %2121 = vmatprep.mubr.f32.mxu0 %v5702_v63  ;;  %4017 = vmatprep.subr.bf16.mxu1 %v4016_v32  ;;  %v1621_v32 = vld [vmem:[#allocation2 + $0x268] sm:$0xff] }
 0x23b   : > { %2122 = vmatmul.mubr.f32.gmra.mrb[82].mxu0 %v5707_v16  ;;  %4019 = vmatpush1.bf16.msra.mxu1 %v4018_v11  ;;  %v4032_v11 = vpack.c.bf16 %v1621_v32, %v1617_v7  ;;  %v1644_v7 = vld [vmem:[#allocation2 + $0x320] sm:$0xff] }
 0x23c   : > { %v1281_v30 = vpop.f32.mrb[24].mxu0  ;;  %2127 = vmatprep.mubr.f32.mxu0 %v5710_v0 }
 0x23d   : > { %v1283_v33 = vpop.f32.mrb[25].mxu0  ;;  %v5731_v55 = vadd.f32 %v1281_v30, %v5622_v28  ;;  %v1593_v30 = vld [vmem:[#allocation2 + $0x188] sm:$0xff] }
 0x23e   : > { %v5726_v9 = vadd.f32 %v1283_v33, %v5618_v4  ;;  %v4020_v36 = vpack.c.bf16 %v1597_v31, %v1593_v30  ;;  %v1625_v31 = vld [vmem:[#allocation2 + $0x288] sm:$0xff] }
 0x23f   : > { %2128 = vmatmul.mubr.f32.gmra.mrb[84].mxu0 %v5715_v8 }
 0x240   : > { %2133 = vmatprep.mubr.f32.mxu0 %v5718_v38  ;;  %7130 = vst [vmem:[#allocation37_spill] sm:$0xff] %v5726_v9  ;;  %4021 = vmatprep.subr.bf16.mxu1 %v4020_v36 }
 0x241   : > { %4023 = vmatpush1.bf16.msra.mxu1 %v4022_v41  ;;  %v1628_v41 = vld [vmem:[#allocation2 + $0x2a0] sm:$0xff] }
 0x242   : > { %4025 = vmatprep.subr.bf16.mxu1 %v4024_v29  ;;  %v4038_v27 = vpack.c.bf16 %v1628_v41, %v1624_v25 }
 0x243   : > { %2134 = vmatmul.mubr.f32.gmra.mrb[86].mxu0 %v5723_v47 }
 0x244   : > { %v1287_v15 = vpop.f32.mrb[26].mxu0  ;;  %2139 = vmatprep.mubr.f32.mxu0 %v5726_v9 }
 0x245   : > { %v1289_v56 = vpop.f32.mrb[27].mxu0  ;;  %v5739_v10 = vadd.f32 %v1287_v15, %v5622_v28  ;;  %v4026_v15 = vpack.c.bf16 %v1604_v13, %v1600_v49  ;;  %v1633_v13 = vld [vmem:[#allocation2 + $0x2c8] sm:$0xff] }
 0x246   : > { %v5734_v58 = vadd.f32 %v1289_v56, %v5618_v4  ;;  %v1613_v56 = vld [vmem:[#allocation2 + $0x228] sm:$0xff] }
 0x247   : > { %2140 = vmatmul.mubr.f32.gmra.mrb[88].mxu0 %v5731_v55  ;;  %4027 = vmatpush1.bf16.msra.mxu1 %v4026_v15  ;;  %v4028_v59 = vpack.c.bf16 %v1613_v56, %v1609_v54  ;;  %v1637_v15 = vld [vmem:[#allocation2 + $0x2e8] sm:$0xff]  ;;  %v1632_v56 = vld [vmem:[#allocation2 + $0x2c0] sm:$0xff] }
 0x248   : > { %7131 = vst [vmem:[#allocation38_spill] sm:$0xff] %v5734_v58  ;;  %2145 = vmatprep.mubr.f32.mxu0 %v5734_v58  ;;  %v4040_v54 = vpack.c.bf16 %v1637_v15, %v1633_v13  ;;  %v1656_v15 = vld [vmem:[#allocation2 + $0x380] sm:$0xff] }
 0x249   : > { %4029 = vmatprep.subr.bf16.mxu1 %v4028_v59  ;;  %v1636_v59 = vld [vmem:[#allocation2 + $0x2e0] sm:$0xff] }
 0x24a   : > { %v4042_v43 = vpack.c.bf16 %v1636_v59, %v1632_v56 }
 0x24b   : > { %2146 = vmatmul.mubr.f32.gmra.mrb[90].mxu0 %v5739_v10  ;;  %4031 = vmatpush1.bf16.msra.mxu1 %v4030_v5 }
 0x24c   : > { %4033 = vmatprep.subr.bf16.mxu1 %v4032_v11 }
 0x24e   : > { %v1293_v12 = vpop.f32.mrb[28].mxu0 }
 0x24f   : > { %v1295_v33 = vpop.f32.mrb[29].mxu0  ;;  %v5746_v26 = vadd.f32 %v1293_v12, %v5622_v28  ;;  %v1620_v12 = vld [vmem:[#allocation2 + $0x260] sm:$0xff] }
 0x250   : > { %v5743_v24 = vadd.f32 %v1295_v33, %v5618_v4  ;;  %v4034_v30 = vpack.c.bf16 %v1620_v12, %v1616_v21  ;;  %v1629_v33 = vld [vmem:[#allocation2 + $0x2a8] sm:$0xff] }
 0x251   : > { %v4036_v1 = vpack.c.bf16 %v1629_v33, %v1625_v31  ;;  %v1649_v12 = vld [vmem:[#allocation2 + $0x348] sm:$0xff] }
 0x252   : > { %2151 = vmatprep.mubr.f32.mxu0 %v5743_v24  ;;  %4035 = vmatpush1.bf16.msra.mxu1 %v4034_v30  ;;  %v1653_v30 = vld [vmem:[#allocation2 + $0x368] sm:$0xff] }
 0x253   : > { %2152 = vmatmul.mubr.f32.gmra.mrb[92].mxu0 %v5746_v26  ;;  %4037 = vmatprep.subr.bf16.mxu1 %v4036_v1  ;;  %v4048_v33 = vpack.c.bf16 %v1653_v30, %v1649_v12  ;;  %v1652_v1 = vld [vmem:[#allocation2 + $0x360] sm:$0xff]  ;;  %v1547_v12 = vld [vmem:[#allocation2 + $0x18] sm:$0xff] }
 0x254   : > { %v1551_v30 = vld [vmem:[#allocation2 + $0x38] sm:$0xff] }
 0x256   : > { %4039 = vmatpush1.bf16.msra.mxu1 %v4038_v27  ;;  %v1661_v27 = vld [vmem:[#allocation2 + $0x3a8] sm:$0xff] }
 0x257   : > { %4041 = vmatprep.subr.bf16.mxu1 %v4040_v54  ;;  %v1660_v54 = vld [vmem:[#allocation2 + $0x3a0] sm:$0xff] }
 0x258   : > { %v1299_v3 = vpop.f32.mrb[30].mxu0  ;;  %v4054_v56 = vpack.c.bf16 %v1660_v54, %v1656_v15 }
 0x259   : > { %v1301_v6 = vpop.f32.mrb[31].mxu0  ;;  %v5754_v50 = vadd.f32 %v1299_v3, %v5622_v28  ;;  %v1645_v3 = vld [vmem:[#allocation2 + $0x328] sm:$0xff] }
 0x25a   : > { %v5751_v2 = vadd.f32 %v1301_v6, %v5618_v4  ;;  %4043 = vmatpush1.bf16.msra.mxu1 %v4042_v43  ;;  %v4044_v5 = vpack.c.bf16 %v1645_v3, %v1641_v17  ;;  %v1640_v6 = vld [vmem:[#allocation2 + $0x300] sm:$0xff]  ;;  %v1665_v17 = vld [vmem:[#allocation2 + $0x3c8] sm:$0xff] }
 0x25b   : > { %v4046_v32 = vpack.c.bf16 %v1644_v7, %v1640_v6  ;;  %v1669_v3 = vld [vmem:[#allocation2 + $0x3e8] sm:$0xff]  ;;  %v1664_v7 = vld [vmem:[#allocation2 + $0x3c0] sm:$0xff] }
 0x25c   : > { %2157 = vmatprep.mubr.f32.mxu0 %v5751_v2  ;;  %4045 = vmatprep.subr.bf16.mxu1 %v4044_v5  ;;  %v4056_v6 = vpack.c.bf16 %v1669_v3, %v1665_v17 }
 0x25d   : > { %2158 = vmatmul.mubr.f32.gmra.mrb[94].mxu0 %v5754_v50 }
 0x25e   : > { %4047 = vmatpush1.bf16.msra.mxu1 %v4046_v32  ;;  %v1668_v32 = vld [vmem:[#allocation2 + $0x3e0] sm:$0xff] }
 0x25f   : > { %v1305_v36 = vpop.f32.mrb[32].mxu0  ;;  %4049 = vmatprep.subr.bf16.mxu1 %v4048_v33  ;;  %v4060_v33 = vpack.c.bf16 %v1551_v30, %v1547_v12 }
 0x260   : > { %v1307_v45 = vpop.f32.mrb[33].mxu0  ;;  %v5762_v49 = vadd.f32 %v1305_v36, %v5622_v28  ;;  %v1648_v36 = vld [vmem:[#allocation2 + $0x340] sm:$0xff] }
 0x261   : > { %v5759_v29 = vadd.f32 %v1307_v45, %v5618_v4  ;;  %v4050_v41 = vpack.c.bf16 %v1652_v1, %v1648_v36  ;;  %v1657_v45 = vld [vmem:[#allocation2 + $0x388] sm:$0xff] }
 0x262   : > { %v4052_v13 = vpack.c.bf16 %v1661_v27, %v1657_v45 }
 0x263   : > { %2163 = vmatprep.mubr.f32.mxu0 %v5759_v29  ;;  %4051 = vmatpush1.bf16.msra.mxu1 %v4050_v41 }
 0x264   : > { %2164 = vmatmul.mubr.f32.gmra.mrb[96].mxu0 %v5762_v49  ;;  %4053 = vmatprep.subr.bf16.mxu1 %v4052_v13 }
 0x267   : > { %4055 = vmatpush1.bf16.msra.mxu1 %v4054_v56 }
 0x268   : > { %4057 = vmatprep.subr.bf16.mxu1 %v4056_v6 }
 0x269   : > { %v1311_v21 = vpop.f32.mrb[34].mxu0 }
 0x26a   : > { %v1313_v11 = vpop.f32.mrb[35].mxu0  ;;  %v5770_v25 = vadd.f32 %v1311_v21, %v5622_v28 }
 0x26b   : > { %v5767_v31 = vadd.f32 %v1313_v11, %v5618_v4  ;;  %v4058_v11 = vpack.c.bf16 %v1668_v32, %v1664_v7 }
 0x26c   : > { %7133 = vst [vmem:[#allocation40_spill] sm:$0xff] %v5770_v25 }
 0x26d   : > { %7132 = vst [vmem:[#allocation39_spill] sm:$0xff] %v5767_v31  ;;  %2169 = vmatprep.mubr.f32.mxu0 %v5767_v31  ;;  %4059 = vmatpush1.bf16.msra.mxu1 %v4058_v11 }
 0x26e   : > { %2170 = vmatmul.mubr.f32.gmra.mrb[98].mxu0 %v5770_v25  ;;  %4061 = vmatprep.subr.bf16.mxu1 %v4060_v33 }
 0x271   : > { %v1317_v59 = vpop.f32.mrb[36].mxu0 }
 0x272   : > { %v1319_v43 = vpop.f32.mrb[37].mxu0  ;;  %v5778_v21 = vadd.f32 %v1317_v59, %v5622_v28 }
 0x273   : > { %v5775_v5 = vadd.f32 %v1319_v43, %v5618_v4 }
 0x274   : > { %7135 = vst [vmem:[#allocation42_spill] sm:$0xff] %v5778_v21 }
 0x275   : > { %7134 = vst [vmem:[#allocation41_spill] sm:$0xff] %v5775_v5  ;;  %2175 = vmatprep.mubr.f32.mxu0 %v5775_v5 }
 0x276   : > { %2176 = vmatmul.mubr.f32.gmra.mrb[100].mxu0 %v5778_v21 }
 0x27b   : > { %v1323_v36 = vpop.f32.mrb[38].mxu0 }
 0x27c   : > { %v1325_v1 = vpop.f32.mrb[39].mxu0  ;;  %v5786_v45 = vadd.f32 %v1323_v36, %v5622_v28 }
 0x27d   : > { %v5783_v41 = vadd.f32 %v1325_v1, %v5618_v4 }
 0x27e   : > { %7137 = vst [vmem:[#allocation44_spill] sm:$0xff] %v5786_v45 }
 0x27f   : > { %7136 = vst [vmem:[#allocation43_spill] sm:$0xff] %v5783_v41  ;;  %2181 = vmatprep.mubr.f32.mxu0 %v5783_v41 }
 0x280   : > { %2182 = vmatmul.mubr.f32.gmra.mrb[102].mxu0 %v5786_v45 }
 0x285   : > { %v1329_v27 = vpop.f32.mrb[40].mxu0 }
 0x286   : > { %v1331_v13 = vpop.f32.mrb[41].mxu0  ;;  %v5794_v54 = vadd.f32 %v1329_v27, %v5622_v28 }
 0x287   : > { %v5791_v15 = vadd.f32 %v1331_v13, %v5618_v4 }
 0x288   : > { %7139 = vst [vmem:[#allocation46_spill] sm:$0xff] %v5794_v54 }
 0x289   : > { %7138 = vst [vmem:[#allocation45_spill] sm:$0xff] %v5791_v15  ;;  %2187 = vmatprep.mubr.f32.mxu0 %v5791_v15 }
 0x28a   : > { %2188 = vmatmul.mubr.f32.gmra.mrb[104].mxu0 %v5794_v54 }
 0x28c   : > { %v1335_v56 = vpop.f32.mrb[42].mxu0 }
 0x28d   : > { %v1337_v59 = vpop.f32.mrb[43].mxu0  ;;  %v5802_v17 = vadd.f32 %v1335_v56, %v5622_v28 }
 0x28e   : > { %v5799_v43 = vadd.f32 %v1337_v59, %v5618_v4 }
 0x28f   : > { %7141 = vst [vmem:[#allocation48_spill] sm:$0xff] %v5802_v17 }
 0x290   : > { %7140 = vst [vmem:[#allocation47_spill] sm:$0xff] %v5799_v43  ;;  %2193 = vmatprep.mubr.f32.mxu0 %v5799_v43 }
 0x291   : > { %2194 = vmatmul.mubr.f32.gmra.mrb[106].mxu0 %v5802_v17 }
 0x296   : > { %v1341_v3 = vpop.f32.mrb[44].mxu0 }
 0x297   : > { %v1343_v6 = vpop.f32.mrb[45].mxu0  ;;  %v5810_v32 = vadd.f32 %v1341_v3, %v5622_v28 }
 0x298   : > { %v5807_v7 = vadd.f32 %v1343_v6, %v5618_v4 }
 0x299   : > { %7143 = vst [vmem:[#allocation50_spill] sm:$0xff] %v5810_v32 }
 0x29a   : > { %7142 = vst [vmem:[#allocation49_spill] sm:$0xff] %v5807_v7  ;;  %2199 = vmatprep.mubr.f32.mxu0 %v5807_v7 }
 0x29b   : > { %2200 = vmatmul.mubr.f32.gmra.mrb[108].mxu0 %v5810_v32 }
 0x29e   : > { %v1347_v11 = vpop.f32.mrb[46].mxu0 }
 0x29f   : > { %v1349_v12 = vpop.f32.mrb[47].mxu0  ;;  %v5818_v33 = vadd.f32 %v1347_v11, %v5622_v28 }
 0x2a0   : > { %v5815_v30 = vadd.f32 %v1349_v12, %v5618_v4 }
 0x2a1   : > { %7145 = vst [vmem:[#allocation52_spill] sm:$0xff] %v5818_v33 }
 0x2a2   : > { %7144 = vst [vmem:[#allocation51_spill] sm:$0xff] %v5815_v30  ;;  %2205 = vmatprep.mubr.f32.mxu0 %v5815_v30 }
 0x2a3   : > { %2206 = vmatmul.mubr.f32.gmra.mrb[110].mxu0 %v5818_v33 }
 0x2a8   : > { %v1353_v36 = vpop.f32.mrb[48].mxu0 }
 0x2a9   : > { %v1355_v1 = vpop.f32.mrb[49].mxu0  ;;  %v5826_v13 = vadd.f32 %v1353_v36, %v5622_v28 }
 0x2aa   : > { %v5823_v27 = vadd.f32 %v1355_v1, %v5618_v4 }
 0x2ab   : > { %7147 = vst [vmem:[#allocation54_spill] sm:$0xff] %v5826_v13 }
 0x2ac   : > { %7146 = vst [vmem:[#allocation53_spill] sm:$0xff] %v5823_v27  ;;  %2211 = vmatprep.mubr.f32.mxu0 %v5823_v27 }
 0x2ad   : > { %2212 = vmatmul.mubr.f32.gmra.mrb[112].mxu0 %v5826_v13 }
 0x2b2   : > { %v1359_v56 = vpop.f32.mrb[50].mxu0 }
 0x2b3   : > { %v1361_v59 = vpop.f32.mrb[51].mxu0  ;;  %v5834_v6 = vadd.f32 %v1359_v56, %v5622_v28  ;;  %v1400_v56 = vmax.f32 %v5631_v34, %v5641_v42 }
 0x2b4   : > { %v5831_v3 = vadd.f32 %v1361_v59, %v5618_v4 }
 0x2b5   : > { %7149 = vst [vmem:[#allocation56_spill] sm:$0xff] %v5834_v6  ;;  %v1401_v20 = vmax.f32 %v1400_v56, %v5651_v44  ;;  %v1419_v56 = vmax.f32 %v1418_v37, %v5683_v61  ;;  %v1437_v61 = vmax.f32 %v1436_v39, %v5715_v8 }
 0x2b6   : > { %7148 = vst [vmem:[#allocation55_spill] sm:$0xff] %v5831_v3  ;;  %2217 = vmatprep.mubr.f32.mxu0 %v5831_v3 }
 0x2b7   : > { %2218 = vmatmul.mubr.f32.gmra.mrb[114].mxu0 %v5834_v6  ;;  %v1402_v33 = vmax.f32 %v1401_v20, %v5659_v53  ;;  %v1420_v20 = vmax.f32 %v1419_v56, %v5691_v14  ;;  %v1438_v16 = vmax.f32 %v1437_v61, %v5723_v47  ;;  %v1481_v61 = vmax.f32 %v5759_v29, %v5767_v31 }
 0x2b9   : > { %v1365_v11 = vpop.f32.mrb[52].mxu0  ;;  %v1439_v62 = vrot.slane %v1438_v16, 4 }
 0x2ba   : > { %v1367_v12 = vpop.f32.mrb[53].mxu0  ;;  %v5842_v1 = vadd.f32 %v1365_v11, %v5622_v28  ;;  %v1410_v11 = vmax.f32 %v1409_v22, %v5645_v40  ;;  %v1403_v22 = vrot.slane %v1402_v33, 4 }
 0x2bb   : > { %v5839_v36 = vadd.f32 %v1367_v12, %v5618_v4 }
 0x2bc   : > { %7151 = vst [vmem:[#allocation58_spill] sm:$0xff] %v5842_v1  ;;  %v1411_v42 = vmax.f32 %v1410_v11, %v5654_v52  ;;  %v1404_v37 = vmax.f32 %v1402_v33, %v1403_v22 }
 0x2bd   : > { %7150 = vst [vmem:[#allocation57_spill] sm:$0xff] %v5839_v36  ;;  %2223 = vmatprep.mubr.f32.mxu0 %v5839_v36 }
 0x2be   : > { %2224 = vmatmul.mubr.f32.gmra.mrb[116].mxu0 %v5842_v1  ;;  %v1412_v40 = vrot.slane %v1411_v42, 4 }
 0x2c3   : > { %v1371_v59 = vpop.f32.mrb[54].mxu0 }
 0x2c4   : > { %v1373_v18 = vpop.f32.mrb[55].mxu0  ;;  %v5856_v19 = vadd.f32 %v1371_v59, %v5622_v28 }
 0x2c5   : > { %v5852_v12 = vadd.f32 %v1373_v18, %v5618_v4  ;;  %v1427_v18 = vmax.f32 %v5662_v35, %v5670_v46 }
 0x2c6   : > { %7153 = vst [vmem:[#allocation60_spill] sm:$0xff] %v5856_v19 }
 0x2c7   : > { %7152 = vst [vmem:[#allocation59_spill] sm:$0xff] %v5852_v12  ;;  %2229 = vmatprep.mubr.f32.mxu0 %v5852_v12  ;;  %v1428_v59 = vmax.f32 %v1427_v18, %v5678_v57  ;;  %v1413_v18 = vmax.f32 %v1411_v42, %v1412_v40  ;;  %v1421_v57 = vrot.slane %v1420_v20, 4  ;;  %v1454_v42 = vmax.f32 %v5731_v55, %v5739_v10 }
 0x2c8   : > { %2230 = vmatmul.mubr.f32.gmra.mrb[118].mxu0 %v5856_v19 }
 0x2c9   : > { %v1429_v11 = vmax.f32 %v1428_v59, %v5686_v60  ;;  %v1445_v59 = vmax.f32 %v5694_v51, %v5702_v63  ;;  %v1414_v22 = vrot.slane %v1413_v18, 2  ;;  %v1422_v39 = vmax.f32 %v1420_v20, %v1421_v57 }
 0x2ca   : > { %v1472_v57 = vmax.f32 %v5762_v49, %v5770_v25  ;;  %v1499_v20 = vmax.f32 %v5791_v15, %v5799_v43  ;;  %v1508_v25 = vmax.f32 %v5826_v13, %v5834_v6 }
 0x2cb   : > { %v1377_v44 = vpop.f32.mrb[56].mxu0  ;;  %v1430_v56 = vrot.slane %v1429_v11, 4  ;;  %v1446_v33 = vmax.f32 %v1445_v59, %v5710_v0  ;;  %v1415_v13 = vmax.f32 %v1413_v18, %v1414_v22 }
 0x2cc   : > { %v1379_v53 = vpop.f32.mrb[57].mxu0  ;;  %v5876_v46 = vadd.f32 %v1377_v44, %v5622_v28  ;;  %v1405_v44 = vrot.slane %v1404_v37, 2  ;;  %v1509_v6 = vmax.f32 %v1508_v25, %v5842_v1 }
 0x2cd   : > { %v5873_v48 = vadd.f32 %v1379_v53, %v5618_v4  ;;  %v1463_v53 = vmax.f32 %v5726_v9, %v5734_v58  ;;  %v1431_v8 = vmax.f32 %v1429_v11, %v1430_v56  ;;  %v1447_v14 = vmax.f32 %v1446_v33, %v5718_v38 }
 0x2ce   : > { %v1455_v58 = vmax.f32 %v1454_v42, %v5746_v26  ;;  %v1482_v11 = vmax.f32 %v1481_v61, %v5775_v5  ;;  %v1490_v56 = vmax.f32 %v5794_v54, %v5802_v17  ;;  %v1473_v42 = vmax.f32 %v1472_v57, %v5778_v21 }
 0x2cf   : > { %2235 = vmatprep.mubr.f32.mxu0 %v5873_v48  ;;  %v1464_v40 = vmax.f32 %v1463_v53, %v5743_v24  ;;  %v1517_v53 = vmax.f32 %v5823_v27, %v5831_v3  ;;  %v1416_v1 = vrot.slane %v1415_v13, 1 }
 0x2d0   : > { %2236 = vmatmul.mubr.f32.gmra.mrb[120].mxu0 %v5876_v46  ;;  %v1456_v61 = vmax.f32 %v1455_v58, %v5754_v50  ;;  %v1483_v17 = vmax.f32 %v1482_v11, %v5783_v41  ;;  %v1491_v54 = vmax.f32 %v1490_v56, %v5810_v32  ;;  %v1474_v57 = vmax.f32 %v1473_v42, %v5786_v45  ;;  %v7154_v58 = vld [vmem:[#allocation52_spill] sm:$0xff] }
 0x2d1   : > { %v1465_v9 = vmax.f32 %v1464_v40, %v5751_v2  ;;  %v1500_v40 = vmax.f32 %v1499_v20, %v5807_v7  ;;  %v1518_v3 = vmax.f32 %v1517_v53, %v5839_v36  ;;  %v1423_v56 = vrot.slane %v1422_v39, 2 }
 0x2d2   : > { %v1492_v27 = vmax.f32 %v1491_v54, %v7154_v58  ;;  %v1432_v32 = vrot.slane %v1431_v8, 2  ;;  %v1510_v36 = vmax.f32 %v1509_v6, %v5856_v19  ;;  %v1440_v7 = vmax.f32 %v1438_v16, %v1439_v62 }
 0x2d3   : > { %v1501_v20 = vmax.f32 %v1500_v40, %v5815_v30  ;;  %v1519_v11 = vmax.f32 %v1518_v3, %v5852_v12  ;;  %v1466_v53 = vrot.slane %v1465_v9, 4  ;;  %v1457_v15 = vrot.slane %v1456_v61, 4 }
 0x2d4   : > { %v1484_v42 = vrot.slane %v1483_v17, 4  ;;  %v1475_v40 = vrot.slane %v1474_v57, 4  ;;  %v1493_v41 = vrot.slane %v1492_v27, 4  ;;  %v1433_v54 = vmax.f32 %v1431_v8, %v1432_v32 }
 0x2d5   : > { %v1383_v47 = vpop.f32.mrb[58].mxu0  ;;  %v1502_v30 = vrot.slane %v1501_v20, 4  ;;  %v1467_v22 = vmax.f32 %v1465_v9, %v1466_v53  ;;  %v1511_v3 = vrot.slane %v1510_v36, 4  ;;  %v1441_v58 = vrot.slane %v1440_v7, 2 }
 0x2d6   : > { %v1385_v59 = vpop.f32.mrb[59].mxu0  ;;  %v5912_v43 = vadd.f32 %v1383_v47, %v5622_v28  ;;  %v1406_v47 = vmax.f32 %v1404_v37, %v1405_v44  ;;  %v1520_v37 = vrot.slane %v1519_v11, 4  ;;  %v1424_v44 = vmax.f32 %v1422_v39, %v1423_v56 }
 0x2d7   : > { %v5905_v33 = vadd.f32 %v1385_v59, %v5618_v4  ;;  %v1448_v59 = vrot.slane %v1447_v14, 4  ;;  %v1458_v21 = vmax.f32 %v1456_v61, %v1457_v15  ;;  %v1485_v5 = vmax.f32 %v1483_v17, %v1484_v42 }
 0x2d8   : > { %v1407_v25 = vrot.slane %v1406_v47, 1  ;;  %v1503_v6 = vmax.f32 %v1501_v20, %v1502_v30  ;;  %v5932_v31 = vmax.f32 %v1415_v13, %v1416_v1  ;;  %v1494_v8 = vmax.f32 %v1492_v27, %v1493_v41 }
 0x2d9   : > { %2241 = vmatprep.mubr.f32.mxu0 %v5905_v33  ;;  %v1449_v45 = vmax.f32 %v1447_v14, %v1448_v59  ;;  %v1476_v14 = vmax.f32 %v1474_v57, %v1475_v40  ;;  %v1521_v9 = vmax.f32 %v1519_v11, %v1520_v37  ;;  %v1425_v32 = vrot.slane %v1424_v44, 1 }
 0x2da   : > { %2242 = vmatmul.mubr.f32.gmra.mrb[122].mxu0 %v5912_v43  ;;  %v1408_v19 = vmax.f32 %v1406_v47, %v1407_v25  ;;  %v1434_v15 = vrot.slane %v1433_v54, 1  ;;  %v1468_v17 = vrot.slane %v1467_v22, 2  ;;  %v1512_v39 = vmax.f32 %v1510_v36, %v1511_v3 }
 0x2db   : > { %v1450_v16 = vrot.slane %v1449_v45, 2  ;;  %v1459_v61 = vrot.slane %v1458_v21, 2  ;;  %v1486_v30 = vrot.slane %v1485_v5, 2  ;;  %v1526_v57 = vmax.f32 %v5876_v46, %v5912_v43 }
 0x2dc   : > { %v1477_v47 = vrot.slane %v1476_v14, 2  ;;  %v1504_v13 = vrot.slane %v1503_v6, 2  ;;  %v1535_v41 = vmax.f32 %v5873_v48, %v5905_v33  ;;  %v1495_v1 = vrot.slane %v1494_v8, 2 }
 0x2dd   : > { %v1451_v20 = vmax.f32 %v1449_v45, %v1450_v16  ;;  %v1522_v11 = vrot.slane %v1521_v9, 2  ;;  %v1513_v53 = vrot.slane %v1512_v39, 2  ;;  %v1426_v40 = vmax.f32 %v1424_v44, %v1425_v32 }
 0x2de   : > { %v1460_v25 = vmax.f32 %v1458_v21, %v1459_v61  ;;  %v1487_v37 = vmax.f32 %v1485_v5, %v1486_v30  ;;  %v1478_v16 = vmax.f32 %v1476_v14, %v1477_v47  ;;  %v1435_v5 = vmax.f32 %v1433_v54, %v1434_v15 }
 0x2df   : > { %v1389_v18 = vpop.f32.mrb[60].mxu0  ;;  %v1514_v32 = vmax.f32 %v1512_v39, %v1513_v53  ;;  %v1711_v47 = vsel %vm1710_vm0, %v1426_v40, %v1408_v19 }
 0x2e0   : > { %v1391_v12 = vpop.f32.mrb[61].mxu0  ;;  %v5930_v59 = vadd.f32 %v1389_v18, %v5622_v28  ;;  %v1488_v61 = vrot.slane %v1487_v37, 1  ;;  %v1724_v53 = vsel %vm1710_vm0, %v1435_v5, %v5932_v31  ;;  %v1546_v5 = vld [vmem:[#allocation2 + $0x10] sm:$0xff] }
 0x2e1   : > { %v5927_v62 = vadd.f32 %v1391_v12, %v5618_v4  ;;  %v1442_v12 = vmax.f32 %v1440_v7, %v1441_v58  ;;  %v1469_v58 = vmax.f32 %v1467_v22, %v1468_v17  ;;  %v1452_v22 = vrot.slane %v1451_v20, 1 }
 0x2e2   : > { %v1527_v56 = vmax.f32 %v1526_v57, %v5930_v59  ;;  %v1505_v57 = vmax.f32 %v1503_v6, %v1504_v13  ;;  %v1496_v17 = vmax.f32 %v1494_v8, %v1495_v1  ;;  %v1461_v6 = vrot.slane %v1460_v25, 1 }
 0x2e3   : > { %2247 = vmatprep.mubr.f32.mxu0 %v5927_v62  ;;  %v1536_v42 = vmax.f32 %v1535_v41, %v5927_v62  ;;  %v1443_v3 = vrot.slane %v1442_v12, 1  ;;  %v1470_v21 = vrot.slane %v1469_v58, 1  ;;  %v1489_v19 = vmax.f32 %v1487_v37, %v1488_v61 }
 0x2e4   : > { %2248 = vmatmul.mubr.f32.gmra.mrb[124].mxu0 %v5930_v59  ;;  %v1497_v1 = vrot.slane %v1496_v17, 1 }
 0x2e5   : > { %v1444_v13 = vmax.f32 %v1442_v12, %v1443_v3  ;;  %v1471_v15 = vmax.f32 %v1469_v58, %v1470_v21 }
 0x2e6   : > { %v1395_v27 = vpop.f32.mrb[62].mxu0  ;;  %v1498_v21 = vmax.f32 %v1496_v17, %v1497_v1 }
 0x2e7   : > { %v5942_v36 = vadd.f32 %v1395_v27, %v5622_v28  ;;  %v1397_v7 = vpop.f32.mrb[63].mxu0 }
 0x2e8   : > { %v5946_v45 = vadd.f32 %v1397_v7, %v5618_v4  ;;  %v1523_v4 = vmax.f32 %v1521_v9, %v1522_v11  ;;  %v1506_v7 = vrot.slane %v1505_v57, 1  ;;  %v1453_v9 = vmax.f32 %v1451_v20, %v1452_v22 }
 0x2e9   : > { %v1528_v18 = vmax.f32 %v1527_v56, %v5942_v36  ;;  %v1479_v56 = vrot.slane %v1478_v16, 1  ;;  %v1713_v22 = vsel %vm1712_vm1, %v1444_v13, %v1711_v47  ;;  %v1559_v47 = vld [vmem:[#allocation2 + $0x78] sm:$0xff] }
 0x2ea   : > { %v1537_v28 = vmax.f32 %v1536_v42, %v5946_v45  ;;  %v5950_v27 = vpop.f32.mrb[64].mxu0  ;;  %2253 = vmatprep.mubr.f32.mxu0 %v5946_v45  ;;  %v1524_v54 = vrot.slane %v1523_v4, 1  ;;  %v1725_v58 = vsel %vm1712_vm1, %v1453_v9, %v1724_v53  ;;  %v1563_v53 = vld [vmem:[#allocation2 + $0x98] sm:$0xff] }
 0x2eb   : > { %7155 = vst [vmem:[#allocation61_spill] sm:$0xff] %v5950_v27  ;;  %v1529_v41 = vrot.slane %v1528_v18, 4  ;;  %v5953_v44 = vpop.f32.mrb[65].mxu0  ;;  %2254 = vmatmul.mubr.f32.gmra.mrb[126].mxu0 %v5942_v36  ;;  %v1480_v40 = vmax.f32 %v1478_v16, %v1479_v56  ;;  %v1550_v16 = vld [vmem:[#allocation2 + $0x30] sm:$0xff] }
 0x2ec   : > { %v1538_v14 = vrot.slane %v1537_v28, 4  ;;  %v4062_v9 = vpack.c.bf16 %v1550_v16, %v1546_v5  ;;  %v1574_v5 = vld [vmem:[#allocation2 + $0xf0] sm:$0xff]  ;;  %v1579_v16 = vld [vmem:[#allocation2 + $0x118] sm:$0xff] }
 0x2ed   : > { %v1530_v30 = vmax.f32 %v1528_v18, %v1529_v41  ;;  %v1515_v18 = vrot.slane %v1514_v32, 1  ;;  %v1462_v41 = vmax.f32 %v1460_v25, %v1461_v6  ;;  %v1726_v25 = vsel %vm1714_vm2, %v1471_v15, %v1725_v58  ;;  %v1558_v15 = vld [vmem:[#allocation2 + $0x70] sm:$0xff] }
 0x2ee   : > { %v1539_v42 = vmax.f32 %v1537_v28, %v1538_v14  ;;  %v5957_v8 = vpop.f32.mrb[66].mxu0  ;;  %v1507_v28 = vmax.f32 %v1505_v57, %v1506_v7  ;;  %v1727_v57 = vsel %vm1716_vm3, %v1489_v19, %v1726_v25 }
 0x2ef   : > { %7156 = vst [vmem:[#allocation62_spill] sm:$0xff] %v5957_v8  ;;  %v1531_v11 = vrot.slane %v1530_v30, 2  ;;  %v5959_v27 = vpop.f32.mrb[67].mxu0  ;;  %v1525_v8 = vmax.f32 %v1523_v4, %v1524_v54  ;;  %v1516_v37 = vmax.f32 %v1514_v32, %v1515_v18  ;;  %v1715_v61 = vsel %vm1714_vm2, %v1462_v41, %v1713_v22  ;;  %v1554_v54 = vld [vmem:[#allocation2 + $0x50] sm:$0xff]  ;;  %v1567_v18 = vld [vmem:[#allocation2 + $0xb8] sm:$0xff] }
 0x2f0   : > { %7157 = vst [vmem:[#allocation63_spill] sm:$0xff] %v5959_v27  ;;  %v1540_v39 = vrot.slane %v1539_v42, 2  ;;  %v1728_v17 = vsel %vm1718_vm4, %v1507_v28, %v1727_v57  ;;  %v1717_v56 = vsel %vm1716_vm3, %v1480_v40, %v1715_v61  ;;  %v4066_v19 = vpack.c.bf16 %v1558_v15, %v1554_v54  ;;  %v1562_v40 = vld [vmem:[#allocation2 + $0x90] sm:$0xff]  ;;  %v1575_v22 = vld [vmem:[#allocation2 + $0xf8] sm:$0xff] }
 0x2f1   : > { %v1532_v12 = vmax.f32 %v1530_v30, %v1531_v11  ;;  %v1555_v30 = vld [vmem:[#allocation2 + $0x58] sm:$0xff]  ;;  %v1729_v32 = vsel %vm1720_vm5, %v1525_v8, %v1728_v17  ;;  %v1566_v28 = vld [vmem:[#allocation2 + $0xb0] sm:$0xff] }
 0x2f2   : > { %v5963_v3 = vpop.f32.mrb[68].mxu0  ;;  %v1541_v20 = vmax.f32 %v1539_v42, %v1540_v39  ;;  %v1719_v42 = vsel %vm1718_vm4, %v1498_v21, %v1717_v56  ;;  %v4064_v11 = vpack.c.bf16 %v1559_v47, %v1555_v30  ;;  %v1583_v57 = vld [vmem:[#allocation2 + $0x138] sm:$0xff]  ;;  %v1582_v17 = vld [vmem:[#allocation2 + $0x130] sm:$0xff] }
 0x2f3   : > { %v5966_v14 = vpop.f32.mrb[69].mxu0  ;;  %v1533_v27 = vrot.slane %v1532_v12, 1  ;;  %v1721_v1 = vsel %vm1720_vm5, %v1516_v37, %v1719_v42  ;;  %v1570_v37 = vld [vmem:[#allocation2 + $0xd0] sm:$0xff]  ;;  %v4076_v47 = vpack.c.bf16 %v1583_v57, %v1579_v16  ;;  %v1587_v56 = vld [vmem:[#allocation2 + $0x158] sm:$0xff] }
 0x2f4   : > { %v1542_v31 = vrot.slane %v1541_v20, 1  ;;  %v4074_v30 = vpack.c.bf16 %v1574_v5, %v1570_v37  ;;  %v1590_v54 = vld [vmem:[#allocation2 + $0x170] sm:$0xff]  ;;  %v1595_v15 = vld [vmem:[#allocation2 + $0x198] sm:$0xff] }
 0x2f5   : > { %v1534_v6 = vmax.f32 %v1532_v12, %v1533_v27  ;;  %v4068_v12 = vpack.c.bf16 %v1567_v18, %v1563_v53  ;;  %v1599_v53 = vld [vmem:[#allocation2 + $0x1b8] sm:$0xff]  ;;  %v1602_v57 = vld [vmem:[#allocation2 + $0x1d0] sm:$0xff] }
 0x2f6   : > { %v5972_v4 = vpop.f32.mrb[70].mxu0  ;;  %v1543_v13 = vmax.f32 %v1541_v20, %v1542_v31  ;;  %v1571_v20 = vld [vmem:[#allocation2 + $0xd8] sm:$0xff]  ;;  %v4070_v31 = vpack.c.bf16 %v1566_v28, %v1562_v40  ;;  %v4084_v40 = vpack.c.bf16 %v1599_v53, %v1595_v15  ;;  %v1594_v28 = vld [vmem:[#allocation2 + $0x190] sm:$0xff] }
 0x2f7   : > { %v5976_v7 = vpop.f32.mrb[71].mxu0  ;;  %v5983_v39 = vsel %vm1722_vm6, %v1534_v6, %v1721_v1  ;;  %v4072_v25 = vpack.c.bf16 %v1575_v22, %v1571_v20  ;;  %v1598_v20 = vld [vmem:[#allocation2 + $0x1b0] sm:$0xff]  ;;  %v1603_v22 = vld [vmem:[#allocation2 + $0x1d8] sm:$0xff] }
 0x2f8   : > { %v1730_v27 = vsel %vm1722_vm6, %v1543_v13, %v1729_v32  ;;  %v1578_v13 = vld [vmem:[#allocation2 + $0x110] sm:$0xff]  ;;  %v1591_v32 = vld [vmem:[#allocation2 + $0x178] sm:$0xff]  ;;  %v4086_v5 = vpack.c.bf16 %v1598_v20, %v1594_v28 }
 0x2f9   : > { %1797 = vmatprep.mubr.f32.mxu1 %v1730_v27  ;;  %v4080_v1 = vpack.c.bf16 %v1591_v32, %v1587_v56  ;;  %v1623_v15 = vld [vmem:[#allocation2 + $0x278] sm:$0xff]  ;;  %v1618_v20 = vld [vmem:[#allocation2 + $0x250] sm:$0xff] }
 0x2fa   : > { %1798 = vmatmul.mubr.f32.vlgmr.msra.gmra.mrb[0].mxu1 %v5983_v39  ;;  %v5986_v41 = vpop.f32.mrb[72].mxu0 }
 0x2fb   : > { %4063 = vmatpush1.bf16.msra.mxu1 %v4062_v9  ;;  %1868 = vmatprep.mubr.f32.mxu1 %v1730_v27  ;;  %v5988_v8 = vpop.f32.mrb[73].mxu0  ;;  %v4078_v27 = vpack.c.bf16 %v1582_v17, %v1578_v13  ;;  %v1615_v13 = vld [vmem:[#allocation2 + $0x238] sm:$0xff] }
 0x2fc   : > { %4065 = vmatprep.subr.bf16.mxu1 %v4064_v11  ;;  %v1586_v11 = vld [vmem:[#allocation2 + $0x150] sm:$0xff] }
 0x2fe   : > { %v5990_v58 = vpop.f32.mrb[74].mxu0 }
 0x2ff   : > { %4067 = vmatpush1.bf16.msra.mxu1 %v4066_v19  ;;  %v5992_v21 = vpop.f32.mrb[75].mxu0 }
 0x300   : > { %4069 = vmatprep.subr.bf16.mxu1 %v4068_v12  ;;  %v4082_v12 = vpack.c.bf16 %v1590_v54, %v1586_v11  ;;  %v1614_v11 = vld [vmem:[#allocation2 + $0x230] sm:$0xff]  ;;  %v1619_v54 = vld [vmem:[#allocation2 + $0x258] sm:$0xff] }
 0x301   : > { %v4096_v28 = vpack.c.bf16 %v1623_v15, %v1619_v54  ;;  %v1634_v54 = vld [vmem:[#allocation2 + $0x2d0] sm:$0xff] }
 0x302   : > { %v5994_v6 = vpop.f32.mrb[76].mxu0  ;;  %v1638_v15 = vld [vmem:[#allocation2 + $0x2f0] sm:$0xff] }
 0x303   : > { %4071 = vmatpush1.bf16.msra.mxu1 %v4070_v31  ;;  %v5996_v61 = vpop.f32.mrb[77].mxu0  ;;  %v1607_v31 = vld [vmem:[#allocation2 + $0x1f8] sm:$0xff] }
 0x304   : > { %4073 = vmatprep.subr.bf16.mxu1 %v4072_v25  ;;  %v4088_v16 = vpack.c.bf16 %v1607_v31, %v1603_v22  ;;  %v1622_v22 = vld [vmem:[#allocation2 + $0x270] sm:$0xff]  ;;  %v1627_v31 = vld [vmem:[#allocation2 + $0x298] sm:$0xff] }
 0x306   : > { %v5998_v42 = vpop.f32.mrb[78].mxu0 }
 0x307   : > { %4075 = vmatpush1.bf16.msra.mxu1 %v4074_v30  ;;  %v6000_v9 = vpop.f32.mrb[79].mxu0  ;;  %v1606_v30 = vld [vmem:[#allocation2 + $0x1f0] sm:$0xff] }
 0x308   : > { %4077 = vmatprep.subr.bf16.mxu1 %v4076_v47  ;;  %v1611_v47 = vld [vmem:[#allocation2 + $0x218] sm:$0xff]  ;;  %v4090_v32 = vpack.c.bf16 %v1606_v30, %v1602_v57  ;;  %v4098_v57 = vpack.c.bf16 %v1622_v22, %v1618_v20  ;;  %v4106_v20 = vpack.c.bf16 %v1638_v15, %v1634_v54  ;;  %v1642_v22 = vld [vmem:[#allocation2 + $0x310] sm:$0xff] }
 0x309   : > { %v1662_v54 = vld [vmem:[#allocation2 + $0x3b0] sm:$0xff]  ;;  %v1667_v15 = vld [vmem:[#allocation2 + $0x3d8] sm:$0xff] }
 0x30a   : > { %v6002_v18 = vpop.f32.mrb[80].mxu0 }
 0x30b   : > { %4079 = vmatpush1.bf16.msra.mxu1 %v4078_v27  ;;  %v6004_v19 = vpop.f32.mrb[81].mxu0  ;;  %v4092_v27 = vpack.c.bf16 %v1615_v13, %v1611_v47  ;;  %v1626_v47 = vld [vmem:[#allocation2 + $0x290] sm:$0xff] }
 0x30c   : > { %4081 = vmatprep.subr.bf16.mxu1 %v4080_v1  ;;  %v1610_v1 = vld [vmem:[#allocation2 + $0x210] sm:$0xff] }
 0x30d   : > { %v1630_v13 = vld [vmem:[#allocation2 + $0x2b0] sm:$0xff] }
 0x30e   : > { %v6006_v25 = vpop.f32.mrb[82].mxu0 }
 0x30f   : > { %7158 = vst [vmem:[#allocation64_spill] sm:$0xff] %v6006_v25  ;;  %4083 = vmatpush1.bf16.msra.mxu1 %v4082_v12  ;;  %v6008_v37 = vpop.f32.mrb[83].mxu0 }
 0x310   : > { %4085 = vmatprep.subr.bf16.mxu1 %v4084_v40  ;;  %v4094_v40 = vpack.c.bf16 %v1614_v11, %v1610_v1  ;;  %v4102_v1 = vpack.c.bf16 %v1630_v13, %v1626_v47  ;;  %v1654_v13 = vld [vmem:[#allocation2 + $0x370] sm:$0xff] }
 0x312   : > { %v6010_v17 = vpop.f32.mrb[84].mxu0 }
 0x313   : > { %7159 = vst [vmem:[#allocation65_spill] sm:$0xff] %v6010_v17  ;;  %4087 = vmatpush1.bf16.msra.mxu1 %v4086_v5  ;;  %v6012_v56 = vpop.f32.mrb[85].mxu0  ;;  %v1631_v5 = vld [vmem:[#allocation2 + $0x2b8] sm:$0xff] }
 0x314   : > { %7160 = vst [vmem:[#allocation66_spill] sm:$0xff] %v6012_v56  ;;  %4089 = vmatprep.subr.bf16.mxu1 %v4088_v16  ;;  %v4100_v30 = vpack.c.bf16 %v1631_v5, %v1627_v31  ;;  %v1646_v31 = vld [vmem:[#allocation2 + $0x330] sm:$0xff]  ;;  %v1651_v5 = vld [vmem:[#allocation2 + $0x358] sm:$0xff] }
 0x315   : > { %v4110_v47 = vpack.c.bf16 %v1646_v31, %v1642_v22 }
 0x316   : > { %v6014_v53 = vpop.f32.mrb[86].mxu0 }
 0x317   : > { %7161 = vst [vmem:[#allocation67_spill] sm:$0xff] %v6014_v53  ;;  %4091 = vmatpush1.bf16.msra.mxu1 %v4090_v32  ;;  %v6016_v12 = vpop.f32.mrb[87].mxu0  ;;  %v1635_v32 = vld [vmem:[#allocation2 + $0x2d8] sm:$0xff] }
 0x318   : > { %7162 = vst [vmem:[#allocation68_spill] sm:$0xff] %v6016_v12  ;;  %4093 = vmatprep.subr.bf16.mxu1 %v4092_v27  ;;  %v1639_v53 = vld [vmem:[#allocation2 + $0x2f8] sm:$0xff] }
 0x319   : > { %v4104_v11 = vpack.c.bf16 %v1639_v53, %v1635_v32  ;;  %v1659_v32 = vld [vmem:[#allocation2 + $0x398] sm:$0xff] }
 0x31a   : > { %v6018_v17 = vpop.f32.mrb[88].mxu0 }
 0x31b   : > { %7163 = vst [vmem:[#allocation69_spill] sm:$0xff] %v6018_v17  ;;  %4095 = vmatpush1.bf16.msra.mxu1 %v4094_v40  ;;  %v6020_v16 = vpop.f32.mrb[89].mxu0  ;;  %v1643_v40 = vld [vmem:[#allocation2 + $0x318] sm:$0xff] }
 0x31c   : > { %7164 = vst [vmem:[#allocation70_spill] sm:$0xff] %v6020_v16  ;;  %4097 = vmatprep.subr.bf16.mxu1 %v4096_v28  ;;  %v1647_v17 = vld [vmem:[#allocation2 + $0x338] sm:$0xff] }
 0x31d   : > { %v4108_v28 = vpack.c.bf16 %v1647_v17, %v1643_v40  ;;  %v1655_v16 = vld [vmem:[#allocation2 + $0x378] sm:$0xff] }
 0x31e   : > { %v6022_v12 = vpop.f32.mrb[90].mxu0  ;;  %v4112_v53 = vpack.c.bf16 %v1655_v16, %v1651_v5  ;;  %v1671_v40 = vld [vmem:[#allocation2 + $0x3f8] sm:$0xff]  ;;  %v1670_v16 = vld [vmem:[#allocation2 + $0x3f0] sm:$0xff] }
 0x31f   : > { %7165 = vst [vmem:[#allocation71_spill] sm:$0xff] %v6022_v12  ;;  %4099 = vmatpush1.bf16.msra.mxu1 %v4098_v57  ;;  %v6024_v27 = vpop.f32.mrb[91].mxu0  ;;  %v1663_v12 = vld [vmem:[#allocation2 + $0x3b8] sm:$0xff]  ;;  %v4120_v22 = vpack.c.bf16 %v1671_v40, %v1667_v15  ;;  %v1885_v15 = vld [vmem:[#allocation5 + $0x50] sm:$0xff] }
 0x320   : > { %7166 = vst [vmem:[#allocation72_spill] sm:$0xff] %v6024_v27  ;;  %4101 = vmatprep.subr.bf16.mxu1 %v4100_v30  ;;  %v1650_v30 = vld [vmem:[#allocation2 + $0x350] sm:$0xff]  ;;  %v4116_v17 = vpack.c.bf16 %v1663_v12, %v1659_v32  ;;  %v1878_v5 = vld [vmem:[#allocation5 + $0x18] sm:$0xff] }
 0x321   : > { %v1890_v32 = vld [vmem:[#allocation5 + $0x78] sm:$0xff]  ;;  %v1889_v40 = vld [vmem:[#allocation5 + $0x70] sm:$0xff] }
 0x323   : > { %4103 = vmatpush1.bf16.msra.mxu1 %v4102_v1  ;;  %v4114_v1 = vpack.c.bf16 %v1654_v13, %v1650_v30  ;;  %v1881_v30 = vld [vmem:[#allocation5 + $0x30] sm:$0xff]  ;;  %v1886_v13 = vld [vmem:[#allocation5 + $0x58] sm:$0xff] }
 0x324   : > { %4105 = vmatprep.subr.bf16.mxu1 %v4104_v11  ;;  %v1658_v11 = vld [vmem:[#allocation2 + $0x390] sm:$0xff] }
 0x326   : > { %v6026_v56 = vpop.f32.mrb[92].mxu0 }
 0x327   : > { %7167 = vst [vmem:[#allocation73_spill] sm:$0xff] %v6026_v56  ;;  %4107 = vmatpush1.bf16.msra.mxu1 %v4106_v20  ;;  %v6028_v57 = vpop.f32.mrb[93].mxu0  ;;  %v4118_v56 = vpack.c.bf16 %v1662_v54, %v1658_v11  ;;  %v4192_v54 = vpack.c.bf16 %v1890_v32, %v1886_v13  ;;  %v3007_v13 = vld [vmem:[#allocation7 + $0x10] sm:$0xff] }
 0x328   : > { %7168 = vst [vmem:[#allocation74_spill] sm:$0xff] %v6028_v57  ;;  %4109 = vmatprep.subr.bf16.mxu1 %v4108_v28  ;;  %v1666_v28 = vld [vmem:[#allocation2 + $0x3d0] sm:$0xff]  ;;  %v1882_v57 = vld [vmem:[#allocation5 + $0x38] sm:$0xff] }
 0x329   : > { %v4188_v12 = vpack.c.bf16 %v1882_v57, %v1878_v5  ;;  %v3006_v57 = vld [vmem:[#allocation7 + $0x8] sm:$0xff]  ;;  %v1897_v5 = vld [vmem:[#allocation5 + $0xb0] sm:$0xff] }
 0x32b   : > { %4111 = vmatpush1.bf16.msra.mxu1 %v4110_v47  ;;  %v4122_v47 = vpack.c.bf16 %v1670_v16, %v1666_v28  ;;  %v1893_v16 = vld [vmem:[#allocation5 + $0x90] sm:$0xff] }
 0x32c   : > { %4113 = vmatprep.subr.bf16.mxu1 %v4112_v53  ;;  %v1877_v53 = vld [vmem:[#allocation5 + $0x10] sm:$0xff]  ;;  %v4198_v32 = vpack.c.bf16 %v1897_v5, %v1893_v16 }
 0x32d   : > { %v4190_v11 = vpack.c.bf16 %v1881_v30, %v1877_v53  ;;  %v1902_v53 = vld [vmem:[#allocation5 + $0xd8] sm:$0xff]  ;;  %v3005_v30 = vld [vmem:[#allocation7] sm:$0xff]  ;;  %v1913_v16 = vld [vmem:[#allocation5 + $0x130] sm:$0xff] }
 0x32f   : > { %4115 = vmatpush1.bf16.msra.mxu1 %v4114_v1 }
 0x330   : > { %v6030_v20 = vpop.f32.mrb[94].mxu0  ;;  %4117 = vmatprep.subr.bf16.mxu1 %v4116_v17 }
 0x331   : > { %7169 = vst [vmem:[#allocation75_spill] sm:$0xff] %v6030_v20  ;;  %v6032_v31 = vpop.f32.mrb[95].mxu0  ;;  %v1894_v20 = vld [vmem:[#allocation5 + $0x98] sm:$0xff] }
 0x332   : > { %7170 = vst [vmem:[#allocation76_spill] sm:$0xff] %v6032_v31  ;;  %v1898_v31 = vld [vmem:[#allocation5 + $0xb8] sm:$0xff] }
 0x333   : > { %4119 = vmatpush1.bf16.msra.mxu1 %v4118_v56  ;;  %v4194_v56 = vpack.c.bf16 %v1889_v40, %v1885_v15  ;;  %v4196_v28 = vpack.c.bf16 %v1898_v31, %v1894_v20  ;;  %v1910_v40 = vld [vmem:[#allocation5 + $0x118] sm:$0xff] }
 0x334   : > { %4121 = vmatprep.subr.bf16.mxu1 %v4120_v22  ;;  %v3008_v22 = vld [vmem:[#allocation7 + $0x18] sm:$0xff] }
 0x337   : > { %4123 = vmatpush1.bf16.msra.mxu1 %v4122_v47  ;;  %v6034_v1 = vpop.f32.mrb[96].mxu0  ;;  %v4252_v47 = vpack.c.bf16 %v3008_v22, %v3006_v57  ;;  %v3010_v57 = vld [vmem:[#allocation7 + $0x28] sm:$0xff]  ;;  %v3012_v22 = vld [vmem:[#allocation7 + $0x38] sm:$0xff] }
 0x338   : > { %7171 = vst [vmem:[#allocation77_spill] sm:$0xff] %v6034_v1  ;;  %v6036_v17 = vpop.f32.mrb[97].mxu0  ;;  %4189 = vmatprep.subr.bf16.mxu1 %v4188_v12  ;;  %v1906_v12 = vld [vmem:[#allocation5 + $0xf8] sm:$0xff]  ;;  %v4254_v1 = vpack.c.bf16 %v3007_v13, %v3005_v30  ;;  %v4256_v5 = vpack.c.bf16 %v3012_v22, %v3010_v57  ;;  %v3011_v30 = vld [vmem:[#allocation7 + $0x30] sm:$0xff]  ;;  %v3014_v57 = vld [vmem:[#allocation7 + $0x48] sm:$0xff] }
 0x339   : > { %7172 = vst [vmem:[#allocation78_spill] sm:$0xff] %v6036_v17  ;;  %4253 = vmatprep.subr.bf16.mxu0 %v4252_v47  ;;  %v3016_v22 = vld [vmem:[#allocation7 + $0x58] sm:$0xff] }
 0x33a   : > { %1869 = vmatmul.mubr.f32.vlgmr.msra.gmra.mrb[2].mxu1 %v5983_v39  ;;  %v4200_v39 = vpack.c.bf16 %v1906_v12, %v1902_v53  ;;  %4255 = vmatpush1.bf16.msra.mxu0 %v4254_v1  ;;  %v1922_v53 = vld [vmem:[#allocation5 + $0x178] sm:$0xff]  ;;  %v3009_v12 = vld [vmem:[#allocation7 + $0x20] sm:$0xff] }
 0x33b   : > { %4191 = vmatpush1.bf16.msra.mxu1 %v4190_v11  ;;  %2324 = vmatprep.mubr.f32.mxu1 %v5626_v23  ;;  %v1901_v11 = vld [vmem:[#allocation5 + $0xd0] sm:$0xff]  ;;  %v1962_v17 = vld [vmem:[#allocation5 + $0x2b8] sm:$0xff] }
 0x33c   : > { %4193 = vmatprep.subr.bf16.mxu1 %v4192_v54  ;;  %v1905_v23 = vld [vmem:[#allocation5 + $0xf0] sm:$0xff]  ;;  %v1914_v54 = vld [vmem:[#allocation5 + $0x138] sm:$0xff]  ;;  %4257 = vmatprep.subr.bf16.mxu0 %v4256_v5 }
 0x33d   : > { %v4202_v31 = vpack.c.bf16 %v1905_v23, %v1901_v11  ;;  %v4204_v47 = vpack.c.bf16 %v1914_v54, %v1910_v40  ;;  %v1926_v23 = vld [vmem:[#allocation5 + $0x198] sm:$0xff] }
 0x33f   : > { %4195 = vmatpush1.bf16.msra.mxu1 %v4194_v56  ;;  %v1909_v56 = vld [vmem:[#allocation5 + $0x110] sm:$0xff] }
 0x340   : > { %4197 = vmatprep.subr.bf16.mxu1 %v4196_v28  ;;  %v1918_v28 = vld [vmem:[#allocation5 + $0x158] sm:$0xff]  ;;  %v4206_v13 = vpack.c.bf16 %v1913_v16, %v1909_v56  ;;  %v1929_v56 = vld [vmem:[#allocation5 + $0x1b0] sm:$0xff]  ;;  %v4260_v16 = vpack.c.bf16 %v3016_v22, %v3014_v57 }
 0x341   : > { %v6040_v15 = vpop.f32.mrb[98].mxu0  ;;  %v4208_v1 = vpack.c.bf16 %v1922_v53, %v1918_v28  ;;  %v1938_v28 = vld [vmem:[#allocation5 + $0x1f8] sm:$0xff]  ;;  %v3013_v53 = vld [vmem:[#allocation7 + $0x40] sm:$0xff] }
 0x342   : > { %7173 = vst [vmem:[#allocation79_spill] sm:$0xff] %v6040_v15  ;;  %v6042_v20 = vpop.f32.mrb[99].mxu0  ;;  %v4258_v15 = vpack.c.bf16 %v3011_v30, %v3009_v12  ;;  %v3015_v12 = vld [vmem:[#allocation7 + $0x50] sm:$0xff]  ;;  %v3020_v57 = vld [vmem:[#allocation7 + $0x78] sm:$0xff] }
 0x343   : > { %7174 = vst [vmem:[#allocation80_spill] sm:$0xff] %v6042_v20  ;;  %4199 = vmatpush1.bf16.msra.mxu1 %v4198_v32  ;;  %v1917_v20 = vld [vmem:[#allocation5 + $0x150] sm:$0xff] }
 0x344   : > { %4201 = vmatprep.subr.bf16.mxu1 %v4200_v39  ;;  %v1921_v32 = vld [vmem:[#allocation5 + $0x170] sm:$0xff]  ;;  %v1930_v39 = vld [vmem:[#allocation5 + $0x1b8] sm:$0xff]  ;;  %4259 = vmatpush1.bf16.msra.mxu0 %v4258_v15 }
 0x345   : > { %v4210_v54 = vpack.c.bf16 %v1921_v32, %v1917_v20  ;;  %v4212_v5 = vpack.c.bf16 %v1930_v39, %v1926_v23  ;;  %4261 = vmatprep.subr.bf16.mxu0 %v4260_v16  ;;  %v1942_v20 = vld [vmem:[#allocation5 + $0x218] sm:$0xff]  ;;  %v3018_v39 = vld [vmem:[#allocation7 + $0x68] sm:$0xff] }
 0x346   : > { %v1946_v32 = vld [vmem:[#allocation5 + $0x238] sm:$0xff] }
 0x347   : > { %4203 = vmatpush1.bf16.msra.mxu1 %v4202_v31  ;;  %v1925_v31 = vld [vmem:[#allocation5 + $0x190] sm:$0xff]  ;;  %v4220_v16 = vpack.c.bf16 %v1946_v32, %v1942_v20  ;;  %v3022_v20 = vld [vmem:[#allocation7 + $0x88] sm:$0xff]  ;;  %v3024_v32 = vld [vmem:[#allocation7 + $0x98] sm:$0xff] }
 0x348   : > { %4205 = vmatprep.subr.bf16.mxu1 %v4204_v47  ;;  %v1934_v47 = vld [vmem:[#allocation5 + $0x1d8] sm:$0xff]  ;;  %v4214_v30 = vpack.c.bf16 %v1929_v56, %v1925_v31  ;;  %v1945_v31 = vld [vmem:[#allocation5 + $0x230] sm:$0xff]  ;;  %v4264_v56 = vpack.c.bf16 %v3020_v57, %v3018_v39 }
 0x349   : > { %v6044_v11 = vpop.f32.mrb[100].mxu0  ;;  %v4216_v15 = vpack.c.bf16 %v1938_v28, %v1934_v47  ;;  %v1954_v47 = vld [vmem:[#allocation5 + $0x278] sm:$0xff]  ;;  %v3017_v28 = vld [vmem:[#allocation7 + $0x60] sm:$0xff]  ;;  %v1957_v57 = vld [vmem:[#allocation5 + $0x290] sm:$0xff] }
 0x34a   : > { %7175 = vst [vmem:[#allocation81_spill] sm:$0xff] %v6044_v11  ;;  %v6046_v40 = vpop.f32.mrb[101].mxu0  ;;  %v4262_v11 = vpack.c.bf16 %v3015_v12, %v3013_v53  ;;  %v3019_v53 = vld [vmem:[#allocation7 + $0x70] sm:$0xff] }
 0x34b   : > { %7176 = vst [vmem:[#allocation82_spill] sm:$0xff] %v6046_v40  ;;  %4207 = vmatpush1.bf16.msra.mxu1 %v4206_v13  ;;  %v1933_v40 = vld [vmem:[#allocation5 + $0x1d0] sm:$0xff]  ;;  %v4266_v12 = vpack.c.bf16 %v3019_v53, %v3017_v28 }
 0x34c   : > { %4209 = vmatprep.subr.bf16.mxu1 %v4208_v1  ;;  %v1937_v13 = vld [vmem:[#allocation5 + $0x1f0] sm:$0xff]  ;;  %4263 = vmatpush1.bf16.msra.mxu0 %v4262_v11 }
 0x34d   : > { %v4218_v23 = vpack.c.bf16 %v1937_v13, %v1933_v40  ;;  %4265 = vmatprep.subr.bf16.mxu0 %v4264_v56  ;;  %v1949_v40 = vld [vmem:[#allocation5 + $0x250] sm:$0xff] }
 0x34e   : > { %v1953_v13 = vld [vmem:[#allocation5 + $0x270] sm:$0xff] }
 0x34f   : > { %4211 = vmatpush1.bf16.msra.mxu1 %v4210_v54  ;;  %v1941_v54 = vld [vmem:[#allocation5 + $0x210] sm:$0xff] }
 0x350   : > { %4213 = vmatprep.subr.bf16.mxu1 %v4212_v5  ;;  %v1950_v5 = vld [vmem:[#allocation5 + $0x258] sm:$0xff]  ;;  %v4222_v11 = vpack.c.bf16 %v1945_v31, %v1941_v54  ;;  %4267 = vmatpush1.bf16.msra.mxu0 %v4266_v12  ;;  %v1961_v56 = vld [vmem:[#allocation5 + $0x2b0] sm:$0xff]  ;;  %v3021_v31 = vld [vmem:[#allocation7 + $0x80] sm:$0xff] }
 0x351   : > { %v1970_v54 = vld [vmem:[#allocation5 + $0x2f8] sm:$0xff]  ;;  %v1969_v12 = vld [vmem:[#allocation5 + $0x2f0] sm:$0xff] }
 0x353   : > { %4215 = vmatpush1.bf16.msra.mxu1 %v4214_v30  ;;  %v6048_v1 = vpop.f32.mrb[102].mxu0  ;;  %v4224_v30 = vpack.c.bf16 %v1954_v47, %v1950_v5  ;;  %v3023_v5 = vld [vmem:[#allocation7 + $0x90] sm:$0xff]  ;;  %v4230_v47 = vpack.c.bf16 %v1961_v56, %v1957_v57  ;;  %v1982_v57 = vld [vmem:[#allocation5 + $0x358] sm:$0xff] }
 0x354   : > { %7177 = vst [vmem:[#allocation83_spill] sm:$0xff] %v6048_v1  ;;  %v6050_v22 = vpop.f32.mrb[103].mxu0  ;;  %4217 = vmatprep.subr.bf16.mxu1 %v4216_v15  ;;  %v1958_v1 = vld [vmem:[#allocation5 + $0x298] sm:$0xff]  ;;  %v4226_v15 = vpack.c.bf16 %v1953_v13, %v1949_v40  ;;  %v4270_v28 = vpack.c.bf16 %v3023_v5, %v3021_v31  ;;  %v1973_v40 = vld [vmem:[#allocation5 + $0x310] sm:$0xff] }
 0x355   : > { %7178 = vst [vmem:[#allocation84_spill] sm:$0xff] %v6050_v22  ;;  %v4228_v39 = vpack.c.bf16 %v1962_v17, %v1958_v1  ;;  %v4268_v22 = vpack.c.bf16 %v3024_v32, %v3022_v20  ;;  %v1974_v17 = vld [vmem:[#allocation5 + $0x318] sm:$0xff]  ;;  %v3026_v32 = vld [vmem:[#allocation7 + $0xa8] sm:$0xff] }
 0x356   : > { %v1978_v1 = vld [vmem:[#allocation5 + $0x338] sm:$0xff] }
 0x357   : > { %4219 = vmatpush1.bf16.msra.mxu1 %v4218_v23  ;;  %v1966_v23 = vld [vmem:[#allocation5 + $0x2d8] sm:$0xff]  ;;  %4269 = vmatprep.subr.bf16.mxu0 %v4268_v22  ;;  %v4236_v20 = vpack.c.bf16 %v1978_v1, %v1974_v17  ;;  %v1977_v22 = vld [vmem:[#allocation5 + $0x330] sm:$0xff] }
 0x358   : > { %4221 = vmatprep.subr.bf16.mxu1 %v4220_v16  ;;  %v4232_v53 = vpack.c.bf16 %v1970_v54, %v1966_v23  ;;  %4271 = vmatpush1.bf16.msra.mxu0 %v4270_v28  ;;  %v3025_v23 = vld [vmem:[#allocation7 + $0xa0] sm:$0xff]  ;;  %v3027_v54 = vld [vmem:[#allocation7 + $0xb0] sm:$0xff]  ;;  %v4238_v31 = vpack.c.bf16 %v1977_v22, %v1973_v40 }
 0x359   : > { %v4274_v5 = vpack.c.bf16 %v3027_v54, %v3025_v23  ;;  %v1981_v28 = vld [vmem:[#allocation5 + $0x350] sm:$0xff] }
 0x35a   : > { %v1989_v1 = vld [vmem:[#allocation5 + $0x390] sm:$0xff] }
 0x35b   : > { %4223 = vmatpush1.bf16.msra.mxu1 %v4222_v11  ;;  %v1965_v11 = vld [vmem:[#allocation5 + $0x2d0] sm:$0xff] }
 0x35c   : > { %4225 = vmatprep.subr.bf16.mxu1 %v4224_v30  ;;  %v4234_v30 = vpack.c.bf16 %v1969_v12, %v1965_v11  ;;  %v1985_v11 = vld [vmem:[#allocation5 + $0x370] sm:$0xff]  ;;  %v1994_v12 = vld [vmem:[#allocation5 + $0x3b8] sm:$0xff] }
 0x35d   : > { %v6052_v27 = vpop.f32.mrb[104].mxu0  ;;  %v4242_v17 = vpack.c.bf16 %v1985_v11, %v1981_v28  ;;  %v3072_v28 = vld [vmem:[#allocation7 + $0x218] sm:$0xff] }
 0x35e   : > { %7179 = vst [vmem:[#allocation85_spill] sm:$0xff] %v6052_v27  ;;  %v6054_v16 = vpop.f32.mrb[105].mxu0  ;;  %v3028_v27 = vld [vmem:[#allocation7 + $0xb8] sm:$0xff] }
 0x35f   : > { %7180 = vst [vmem:[#allocation86_spill] sm:$0xff] %v6054_v16  ;;  %4227 = vmatpush1.bf16.msra.mxu1 %v4226_v15  ;;  %v4272_v56 = vpack.c.bf16 %v3028_v27, %v3026_v32  ;;  %v3030_v27 = vld [vmem:[#allocation7 + $0xc8] sm:$0xff]  ;;  %v3032_v32 = vld [vmem:[#allocation7 + $0xd8] sm:$0xff] }
 0x360   : > { %4229 = vmatprep.subr.bf16.mxu1 %v4228_v39  ;;  %v1986_v39 = vld [vmem:[#allocation5 + $0x378] sm:$0xff]  ;;  %v4276_v40 = vpack.c.bf16 %v3032_v32, %v3030_v27  ;;  %v3071_v27 = vld [vmem:[#allocation7 + $0x210] sm:$0xff] }
 0x361   : > { %4273 = vmatprep.subr.bf16.mxu0 %v4272_v56  ;;  %v1998_v16 = vld [vmem:[#allocation5 + $0x3d8] sm:$0xff] }
 0x362   : > { %4275 = vmatpush1.bf16.msra.mxu0 %v4274_v5  ;;  %v2001_v5 = vld [vmem:[#allocation5 + $0x3f0] sm:$0xff]  ;;  %v3036_v32 = vld [vmem:[#allocation7 + $0xf8] sm:$0xff] }
 0x363   : > { %4231 = vmatpush1.bf16.msra.mxu1 %v4230_v47  ;;  %v4240_v47 = vpack.c.bf16 %v1986_v39, %v1982_v57  ;;  %v3031_v57 = vld [vmem:[#allocation7 + $0xd0] sm:$0xff]  ;;  %4277 = vmatprep.subr.bf16.mxu0 %v4276_v40 }
 0x364   : > { %v6056_v13 = vpop.f32.mrb[106].mxu0  ;;  %4233 = vmatprep.subr.bf16.mxu1 %v4232_v53  ;;  %v1990_v53 = vld [vmem:[#allocation5 + $0x398] sm:$0xff] }
 0x365   : > { %7181 = vst [vmem:[#allocation87_spill] sm:$0xff] %v6056_v13  ;;  %v6058_v15 = vpop.f32.mrb[107].mxu0  ;;  %v4244_v13 = vpack.c.bf16 %v1994_v12, %v1990_v53  ;;  %v3069_v53 = vld [vmem:[#allocation7 + $0x200] sm:$0xff] }
 0x366   : > { %7182 = vst [vmem:[#allocation88_spill] sm:$0xff] %v6058_v15  ;;  %v1993_v15 = vld [vmem:[#allocation5 + $0x3b0] sm:$0xff] }
 0x367   : > { %4235 = vmatpush1.bf16.msra.mxu1 %v4234_v30  ;;  %v2002_v30 = vld [vmem:[#allocation5 + $0x3f8] sm:$0xff]  ;;  %v4246_v56 = vpack.c.bf16 %v1993_v15, %v1989_v1 }
 0x368   : > { %4237 = vmatprep.subr.bf16.mxu1 %v4236_v20  ;;  %v3029_v20 = vld [vmem:[#allocation7 + $0xc0] sm:$0xff]  ;;  %v4248_v54 = vpack.c.bf16 %v2002_v30, %v1998_v16  ;;  %v3076_v15 = vld [vmem:[#allocation7 + $0x238] sm:$0xff] }
 0x369   : > { %v4278_v23 = vpack.c.bf16 %v3031_v57, %v3029_v20  ;;  %v3033_v16 = vld [vmem:[#allocation7 + $0xe0] sm:$0xff]  ;;  %v6070_v20 = vpack.c.bf16 %v3071_v27, %v3069_v53  ;;  %v3042_v27 = vld [vmem:[#allocation7 + $0x128] sm:$0xff] }
 0x36a   : > { %v3073_v57 = vld [vmem:[#allocation7 + $0x220] sm:$0xff] }
 0x36b   : > { %4239 = vmatpush1.bf16.msra.mxu1 %v4238_v31  ;;  %v1997_v31 = vld [vmem:[#allocation5 + $0x3d0] sm:$0xff]  ;;  %4279 = vmatpush1.bf16.msra.mxu0 %v4278_v23 }
 0x36c   : > { %4241 = vmatprep.subr.bf16.mxu1 %v4240_v47  ;;  %v3070_v47 = vld [vmem:[#allocation7 + $0x208] sm:$0xff]  ;;  %v4250_v11 = vpack.c.bf16 %v2001_v5, %v1997_v31  ;;  %v3040_v5 = vld [vmem:[#allocation7 + $0x118] sm:$0xff] }
 0x36d   : > { %v6064_v12 = vpack.c.bf16 %v3072_v28, %v3070_v47  ;;  %v3038_v31 = vld [vmem:[#allocation7 + $0x108] sm:$0xff]  ;;  %v3037_v47 = vld [vmem:[#allocation7 + $0x100] sm:$0xff] }
 0x36e   : > { %v6060_v22 = vpop.f32.mrb[108].mxu0  ;;  %v3078_v28 = vld [vmem:[#allocation7 + $0x248] sm:$0xff] }
 0x36f   : > { %7183 = vst [vmem:[#allocation89_spill] sm:$0xff] %v6060_v22  ;;  %4243 = vmatpush1.bf16.msra.mxu1 %v4242_v17  ;;  %v6062_v39 = vpop.f32.mrb[109].mxu0  ;;  %v3034_v17 = vld [vmem:[#allocation7 + $0xe8] sm:$0xff] }
 0x370   : > { %7184 = vst [vmem:[#allocation90_spill] sm:$0xff] %v6062_v39  ;;  %4245 = vmatprep.subr.bf16.mxu1 %v4244_v13  ;;  %v3074_v22 = vld [vmem:[#allocation7 + $0x228] sm:$0xff]  ;;  %v4280_v1 = vpack.c.bf16 %v3036_v32, %v3034_v17  ;;  %v3035_v13 = vld [vmem:[#allocation7 + $0xf0] sm:$0xff]  ;;  %v3080_v17 = vld [vmem:[#allocation7 + $0x258] sm:$0xff]  ;;  %v4284_v32 = vpack.c.bf16 %v3040_v5, %v3038_v31 }
 0x371   : > { %v4282_v23 = vpack.c.bf16 %v3035_v13, %v3033_v16  ;;  %v3041_v16 = vld [vmem:[#allocation7 + $0x120] sm:$0xff]  ;;  %v3043_v13 = vld [vmem:[#allocation7 + $0x130] sm:$0xff]  ;;  %v3048_v5 = vld [vmem:[#allocation7 + $0x158] sm:$0xff] }
 0x372   : > { %4281 = vmatprep.subr.bf16.mxu0 %v4280_v1  ;;  %v3079_v31 = vld [vmem:[#allocation7 + $0x250] sm:$0xff]  ;;  %v7188_v39 = vld [vmem:[#allocation23_spill] sm:$0xff] }
 0x373   : > { %4247 = vmatpush1.bf16.msra.mxu1 %v4246_v56  ;;  %v3075_v56 = vld [vmem:[#allocation7 + $0x230] sm:$0xff]  ;;  %4283 = vmatpush1.bf16.msra.mxu0 %v4282_v23  ;;  %v6081_v23 = vpack.c.bf16 %v3080_v17, %v3078_v28  ;;  %v3050_v17 = vld [vmem:[#allocation7 + $0x168] sm:$0xff] }
 0x374   : > { %4249 = vmatprep.subr.bf16.mxu1 %v4248_v54  ;;  %v6073_v54 = vpack.c.bf16 %v3076_v15, %v3074_v22  ;;  %v6078_v1 = vpack.c.bf16 %v3075_v56, %v3073_v57  ;;  %v3077_v22 = vld [vmem:[#allocation7 + $0x240] sm:$0xff]  ;;  %4285 = vmatprep.subr.bf16.mxu0 %v4284_v32  ;;  %v3052_v32 = vld [vmem:[#allocation7 + $0x178] sm:$0xff] }
 0x375   : > { %v3045_v56 = vld [vmem:[#allocation7 + $0x140] sm:$0xff]  ;;  %v6086_v28 = vpack.c.bf16 %v3079_v31, %v3077_v22  ;;  %v4296_v22 = vpack.c.bf16 %v3052_v32, %v3050_v17  ;;  %v3091_v17 = vld [vmem:[#allocation7 + $0x2b0] sm:$0xff]  ;;  %v7194_v32 = vld [vmem:[#allocation27_spill] sm:$0xff] }
 0x376   : > { %v6066_v40 = vpop.f32.mrb[110].mxu0 }
 0x377   : > { %7185 = vst [vmem:[#allocation91_spill] sm:$0xff] %v6066_v40  ;;  %4251 = vmatpush1.bf16.msra.mxu1 %v4250_v11  ;;  %v6068_v30 = vpop.f32.mrb[111].mxu0  ;;  %v3039_v11 = vld [vmem:[#allocation7 + $0x110] sm:$0xff]  ;;  %v3044_v40 = vld [vmem:[#allocation7 + $0x138] sm:$0xff] }
 0x378   : > { %7186 = vst [vmem:[#allocation92_spill] sm:$0xff] %v6068_v30  ;;  %4380 = vmatprep.subr.bf16.mxu1 %v6064_v12  ;;  %v4286_v53 = vpack.c.bf16 %v3039_v11, %v3037_v47  ;;  %v7187_v30 = vld [vmem:[#allocation22_spill] sm:$0xff]  ;;  %v4288_v15 = vpack.c.bf16 %v3044_v40, %v3042_v27  ;;  %v3082_v47 = vld [vmem:[#allocation7 + $0x268] sm:$0xff]  ;;  %v3084_v11 = vld [vmem:[#allocation7 + $0x278] sm:$0xff] }
 0x379   : > { %v3047_v40 = vld [vmem:[#allocation7 + $0x150] sm:$0xff] }
 0x37a   : > { %2325 = vmatmul.mubr.f32.vlgmr.msra.gmra.mrb[4].mxu1 %v5631_v34  ;;  %v3046_v34 = vld [vmem:[#allocation7 + $0x148] sm:$0xff]  ;;  %4287 = vmatpush1.bf16.msra.mxu0 %v4286_v53  ;;  %v7189_v27 = vld [vmem:[#allocation24_spill] sm:$0xff]  ;;  %v6091_v53 = vpack.c.bf16 %v3084_v11, %v3082_v47  ;;  %v3085_v11 = vld [vmem:[#allocation7 + $0x280] sm:$0xff] }
 0x37b   : > { %2330 = vmatprep.mubr.f32.mxu1 %v7187_v30  ;;  %4396 = vmatpush1.bf16.msra.mxu1 %v6070_v20  ;;  %v4290_v30 = vpack.c.bf16 %v3043_v13, %v3041_v16  ;;  %v4292_v57 = vpack.c.bf16 %v3048_v5, %v3046_v34  ;;  %v3081_v16 = vld [vmem:[#allocation7 + $0x260] sm:$0xff]  ;;  %v3086_v13 = vld [vmem:[#allocation7 + $0x288] sm:$0xff]  ;;  %v3088_v34 = vld [vmem:[#allocation7 + $0x298] sm:$0xff]  ;;  %v4294_v5 = vpack.c.bf16 %v3047_v40, %v3045_v56 }
 0x37c   : > { %4381 = vmatprep.subr.bf16.mxu1 %v6073_v54  ;;  %4289 = vmatprep.subr.bf16.mxu0 %v4288_v15  ;;  %v6101_v47 = vpack.c.bf16 %v3088_v34, %v3086_v13  ;;  %v7193_v56 = vld [vmem:[#allocation26_spill] sm:$0xff]  ;;  %v3051_v13 = vld [vmem:[#allocation7 + $0x170] sm:$0xff] }
 0x37d   : > { %v3089_v40 = vld [vmem:[#allocation7 + $0x2a0] sm:$0xff]  ;;  %v7196_v34 = vld [vmem:[#allocation28_spill] sm:$0xff] }
 0x37e   : > { %2331 = vmatmul.mubr.f32.gmra.mrb[6].mxu1 %v7188_v39  ;;  %v3083_v39 = vld [vmem:[#allocation7 + $0x270] sm:$0xff]  ;;  %4291 = vmatpush1.bf16.msra.mxu0 %v4290_v30  ;;  %v3092_v30 = vld [vmem:[#allocation7 + $0x2b8] sm:$0xff] }
 0x37f   : > { %2336 = vmatprep.mubr.f32.mxu1 %v7189_v27  ;;  %4397 = vmatpush1.bf16.msra.mxu1 %v6078_v1  ;;  %v7192_v27 = vld [vmem:[#allocation25_spill] sm:$0xff]  ;;  %v6098_v31 = vpack.c.bf16 %v3083_v39, %v3081_v16  ;;  %v3049_v39 = vld [vmem:[#allocation7 + $0x160] sm:$0xff] }
 0x380   : > { %v6088_v25 = vpop.f32.mrb[112].mxu0  ;;  %4382 = vmatprep.subr.bf16.mxu1 %v6081_v23  ;;  %4293 = vmatprep.subr.bf16.mxu0 %v4292_v57 }
 0x381   : > { %7190 = vst [vmem:[#allocation22_spill] sm:$0xff] %v6088_v25  ;;  %v6093_v15 = vpop.f32.mrb[113].mxu0  ;;  %v3087_v25 = vld [vmem:[#allocation7 + $0x290] sm:$0xff] }
 0x382   : > { %7191 = vst [vmem:[#allocation23_spill] sm:$0xff] %v6093_v15  ;;  %2337 = vmatmul.mubr.f32.gmra.mrb[8].mxu1 %v7192_v27  ;;  %4295 = vmatpush1.bf16.msra.mxu0 %v4294_v5  ;;  %v3090_v15 = vld [vmem:[#allocation7 + $0x2a8] sm:$0xff]  ;;  %v3056_v27 = vld [vmem:[#allocation7 + $0x198] sm:$0xff] }
 0x383   : > { %2342 = vmatprep.mubr.f32.mxu1 %v5654_v52  ;;  %4398 = vmatpush1.bf16.msra.mxu1 %v6086_v28  ;;  %v6106_v52 = vpack.c.bf16 %v3087_v25, %v3085_v11  ;;  %v6109_v57 = vpack.c.bf16 %v3092_v30, %v3090_v15  ;;  %v4298_v25 = vpack.c.bf16 %v3051_v13, %v3049_v39  ;;  %v3054_v15 = vld [vmem:[#allocation7 + $0x188] sm:$0xff]  ;;  %v3053_v30 = vld [vmem:[#allocation7 + $0x180] sm:$0xff] }
 0x384   : > { %4383 = vmatprep.subr.bf16.mxu1 %v6091_v53  ;;  %4297 = vmatprep.subr.bf16.mxu0 %v4296_v22  ;;  %v7199_v22 = vld [vmem:[#allocation29_spill] sm:$0xff]  ;;  %v4300_v11 = vpack.c.bf16 %v3056_v27, %v3054_v15  ;;  %v7202_v39 = vld [vmem:[#allocation31_spill] sm:$0xff]  ;;  %v3059_v15 = vld [vmem:[#allocation7 + $0x1b0] sm:$0xff] }
 0x386   : > { %2343 = vmatmul.mubr.f32.gmra.mrb[10].mxu1 %v7193_v56  ;;  %4299 = vmatpush1.bf16.msra.mxu0 %v4298_v25  ;;  %v3055_v56 = vld [vmem:[#allocation7 + $0x190] sm:$0xff] }
 0x387   : > { %2348 = vmatprep.mubr.f32.mxu1 %v5662_v35  ;;  %4399 = vmatpush1.bf16.msra.mxu1 %v6098_v31  ;;  %v6118_v35 = vpack.c.bf16 %v3091_v17, %v3089_v40  ;;  %v3058_v40 = vld [vmem:[#allocation7 + $0x1a8] sm:$0xff]  ;;  %v3060_v17 = vld [vmem:[#allocation7 + $0x1b8] sm:$0xff] }
 0x388   : > { %4384 = vmatprep.subr.bf16.mxu1 %v6101_v47  ;;  %4301 = vmatprep.subr.bf16.mxu0 %v4300_v11  ;;  %v4304_v25 = vpack.c.bf16 %v3060_v17, %v3058_v40  ;;  %v7204_v11 = vld [vmem:[#allocation32_spill] sm:$0xff] }
 0x389   : > { %7198 = vst [vmem:[#allocation26_spill] sm:$0xff] %v6118_v35 }
 0x38a   : > { %2349 = vmatmul.mubr.f32.gmra.mrb[12].mxu1 %v7194_v32  ;;  %v6112_v16 = vpop.f32.mrb[114].mxu0  ;;  %v7200_v32 = vld [vmem:[#allocation30_spill] sm:$0xff] }
 0x38b   : > { %7195 = vst [vmem:[#allocation24_spill] sm:$0xff] %v6112_v16  ;;  %2354 = vmatprep.mubr.f32.mxu1 %v7196_v34  ;;  %v6115_v5 = vpop.f32.mrb[115].mxu0  ;;  %4400 = vmatpush1.bf16.msra.mxu1 %v6106_v52  ;;  %v4302_v34 = vpack.c.bf16 %v3055_v56, %v3053_v30  ;;  %v3064_v30 = vld [vmem:[#allocation7 + $0x1d8] sm:$0xff] }
 0x38c   : > { %7197 = vst [vmem:[#allocation25_spill] sm:$0xff] %v6115_v5  ;;  %4385 = vmatprep.subr.bf16.mxu1 %v6109_v57  ;;  %v3096_v5 = vld [vmem:[#allocation7 + $0x2d8] sm:$0xff] }
 0x38d   : > { %4303 = vmatpush1.bf16.msra.mxu0 %v4302_v34  ;;  %v3061_v34 = vld [vmem:[#allocation7 + $0x1c0] sm:$0xff] }
 0x38e   : > { %2355 = vmatmul.mubr.f32.gmra.mrb[14].mxu1 %v7199_v22  ;;  %v3057_v22 = vld [vmem:[#allocation7 + $0x1a0] sm:$0xff]  ;;  %4305 = vmatprep.subr.bf16.mxu0 %v4304_v25  ;;  %v3100_v25 = vld [vmem:[#allocation7 + $0x2f8] sm:$0xff] }
 0x38f   : > { %2360 = vmatprep.mubr.f32.mxu1 %v7200_v32  ;;  %4401 = vmatpush1.bf16.msra.mxu1 %v6118_v35  ;;  %v4306_v27 = vpack.c.bf16 %v3059_v15, %v3057_v22  ;;  %v3062_v32 = vld [vmem:[#allocation7 + $0x1c8] sm:$0xff]  ;;  %v3095_v35 = vld [vmem:[#allocation7 + $0x2d0] sm:$0xff] }
 0x390   : > { %v4308_v56 = vpack.c.bf16 %v3064_v30, %v3062_v32  ;;  %v3068_v32 = vld [vmem:[#allocation7 + $0x1f8] sm:$0xff]  ;;  %v3097_v30 = vld [vmem:[#allocation7 + $0x2e0] sm:$0xff] }
 0x391   : > { %v6124_v16 = vpop.f32.mrb[116].mxu0  ;;  %4307 = vmatpush1.bf16.msra.mxu0 %v4306_v27  ;;  %v3066_v27 = vld [vmem:[#allocation7 + $0x1e8] sm:$0xff] }
 0x392   : > { %7201 = vst [vmem:[#allocation27_spill] sm:$0xff] %v6124_v16  ;;  %2361 = vmatmul.mubr.f32.gmra.mrb[16].mxu1 %v7202_v39  ;;  %v6127_v13 = vpop.f32.mrb[117].mxu0  ;;  %v3063_v16 = vld [vmem:[#allocation7 + $0x1d0] sm:$0xff]  ;;  %v3094_v39 = vld [vmem:[#allocation7 + $0x2c8] sm:$0xff]  ;;  %4309 = vmatprep.subr.bf16.mxu0 %v4308_v56 }
 0x393   : > { %7203 = vst [vmem:[#allocation28_spill] sm:$0xff] %v6127_v13  ;;  %2366 = vmatprep.mubr.f32.mxu1 %v5686_v60  ;;  %v3093_v13 = vld [vmem:[#allocation7 + $0x2c0] sm:$0xff]  ;;  %v4310_v40 = vpack.c.bf16 %v3063_v16, %v3061_v34  ;;  %v6132_v17 = vpack.c.bf16 %v3096_v5, %v3094_v39  ;;  %v3098_v60 = vld [vmem:[#allocation7 + $0x2e8] sm:$0xff]  ;;  %v3099_v16 = vld [vmem:[#allocation7 + $0x2f0] sm:$0xff] }
 0x394   : > { %v6134_v22 = vpack.c.bf16 %v3095_v35, %v3093_v13  ;;  %v6136_v15 = vpack.c.bf16 %v3100_v25, %v3098_v60  ;;  %v3065_v5 = vld [vmem:[#allocation7 + $0x1e0] sm:$0xff]  ;;  %v3067_v34 = vld [vmem:[#allocation7 + $0x1f0] sm:$0xff]  ;;  %v6144_v35 = vpack.c.bf16 %v3099_v16, %v3097_v30  ;;  %v3104_v60 = vld [vmem:[#allocation7 + $0x318] sm:$0xff] }
 0x395   : > { %4311 = vmatpush1.bf16.msra.mxu0 %v4310_v40  ;;  %4386 = vmatprep.subr.bf16.mxu1 %v6132_v17  ;;  %v4314_v13 = vpack.c.bf16 %v3067_v34, %v3065_v5  ;;  %v7206_v40 = vld [vmem:[#allocation34_spill] sm:$0xff]  ;;  %v7207_v25 = vld [vmem:[#allocation35_spill] sm:$0xff]  ;;  %v7210_v16 = vld [vmem:[#allocation37_spill] sm:$0xff] }
 0x396   : > { %2367 = vmatmul.mubr.f32.gmra.mrb[18].mxu1 %v7204_v11  ;;  %v7205_v11 = vld [vmem:[#allocation33_spill] sm:$0xff]  ;;  %v3106_v5 = vld [vmem:[#allocation7 + $0x328] sm:$0xff] }
 0x397   : > { %2372 = vmatprep.mubr.f32.mxu1 %v5694_v51  ;;  %v4312_v51 = vpack.c.bf16 %v3068_v32, %v3066_v27  ;;  %4402 = vmatpush1.bf16.msra.mxu1 %v6134_v22  ;;  %v3108_v34 = vld [vmem:[#allocation7 + $0x338] sm:$0xff] }
 0x398   : > { %4387 = vmatprep.subr.bf16.mxu1 %v6136_v15 }
 0x399   : > { %4313 = vmatprep.subr.bf16.mxu0 %v4312_v51 }
 0x39a   : > { %2373 = vmatmul.mubr.f32.gmra.mrb[20].mxu1 %v7205_v11  ;;  %4315 = vmatpush1.bf16.msra.mxu0 %v4314_v13  ;;  %v3101_v11 = vld [vmem:[#allocation7 + $0x300] sm:$0xff] }
 0x39b   : > { %2378 = vmatprep.mubr.f32.mxu1 %v5702_v63  ;;  %v6141_v56 = vpop.f32.mrb[118].mxu0  ;;  %4317 = vmatprep.subr.bf16.mxu0 %v6064_v12  ;;  %v3102_v63 = vld [vmem:[#allocation7 + $0x308] sm:$0xff]  ;;  %v3103_v12 = vld [vmem:[#allocation7 + $0x310] sm:$0xff]  ;;  %v7212_v13 = vld [vmem:[#allocation38_spill] sm:$0xff] }
 0x39c   : > { %v6146_v39 = vpop.f32.mrb[119].mxu0  ;;  %4403 = vmatpush1.bf16.msra.mxu1 %v6144_v35  ;;  %v6154_v27 = vpack.c.bf16 %v3104_v60, %v3102_v63  ;;  %v6162_v51 = vpack.c.bf16 %v3103_v12, %v3101_v11  ;;  %v3107_v63 = vld [vmem:[#allocation7 + $0x330] sm:$0xff]  ;;  %v3112_v12 = vld [vmem:[#allocation7 + $0x358] sm:$0xff] }
 0x39e   : > { %2379 = vmatmul.mubr.f32.gmra.mrb[22].mxu1 %v7206_v40  ;;  %4388 = vmatprep.subr.bf16.mxu1 %v6154_v27  ;;  %7208 = vst [vmem:[#allocation29_spill] sm:$0xff] %v6162_v51  ;;  %v3105_v40 = vld [vmem:[#allocation7 + $0x320] sm:$0xff] }
 0x39f   : > { %2384 = vmatprep.mubr.f32.mxu1 %v5710_v0  ;;  %v7209_v0 = vld [vmem:[#allocation36_spill] sm:$0xff] }
 0x3a0   : > { %4404 = vmatpush1.bf16.msra.mxu1 %v6162_v51 }
 0x3a2   : > { %2385 = vmatmul.mubr.f32.gmra.mrb[24].mxu1 %v7207_v25  ;;  %v6174_v25 = vpack.c.bf16 %v3107_v63, %v3105_v40  ;;  %v7221_v40 = vld [vmem:[#allocation39_spill] sm:$0xff]  ;;  %v3113_v63 = vld [vmem:[#allocation7 + $0x360] sm:$0xff] }
 0x3a3   : > { %2390 = vmatprep.mubr.f32.mxu1 %v5718_v38  ;;  %v6157_v32 = vpop.f32.mrb[120].mxu0  ;;  %v6168_v38 = vpack.c.bf16 %v3108_v34, %v3106_v5  ;;  %v3111_v5 = vld [vmem:[#allocation7 + $0x350] sm:$0xff] }
 0x3a4   : > { %v6159_v30 = vpop.f32.mrb[121].mxu0  ;;  %7214 = vst [vmem:[#allocation32_spill] sm:$0xff] %v6174_v25 }
 0x3a5   : > { %7211 = vst [vmem:[#allocation30_spill] sm:$0xff] %v6168_v38  ;;  %4389 = vmatprep.subr.bf16.mxu1 %v6168_v38 }
 0x3a6   : > { %2391 = vmatmul.mubr.f32.gmra.mrb[26].mxu1 %v7209_v0 }
 0x3a7   : > { %2396 = vmatprep.mubr.f32.mxu1 %v7210_v16  ;;  %4405 = vmatpush1.bf16.msra.mxu1 %v6174_v25  ;;  %v3109_v16 = vld [vmem:[#allocation7 + $0x340] sm:$0xff]  ;;  %v3123_v25 = vld [vmem:[#allocation7 + $0x3b0] sm:$0xff] }
 0x3a8   : > { %v6186_v34 = vpack.c.bf16 %v3111_v5, %v3109_v16  ;;  %v7225_v16 = vld [vmem:[#allocation41_spill] sm:$0xff] }
 0x3aa   : > { %2397 = vmatmul.mubr.f32.gmra.mrb[28].mxu1 %v5731_v55  ;;  %v3110_v55 = vld [vmem:[#allocation7 + $0x348] sm:$0xff]  ;;  %7217 = vst [vmem:[#allocation35_spill] sm:$0xff] %v6186_v34 }
 0x3ab   : > { %2402 = vmatprep.mubr.f32.mxu1 %v7212_v13  ;;  %v6182_v0 = vpack.c.bf16 %v3112_v12, %v3110_v55  ;;  %v3116_v13 = vld [vmem:[#allocation7 + $0x378] sm:$0xff] }
 0x3ad   : > { %v6172_v60 = vpop.f32.mrb[122].mxu0  ;;  %7216 = vst [vmem:[#allocation34_spill] sm:$0xff] %v6182_v0  ;;  %4390 = vmatprep.subr.bf16.mxu1 %v6182_v0  ;;  %v3121_v0 = vld [vmem:[#allocation7 + $0x3a0] sm:$0xff] }
 0x3ae   : > { %7213 = vst [vmem:[#allocation31_spill] sm:$0xff] %v6172_v60  ;;  %2403 = vmatmul.mubr.f32.gmra.mrb[30].mxu1 %v5739_v10  ;;  %v6177_v11 = vpop.f32.mrb[123].mxu0  ;;  %v3128_v60 = vld [vmem:[#allocation7 + $0x3d8] sm:$0xff] }
 0x3af   : > { %7215 = vst [vmem:[#allocation33_spill] sm:$0xff] %v6177_v11  ;;  %2408 = vmatprep.mubr.f32.mxu1 %v5743_v24  ;;  %4406 = vmatpush1.bf16.msra.mxu1 %v6186_v34  ;;  %v7231_v34 = vld [vmem:[#allocation44_spill] sm:$0xff]  ;;  %v3125_v11 = vld [vmem:[#allocation7 + $0x3c0] sm:$0xff] }
 0x3b2   : > { %2409 = vmatmul.mubr.f32.gmra.mrb[32].mxu1 %v5746_v26  ;;  %v3114_v26 = vld [vmem:[#allocation7 + $0x368] sm:$0xff] }
 0x3b3   : > { %2414 = vmatprep.mubr.f32.mxu1 %v5751_v2  ;;  %v6196_v2 = vpack.c.bf16 %v3116_v13, %v3114_v26  ;;  %v3120_v26 = vld [vmem:[#allocation7 + $0x398] sm:$0xff]  ;;  %v7227_v13 = vld [vmem:[#allocation42_spill] sm:$0xff] }
 0x3b5   : > { %7220 = vst [vmem:[#allocation38_spill] sm:$0xff] %v6196_v2  ;;  %4391 = vmatprep.subr.bf16.mxu1 %v6196_v2  ;;  %v7229_v2 = vld [vmem:[#allocation43_spill] sm:$0xff] }
 0x3b6   : > { %2415 = vmatmul.mubr.f32.gmra.mrb[34].mxu1 %v5754_v50  ;;  %v3115_v50 = vld [vmem:[#allocation7 + $0x370] sm:$0xff] }
 0x3b7   : > { %2420 = vmatprep.mubr.f32.mxu1 %v5759_v29  ;;  %v6190_v10 = vpop.f32.mrb[124].mxu0  ;;  %v6200_v55 = vpack.c.bf16 %v3115_v50, %v3113_v63  ;;  %v7223_v29 = vld [vmem:[#allocation40_spill] sm:$0xff]  ;;  %v3117_v63 = vld [vmem:[#allocation7 + $0x380] sm:$0xff] }
 0x3b8   : > { %7218 = vst [vmem:[#allocation36_spill] sm:$0xff] %v6190_v10  ;;  %v6193_v24 = vpop.f32.mrb[125].mxu0  ;;  %v3119_v50 = vld [vmem:[#allocation7 + $0x390] sm:$0xff]  ;;  %v7239_v10 = vld [vmem:[#allocation49_spill] sm:$0xff] }
 0x3b9   : > { %7219 = vst [vmem:[#allocation37_spill] sm:$0xff] %v6193_v24  ;;  %7222 = vst [vmem:[#allocation39_spill] sm:$0xff] %v6200_v55  ;;  %4407 = vmatpush1.bf16.msra.mxu1 %v6200_v55  ;;  %v6221_v55 = vld [vmem:[%s7009_s7] sm:$0xf]  ;;  %v7241_v24 = vld [vmem:[#allocation51_spill] sm:$0xff] }
 0x3ba   : > { %2421 = vmatmul.mubr.f32.gmra.mrb[36].mxu1 %v5762_v49  ;;  %v3118_v49 = vld [vmem:[#allocation7 + $0x388] sm:$0xff] }
 0x3bb   : > { %2426 = vmatprep.mubr.f32.mxu1 %v7221_v40  ;;  %v6210_v40 = vpack.c.bf16 %v3120_v26, %v3118_v49  ;;  %v3122_v49 = vld [vmem:[#allocation7 + $0x3a8] sm:$0xff]  ;;  %v3124_v26 = vld [vmem:[#allocation7 + $0x3b8] sm:$0xff] }
 0x3bd   : > { %7228 = vst [vmem:[#allocation42_spill] sm:$0xff] %v6210_v40  ;;  %4392 = vmatprep.subr.bf16.mxu1 %v6210_v40 }
 0x3be   : > { %2427 = vmatmul.mubr.f32.gmra.mrb[38].mxu1 %v7223_v29  ;;  %v6203_v12 = vpop.f32.mrb[126].mxu0  ;;  %v6214_v29 = vpack.c.bf16 %v3119_v50, %v3117_v63  ;;  %v6227_v63 = vpack.c.bf16 %v3124_v26, %v3122_v49  ;;  %v7236_v50 = vld [vmem:[#allocation47_spill] sm:$0xff] }
 0x3bf   : > { %7224 = vst [vmem:[#allocation40_spill] sm:$0xff] %v6203_v12  ;;  %2432 = vmatprep.mubr.f32.mxu1 %v7225_v16  ;;  %v6206_v5 = vpop.f32.mrb[127].mxu0  ;;  %v7232_v16 = vld [vmem:[#allocation45_spill] sm:$0xff]  ;;  %v7238_v12 = vld [vmem:[#allocation48_spill] sm:$0xff] }
 0x3c0   : > { %7226 = vst [vmem:[#allocation41_spill] sm:$0xff] %v6206_v5  ;;  %7230 = vst [vmem:[#allocation43_spill] sm:$0xff] %v6214_v29  ;;  %4408 = vmatpush1.bf16.msra.mxu1 %v6214_v29  ;;  %v6233_v29 = vpack.c.bf16 %v3123_v25, %v3121_v0  ;;  %v7242_v25 = vld [vmem:[#allocation52_spill] sm:$0xff] }
 0x3c1   : > { %7235 = vst [vmem:[#allocation44_spill] sm:$0xff] %v6227_v63  ;;  %4393 = vmatprep.subr.bf16.mxu1 %v6227_v63  ;;  %v3126_v63 = vld [vmem:[#allocation7 + $0x3c8] sm:$0xff]  ;;  %v3127_v0 = vld [vmem:[#allocation7 + $0x3d0] sm:$0xff] }
 0x3c2   : > { %2433 = vmatmul.mubr.f32.gmra.mrb[40].mxu1 %v7227_v13  ;;  %v7234_v13 = vld [vmem:[#allocation19_spill] sm:$0xff] }
 0x3c3   : > { %2438 = vmatprep.mubr.f32.mxu1 %v7229_v2  ;;  %v7233_v2 = vld [vmem:[#allocation46_spill] sm:$0xff]  ;;  %v1677_v40 = vrot.slane %v6221_v55, %v7234_v13 }
 0x3c4   : > { %4409 = vmatpush1.bf16.msra.mxu1 %v6233_v29 }
 0x3c6   : > { %2439 = vmatmul.mubr.f32.gmra.mrb[42].mxu1 %v7231_v34  ;;  %v7237_v34 = vld [vmem:[#allocation20_spill] sm:$0xff] }
 0x3c7   : > { %2444 = vmatprep.mubr.f32.mxu1 %v7232_v16  ;;  %v1681_v16 = vrot.slane %v6221_v55, %v7237_v34 }
 0x3ca   : > { %2445 = vmatmul.mubr.f32.gmra.mrb[44].mxu1 %v7233_v2 }
 0x3cb   : > { %2450 = vmatprep.mubr.f32.mxu1 %v7236_v50  ;;  %v7240_v50 = vld [vmem:[#allocation50_spill] sm:$0xff] }
 0x3cd   : > { %v1799_v38 = vpop.f32.mrb[0].mxu1 }
 0x3ce   : > { %v1800_v51 = vadd.f32 %v1799_v38, %v1677_v40  ;;  %2451 = vmatmul.mubr.f32.gmra.mrb[46].mxu1 %v7238_v12  ;;  %v1801_v2 = vpop.f32.mrb[1].mxu1  ;;  %v6241_v38 = vpack.c.bf16 %v3128_v60, %v3126_v63  ;;  %v7244_v12 = vld [vmem:[#allocation53_spill] sm:$0xff]  ;;  %v6244_v40 = vpack.c.bf16 %v3127_v0, %v3125_v11  ;;  %v3131_v63 = vld [vmem:[#allocation7 + $0x3f0] sm:$0xff]  ;;  %v7253_v0 = vld [vmem:[#allocation59_spill] sm:$0xff] }
 0x3cf   : > { %v1802_v5 = vadd.f32 %v1801_v2, %v1681_v16  ;;  %2456 = vmatprep.mubr.f32.mxu1 %v7239_v10  ;;  %v7247_v10 = vld [vmem:[#allocation55_spill] sm:$0xff]  ;;  %v3129_v16 = vld [vmem:[#allocation7 + $0x3e0] sm:$0xff]  ;;  %v7248_v2 = vld [vmem:[#allocation56_spill] sm:$0xff] }
 0x3d0   : > { %7243 = vst [vmem:[#allocation45_spill] sm:$0xff] %v6241_v38  ;;  %7245 = vst [vmem:[#allocation46_spill] sm:$0xff] %v6244_v40  ;;  %4394 = vmatprep.subr.bf16.mxu1 %v6241_v38  ;;  %v6254_v11 = vpack.c.bf16 %v3131_v63, %v3129_v16 }
 0x3d1   : > { %v2521_v49 = vcombine.low %v1800_v51, %v1802_v5  ;;  %v2522_v26 = vcombine.high %v1800_v51, %v1802_v5  ;;  %4410 = vmatpush1.bf16.msra.mxu1 %v6244_v40  ;;  %v7246_v51 = vld [vmem:[#allocation54_spill] sm:$0xff]  ;;  %v3132_v5 = vld [vmem:[#allocation7 + $0x3f8] sm:$0xff] }
 0x3d2   : > { %2457 = vmatmul.mubr.f32.gmra.mrb[48].mxu1 %v7240_v50  ;;  %v7250_v50 = vld [vmem:[#allocation57_spill] sm:$0xff]  ;;  %7251 = vst [vmem:[#allocation47_spill] sm:$0xff] %v6254_v11 }
 0x3d3   : > { %2462 = vmatprep.mubr.f32.mxu1 %v7241_v24  ;;  %v3130_v24 = vld [vmem:[#allocation7 + $0x3e8] sm:$0xff] }
 0x3d4   : > { %v6251_v60 = vpack.c.bf16 %v3132_v5, %v3130_v24  ;;  %v7255_v24 = vld [vmem:[#allocation18_spill] sm:$0xff] }
 0x3d5   : > { %v6270_v5 = vsub.s32 3, %v7255_v24 }
 0x3d6   : > { %2463 = vmatmul.mubr.f32.gmra.mrb[50].mxu1 %v7242_v25  ;;  %7249 = vst [vmem:[#allocation19_spill] sm:$0xff] %v6251_v60  ;;  %4395 = vmatprep.subr.bf16.mxu1 %v6251_v60  ;;  %v7252_v25 = vld [vmem:[#allocation58_spill] sm:$0xff] }
 0x3d7   : > { %2468 = vmatprep.mubr.f32.mxu1 %v7244_v12  ;;  %4411 = vmatpush1.bf16.msra.mxu1 %v6254_v11  ;;  %v7254_v12 = vld [vmem:[#allocation60_spill] sm:$0xff] }
 0x3da   : > { %2469 = vmatmul.mubr.f32.gmra.mrb[52].mxu1 %v7246_v51  ;;  %v4854_v51 = vmov 1966171168  }
 0x3db   : > { %2474 = vmatprep.mubr.f32.mxu1 %v7247_v10  ;;  %v2526_v10 = vunpack.c.l.s4 %v4854_v51 }
 0x3dd   : > { %v2527_v16 = vunpack.c.0.s8 %v2526_v10 }
 0x3de   : > { %2475 = vmatmul.mubr.f32.gmra.mrb[54].mxu1 %v7248_v2 }
 0x3df   : > { %2480 = vmatprep.mubr.f32.mxu1 %v7250_v50 }
 0x3e2   : > { %2481 = vmatmul.mubr.f32.gmra.mrb[56].mxu1 %v7252_v25 }
 0x3e3   : > { %2486 = vmatprep.mubr.f32.mxu1 %v7253_v0 }
 0x3e6   : > { %2487 = vmatmul.mubr.f32.gmra.mrb[58].mxu1 %v7254_v12 }
 0x3e7   : > { %2492 = vmatprep.mubr.f32.mxu1 %v5873_v48  ;;  %v7256_v48 = vld [vmem:[#allocation21_spill] sm:$0xff] }
 0x3ea   : > { %2493 = vmatmul.mubr.f32.gmra.mrb[60].mxu1 %v5876_v46  ;;  %v1685_v46 = vrot.slane %v6221_v55, %v7256_v48 }
 0x3eb   : > { %2498 = vmatprep.mubr.f32.mxu1 %v5905_v33 }
 0x3ee   : > { %2499 = vmatmul.mubr.f32.gmra.mrb[62].mxu1 %v5912_v43  ;;  %v1689_v43 = vrot.slane %v6221_v55, %v6270_v5 }
 0x3ef   : > { %2504 = vmatprep.mubr.f32.mxu1 %v5927_v62 }
 0x3f2   : > { %2505 = vmatmul.mubr.f32.gmra.mrb[64].mxu1 %v5930_v59  ;;  %v6277_v59 = vsub.s32 %v2527_v16, %v7255_v24 }
 0x3f3   : > { %2510 = vmatprep.mubr.f32.mxu1 %v5946_v45 }
 0x3f4   : > { %v2531_v50 = vrot.slane %v2521_v49, %v6277_v59  ;;  %v6281_v25 = vrot.slane %v2522_v26, %v6277_v59 }
 0x3f6   : > { %2511 = vmatmul.mubr.f32.gmra.mrb[66].mxu1 %v5942_v36 }
 0x40d   : > { %v1870_v33 = vpop.f32.mrb[2].mxu1 }
 0x40e   : > { %v1871_v62 = vadd.f32 %v1870_v33, %v1685_v46  ;;  %v1872_v2 = vpop.f32.mrb[3].mxu1 }
 0x40f   : > { %v1873_v45 = vadd.f32 %v1872_v2, %v1689_v43  ;;  %v7257_v2 = vld [vmem:[#allocation61_spill] sm:$0xff] }
 0x411   : > { %v2523_v36 = vcombine.low %v1871_v62, %v1873_v45  ;;  %v2524_v63 = vcombine.high %v1871_v62, %v1873_v45 }
 0x413   : > { %v2545_v0 = vrot.slane %v2523_v36, %v6277_v59  ;;  %v6285_v12 = vrot.slane %v2524_v63, %v6277_v59  ;;  %v7258_v36 = vld [vmem:[#allocation63_spill] sm:$0xff] }
 0x415   : > { %v2553_v55 = vcombine.low %v2531_v50, %v2545_v0  ;;  %v2554_v51 = vcombine.high %v2531_v50, %v2545_v0  ;;  %v2555_v10 = vcombine.low %v6281_v25, %v6285_v12  ;;  %v7259_v50 = vld [vmem:[#allocation62_spill] sm:$0xff] }
 0x417   : > { %v6292_v46 = vrot.slane %v2553_v55, %v6277_v59  ;;  %v6295_v49 = vrot.slane %v2554_v51, %v6277_v59 }
 0x419   : > { %v2596_v26 = vrot.slane %v6292_v46, %v7237_v34  ;;  %v2592_v16 = vrot.slane %v6292_v46, %v7234_v13  ;;  %v2612_v43 = vrot.slane %v6295_v49, %v7237_v34  ;;  %v2608_v33 = vrot.slane %v6295_v49, %v7234_v13 }
 0x41b   : > { %v2750_v62 = vadd.f32 %v2596_v26, %v5953_v44  ;;  %v2749_v45 = vadd.f32 %v2592_v16, %v7257_v2  ;;  %v2754_v63 = vadd.f32 %v2596_v26, %v7258_v36  ;;  %v2753_v0 = vadd.f32 %v2592_v16, %v7259_v50  ;;  %v7267_v50 = vld [vmem:[#allocation67_spill] sm:$0xff] }
 0x41c   : > { %v2758_v55 = vadd.f32 %v2596_v26, %v5966_v14  ;;  %v2757_v51 = vadd.f32 %v2592_v16, %v5963_v3  ;;  %v2762_v24 = vadd.f32 %v2596_v26, %v5976_v7  ;;  %v2761_v11 = vadd.f32 %v2592_v16, %v5972_v4 }
 0x41d   : > { %v2878_v60 = vmax.f32 %v2750_v62, 0.0  ;;  %v2877_v40 = vmax.f32 %v2749_v45, 0.0  ;;  %v2882_v38 = vmax.f32 %v2754_v63, 0.0  ;;  %v6315_v44 = vcombine.high %v6292_v46, %v6292_v46  ;;  %v7265_v45 = vld [vmem:[#allocation65_spill] sm:$0xff]  ;;  %v7266_v63 = vld [vmem:[#allocation68_spill] sm:$0xff] }
 0x41e   : > { %v6319_v2 = vcombine.high %v6295_v49, %v6295_v49  ;;  %v2766_v14 = vadd.f32 %v2612_v43, %v5988_v8  ;;  %v6323_v3 = vadd.f32 %v2608_v33, %v5986_v41  ;;  %v6326_v7 = vadd.f32 %v2612_v43, %v5992_v21 }
 0x41f   : > { %7260 = vst [vmem:[#allocation20_spill] sm:$0xff] %v6315_v44  ;;  %3209 = vmatprep.mubr.f32.mxu0 %v2878_v60  ;;  %v6329_v4 = vadd.f32 %v2608_v33, %v5990_v58  ;;  %v6332_v26 = vadd.f32 %v2612_v43, %v5996_v61  ;;  %v6335_v16 = vadd.f32 %v2608_v33, %v5994_v6  ;;  %v2881_v41 = vmax.f32 %v2753_v0, 0.0 }
 0x420   : > { %7261 = vst [vmem:[#allocation48_spill] sm:$0xff] %v6319_v2  ;;  %3210 = vmatmul.mubr.f32.vlgmr.msra.gmra.mrb[128].mxu0 %v2877_v40  ;;  %v6338_v60 = vadd.f32 %v2612_v43, %v6000_v9  ;;  %v6341_v8 = vadd.f32 %v2608_v33, %v5998_v42  ;;  %v2886_v58 = vmax.f32 %v2758_v55, 0.0  ;;  %v2628_v21 = vrot.slane %v6315_v44, %v7237_v34  ;;  %v7264_v33 = vld [vmem:[#allocation66_spill] sm:$0xff] }
 0x421   : > { %3215 = vmatprep.mubr.f32.mxu0 %v2882_v38  ;;  %4319 = vmatpush1.bf16.msra.mxu0 %v6070_v20  ;;  %v2624_v6 = vrot.slane %v6315_v44, %v7234_v13  ;;  %v6350_v61 = vrot.slane %v2555_v10, %v6277_v59  ;;  %v2885_v9 = vmax.f32 %v2757_v51, 0.0  ;;  %v2644_v42 = vrot.slane %v6319_v2, %v7237_v34  ;;  %v7263_v10 = vld [vmem:[#allocation64_spill] sm:$0xff]  ;;  %v7268_v51 = vld [vmem:[#allocation70_spill] sm:$0xff] }
 0x422   : > { %4321 = vmatprep.subr.bf16.mxu0 %v6073_v54  ;;  %v2640_v20 = vrot.slane %v6319_v2, %v7234_v13  ;;  %v6357_v54 = vadd.f32 %v2628_v21, %v6004_v19  ;;  %v6363_v40 = vadd.f32 %v2628_v21, %v6008_v37  ;;  %v6369_v62 = vadd.f32 %v2628_v21, %v7264_v33  ;;  %v7273_v33 = vld [vmem:[#allocation73_spill] sm:$0xff] }
 0x423   : > { %7262 = vst [vmem:[#allocation49_spill] sm:$0xff] %v6350_v61  ;;  %v6360_v38 = vadd.f32 %v2624_v6, %v6002_v18  ;;  %v6366_v43 = vadd.f32 %v2624_v6, %v7263_v10  ;;  %v6373_v36 = vadd.f32 %v2624_v6, %v7265_v45  ;;  %v6376_v19 = vadd.f32 %v2628_v21, %v7266_v63  ;;  %v7274_v63 = vld [vmem:[#allocation76_spill] sm:$0xff] }
 0x424   : > { %3216 = vmatmul.mubr.f32.gmra.mrb[130].mxu0 %v2881_v41  ;;  %v6379_v18 = vadd.f32 %v2624_v6, %v7267_v50  ;;  %v2890_v0 = vmax.f32 %v2762_v24, 0.0  ;;  %v2889_v37 = vmax.f32 %v2761_v11, 0.0  ;;  %v2660_v55 = vrot.slane %v6350_v61, %v7237_v34  ;;  %v7270_v6 = vld [vmem:[#allocation72_spill] sm:$0xff]  ;;  %v7271_v24 = vld [vmem:[#allocation71_spill] sm:$0xff]  ;;  %v7272_v11 = vld [vmem:[#allocation74_spill] sm:$0xff] }
 0x425   : > { %3221 = vmatprep.mubr.f32.mxu0 %v2886_v58  ;;  %4323 = vmatpush1.bf16.msra.mxu0 %v6078_v1  ;;  %v2656_v1 = vrot.slane %v6350_v61, %v7234_v13  ;;  %v6387_v41 = vadd.f32 %v2644_v42, %v7268_v51  ;;  %v7269_v58 = vld [vmem:[#allocation69_spill] sm:$0xff]  ;;  %v6393_v10 = vadd.f32 %v2644_v42, %v7270_v6 }
 0x426   : > { %4325 = vmatprep.subr.bf16.mxu0 %v6081_v23  ;;  %v6390_v21 = vadd.f32 %v2640_v20, %v7269_v58  ;;  %v6396_v23 = vadd.f32 %v2640_v20, %v7271_v24  ;;  %v6403_v45 = vadd.f32 %v2640_v20, %v7273_v33  ;;  %v6406_v50 = vadd.f32 %v2644_v42, %v7274_v63 }
 0x427   : > { %v2894_v58 = vmax.f32 %v2766_v14, 0.0  ;;  %v7276_v6 = vcombine.high %v6281_v25, %v6285_v12  ;;  %v2893_v24 = vmax.f32 %v6323_v3, 0.0  ;;  %v7283_v12 = vld [vmem:[#allocation81_spill] sm:$0xff] }
 0x428   : > { %3222 = vmatmul.mubr.f32.gmra.mrb[132].mxu0 %v2885_v9  ;;  %v6400_v9 = vadd.f32 %v2644_v42, %v7272_v11  ;;  %v7278_v11 = vld [vmem:[#allocation78_spill] sm:$0xff]  ;;  %v7279_v42 = vld [vmem:[#allocation77_spill] sm:$0xff]  ;;  %v6436_v3 = vadd.f32 %v2656_v1, %v7283_v12  ;;  %v7289_v12 = vld [vmem:[#allocation88_spill] sm:$0xff] }
 0x429   : > { %3227 = vmatprep.mubr.f32.mxu0 %v2890_v0  ;;  %4327 = vmatpush1.bf16.msra.mxu0 %v6086_v28  ;;  %v7275_v0 = vld [vmem:[#allocation75_spill] sm:$0xff]  ;;  %v6416_v28 = vrot.slane %v7276_v6, %v6277_v59  ;;  %v6420_v33 = vadd.f32 %v2660_v55, %v7278_v11  ;;  %v6423_v63 = vadd.f32 %v2656_v1, %v7279_v42  ;;  %v7282_v59 = vld [vmem:[#allocation82_spill] sm:$0xff]  ;;  %v2898_v42 = vmax.f32 %v6326_v7, 0.0 }
 0x42a   : > { %v6409_v51 = vadd.f32 %v2640_v20, %v7275_v0  ;;  %4329 = vmatprep.subr.bf16.mxu0 %v6091_v53  ;;  %v7280_v20 = vld [vmem:[#allocation80_spill] sm:$0xff]  ;;  %v7281_v53 = vld [vmem:[#allocation79_spill] sm:$0xff]  ;;  %v6433_v25 = vadd.f32 %v2660_v55, %v7282_v59 }
 0x42b   : > { %7277 = vst [vmem:[#allocation50_spill] sm:$0xff] %v6416_v28  ;;  %v6426_v14 = vadd.f32 %v2660_v55, %v7280_v20  ;;  %v6429_v0 = vadd.f32 %v2656_v1, %v7281_v53  ;;  %v7285_v6 = vld [vmem:[#allocation83_spill] sm:$0xff]  ;;  %v2672_v20 = vrot.slane %v6416_v28, %v7234_v13  ;;  %v2897_v53 = vmax.f32 %v6329_v4, 0.0 }
 0x42c   : > { %3228 = vmatmul.mubr.f32.gmra.mrb[134].mxu0 %v2889_v37  ;;  %v7284_v37 = vld [vmem:[#allocation84_spill] sm:$0xff]  ;;  %v6442_v11 = vadd.f32 %v2656_v1, %v7285_v6  ;;  %v6455_v1 = vcombine.high %v6350_v61, %v6350_v61  ;;  %v7290_v4 = vld [vmem:[#allocation87_spill] sm:$0xff] }
 0x42d   : > { %3233 = vmatprep.mubr.f32.mxu0 %v2894_v58  ;;  %4331 = vmatpush1.bf16.msra.mxu0 %v6098_v31  ;;  %v6439_v58 = vadd.f32 %v2660_v55, %v7284_v37  ;;  %v2676_v31 = vrot.slane %v6416_v28, %v7237_v34  ;;  %v2902_v55 = vmax.f32 %v6332_v26, 0.0  ;;  %v6468_v6 = vadd.f32 %v2672_v20, %v7290_v4 }
 0x42e   : > { %4333 = vmatprep.subr.bf16.mxu0 %v6101_v47  ;;  %7286 = vst [vmem:[#allocation51_spill] sm:$0xff] %v6455_v1  ;;  %v7287_v47 = vld [vmem:[#allocation86_spill] sm:$0xff]  ;;  %v2906_v4 = vmax.f32 %v6338_v60, 0.0 }
 0x42f   : > { %v6459_v7 = vadd.f32 %v2676_v31, %v7287_v47  ;;  %v6465_v37 = vadd.f32 %v2676_v31, %v7289_v12  ;;  %v7294_v47 = vld [vmem:[#allocation91_spill] sm:$0xff]  ;;  %v7295_v12 = vld [vmem:[#allocation26_spill] sm:$0xff] }
 0x430   : > { %3234 = vmatmul.mubr.f32.gmra.mrb[136].mxu0 %v2893_v24  ;;  %v7288_v24 = vld [vmem:[#allocation85_spill] sm:$0xff]  ;;  %v6480_v44 = vadd.f32 %v2672_v20, %v7294_v47  ;;  %v7297_v60 = vld [vmem:[#allocation22_spill] sm:$0xff]  ;;  %v7299_v47 = vld [vmem:[#allocation24_spill] sm:$0xff] }
 0x431   : > { %3239 = vmatprep.mubr.f32.mxu0 %v2898_v42  ;;  %4335 = vmatpush1.bf16.msra.mxu0 %v6106_v52  ;;  %v6462_v59 = vadd.f32 %v2672_v20, %v7288_v24  ;;  %v7291_v52 = vld [vmem:[#allocation90_spill] sm:$0xff]  ;;  %v7292_v42 = vld [vmem:[#allocation89_spill] sm:$0xff]  ;;  %v2901_v24 = vmax.f32 %v6335_v16, 0.0  ;;  %v7296_v16 = vld [vmem:[#allocation23_spill] sm:$0xff] }
 0x432   : > { %4337 = vmatprep.subr.bf16.mxu0 %v6109_v57  ;;  %v6471_v26 = vadd.f32 %v2676_v31, %v7291_v52  ;;  %v6474_v61 = vadd.f32 %v2672_v20, %v7292_v42  ;;  %v7293_v57 = vld [vmem:[#allocation92_spill] sm:$0xff]  ;;  %v2688_v52 = vrot.slane %v6455_v1, %v7234_v13  ;;  %v6493_v20 = vcombine.high %v6416_v28, %v6416_v28 }
 0x433   : > { %v6477_v2 = vadd.f32 %v2676_v31, %v7293_v57  ;;  %v2905_v31 = vmax.f32 %v6341_v8, 0.0  ;;  %v7300_v8 = vld [vmem:[#allocation28_spill] sm:$0xff] }
 0x434   : > { %3240 = vmatmul.mubr.f32.gmra.mrb[138].mxu0 %v2897_v53  ;;  %v2692_v53 = vrot.slane %v6455_v1, %v7237_v34  ;;  %v6499_v42 = vadd.f32 %v2688_v52, %v7297_v60  ;;  %v7301_v1 = vld [vmem:[#allocation27_spill] sm:$0xff]  ;;  %v2910_v60 = vmax.f32 %v6357_v54, 0.0  ;;  %v7302_v54 = vld [vmem:[#allocation33_spill] sm:$0xff] }
 0x435   : > { %3245 = vmatprep.mubr.f32.mxu0 %v2902_v55  ;;  %4339 = vmatpush1.bf16.msra.mxu0 %v7295_v12  ;;  %v6505_v12 = vadd.f32 %v2688_v52, %v7299_v47  ;;  %v6512_v28 = vadd.f32 %v2688_v52, %v7301_v1  ;;  %v2909_v1 = vmax.f32 %v6360_v38, 0.0  ;;  %v7304_v38 = vld [vmem:[#allocation37_spill] sm:$0xff] }
 0x436   : > { %4341 = vmatprep.subr.bf16.mxu0 %v6132_v17  ;;  %v6496_v55 = vadd.f32 %v2692_v53, %v7296_v16  ;;  %v7298_v17 = vld [vmem:[#allocation25_spill] sm:$0xff]  ;;  %v6518_v16 = vadd.f32 %v2688_v52, %v6141_v56  ;;  %v7303_v52 = vld [vmem:[#allocation31_spill] sm:$0xff] }
 0x437   : > { %v6502_v57 = vadd.f32 %v2692_v53, %v7298_v17  ;;  %v2704_v17 = vrot.slane %v6493_v20, %v7234_v13 }
 0x438   : > { %3246 = vmatmul.mubr.f32.gmra.mrb[140].mxu0 %v2901_v24  ;;  %v6509_v24 = vadd.f32 %v2692_v53, %v7300_v8 }
 0x439   : > { %3251 = vmatprep.mubr.f32.mxu0 %v2906_v4  ;;  %4343 = vmatpush1.bf16.msra.mxu0 %v6134_v22  ;;  %v6515_v4 = vadd.f32 %v2692_v53, %v6146_v39  ;;  %v2708_v22 = vrot.slane %v6493_v20, %v7237_v34  ;;  %v2914_v39 = vmax.f32 %v6363_v40, 0.0  ;;  %v7305_v40 = vld [vmem:[#allocation36_spill] sm:$0xff] }
 0x43a   : > { %4345 = vmatprep.subr.bf16.mxu0 %v6136_v15  ;;  %v6534_v15 = vadd.f32 %v2704_v17, %v6157_v32  ;;  %v2913_v32 = vmax.f32 %v6366_v43, 0.0  ;;  %v2921_v43 = vmax.f32 %v6379_v18, 0.0  ;;  %v2925_v18 = vmax.f32 %v6390_v21, 0.0 }
 0x43b   : > { %v6531_v56 = vadd.f32 %v2708_v22, %v6159_v30  ;;  %v6537_v53 = vadd.f32 %v2708_v22, %v7302_v54  ;;  %v6543_v47 = vadd.f32 %v2708_v22, %v7304_v38  ;;  %v7307_v30 = vld [vmem:[#allocation40_spill] sm:$0xff]  ;;  %v7308_v54 = vld [vmem:[#allocation29_spill] sm:$0xff]  ;;  %v2917_v38 = vmax.f32 %v6373_v36, 0.0 }
 0x43c   : > { %3252 = vmatmul.mubr.f32.gmra.mrb[142].mxu0 %v2905_v31  ;;  %v6540_v31 = vadd.f32 %v2704_v17, %v7303_v52  ;;  %v2918_v52 = vmax.f32 %v6369_v62, 0.0  ;;  %v2926_v62 = vmax.f32 %v6387_v41, 0.0  ;;  %v2600_v36 = vrot.slane %v6292_v46, %v7256_v48 }
 0x43d   : > { %3257 = vmatprep.mubr.f32.mxu0 %v2910_v60  ;;  %4347 = vmatpush1.bf16.msra.mxu0 %v6144_v35  ;;  %v6546_v35 = vadd.f32 %v2704_v17, %v7305_v40  ;;  %v6552_v60 = vadd.f32 %v2704_v17, %v7307_v30  ;;  %v7310_v40 = vld [vmem:[#allocation32_spill] sm:$0xff]  ;;  %v7312_v17 = vld [vmem:[#allocation35_spill] sm:$0xff]  ;;  %v2930_v41 = vmax.f32 %v6393_v10, 0.0  ;;  %v2934_v21 = vmax.f32 %v6400_v9, 0.0 }
 0x43e   : > { %4349 = vmatprep.subr.bf16.mxu0 %v6154_v27  ;;  %v7306_v27 = vld [vmem:[#allocation41_spill] sm:$0xff] }
 0x43f   : > { %v6549_v8 = vadd.f32 %v2708_v22, %v7306_v27  ;;  %v2922_v22 = vmax.f32 %v6376_v19, 0.0  ;;  %v7311_v27 = vld [vmem:[#allocation34_spill] sm:$0xff]  ;;  %v2604_v19 = vrot.slane %v6292_v46, %v6270_v5  ;;  %v2929_v46 = vmax.f32 %v6396_v23, 0.0 }
 0x440   : > { %3258 = vmatmul.mubr.f32.gmra.mrb[144].mxu0 %v2909_v1  ;;  %v7309_v1 = vld [vmem:[#allocation30_spill] sm:$0xff]  ;;  %v2938_v23 = vmax.f32 %v6406_v50, 0.0  ;;  %v2616_v50 = vrot.slane %v6295_v49, %v7256_v48 }
 0x441   : > { %3263 = vmatprep.mubr.f32.mxu0 %v2914_v39  ;;  %4351 = vmatpush1.bf16.msra.mxu0 %v7308_v54  ;;  %v7313_v39 = vld [vmem:[#allocation38_spill] sm:$0xff] }
 0x442   : > { %4353 = vmatprep.subr.bf16.mxu0 %v7309_v1 }
 0x444   : > { %3264 = vmatmul.mubr.f32.gmra.mrb[146].mxu0 %v2913_v32 }
 0x445   : > { %3269 = vmatprep.mubr.f32.mxu0 %v2918_v52  ;;  %4355 = vmatpush1.bf16.msra.mxu0 %v7310_v40  ;;  %v7314_v52 = vld [vmem:[#allocation39_spill] sm:$0xff] }
 0x446   : > { %4357 = vmatprep.subr.bf16.mxu0 %v7311_v27 }
 0x448   : > { %3270 = vmatmul.mubr.f32.gmra.mrb[148].mxu0 %v2917_v38  ;;  %v7315_v38 = vld [vmem:[#allocation42_spill] sm:$0xff] }
 0x449   : > { %3275 = vmatprep.mubr.f32.mxu0 %v2922_v22  ;;  %4359 = vmatpush1.bf16.msra.mxu0 %v7312_v17 }
 0x44a   : > { %4361 = vmatprep.subr.bf16.mxu0 %v7313_v39 }
 0x44c   : > { %3276 = vmatmul.mubr.f32.gmra.mrb[150].mxu0 %v2921_v43  ;;  %v7316_v43 = vld [vmem:[#allocation43_spill] sm:$0xff] }
 0x44d   : > { %v2326_v30 = vpop.f32.mrb[4].mxu1  ;;  %3281 = vmatprep.mubr.f32.mxu0 %v2926_v62  ;;  %4363 = vmatpush1.bf16.msra.mxu0 %v7314_v52  ;;  %v7317_v62 = vld [vmem:[#allocation44_spill] sm:$0xff]  ;;  %v7318_v52 = vld [vmem:[#allocation45_spill] sm:$0xff] }
 0x44e   : > { %v6570_v32 = vadd.f32 %v2600_v36, %v2326_v30  ;;  %v2328_v54 = vpop.f32.mrb[5].mxu1  ;;  %4365 = vmatprep.subr.bf16.mxu0 %v7315_v38 }
 0x44f   : > { %v6574_v1 = vadd.f32 %v2604_v19, %v2328_v54  ;;  %v2933_v54 = vmax.f32 %v6403_v45, 0.0  ;;  %v7320_v45 = vld [vmem:[#allocation19_spill] sm:$0xff] }
 0x450   : > { %3282 = vmatmul.mubr.f32.gmra.mrb[152].mxu0 %v2925_v18 }
 0x451   : > { %v2332_v40 = vpop.f32.mrb[6].mxu1  ;;  %3287 = vmatprep.mubr.f32.mxu0 %v2930_v41  ;;  %4367 = vmatpush1.bf16.msra.mxu0 %v7316_v43 }
 0x452   : > { %v6578_v22 = vadd.f32 %v2600_v36, %v2332_v40  ;;  %v2334_v27 = vpop.f32.mrb[7].mxu1  ;;  %4369 = vmatprep.subr.bf16.mxu0 %v7317_v62  ;;  %v2937_v40 = vmax.f32 %v6409_v51, 0.0  ;;  %v2941_v51 = vmax.f32 %v6423_v63, 0.0 }
 0x453   : > { %v6582_v17 = vadd.f32 %v2604_v19, %v2334_v27  ;;  %v7319_v27 = vld [vmem:[#allocation46_spill] sm:$0xff] }
 0x454   : > { %3288 = vmatmul.mubr.f32.gmra.mrb[154].mxu0 %v2929_v46 }
 0x455   : > { %v2338_v10 = vpop.f32.mrb[8].mxu1  ;;  %3293 = vmatprep.mubr.f32.mxu0 %v2934_v21  ;;  %4371 = vmatpush1.bf16.msra.mxu0 %v6233_v29  ;;  %v2942_v29 = vmax.f32 %v6420_v33, 0.0  ;;  %v2946_v33 = vmax.f32 %v6426_v14, 0.0 }
 0x456   : > { %v6586_v39 = vadd.f32 %v2600_v36, %v2338_v10  ;;  %v2340_v30 = vpop.f32.mrb[9].mxu1  ;;  %4373 = vmatprep.subr.bf16.mxu0 %v7318_v52  ;;  %v7321_v10 = vld [vmem:[#allocation47_spill] sm:$0xff] }
 0x457   : > { %v6590_v18 = vadd.f32 %v2604_v19, %v2340_v30 }
 0x458   : > { %3294 = vmatmul.mubr.f32.gmra.mrb[156].mxu0 %v2933_v54 }
 0x459   : > { %v2344_v9 = vpop.f32.mrb[10].mxu1  ;;  %3299 = vmatprep.mubr.f32.mxu0 %v2938_v23  ;;  %4375 = vmatpush1.bf16.msra.mxu0 %v7319_v27 }
 0x45a   : > { %v6594_v41 = vadd.f32 %v2600_v36, %v2344_v9  ;;  %v2346_v38 = vpop.f32.mrb[11].mxu1  ;;  %4377 = vmatprep.subr.bf16.mxu0 %v7320_v45  ;;  %v2620_v36 = vrot.slane %v6295_v49, %v6270_v5  ;;  %v2950_v49 = vmax.f32 %v6433_v25, 0.0 }
 0x45b   : > { %v6598_v46 = vadd.f32 %v2604_v19, %v2346_v38  ;;  %v2945_v38 = vmax.f32 %v6429_v0, 0.0 }
 0x45c   : > { %3300 = vmatmul.mubr.f32.gmra.mrb[158].mxu0 %v2937_v40 }
 0x45d   : > { %v2350_v43 = vpop.f32.mrb[12].mxu1  ;;  %3305 = vmatprep.mubr.f32.mxu0 %v2942_v29  ;;  %4379 = vmatpush1.bf16.msra.mxu0 %v7321_v10 }
 0x45e   : > { %v2767_v21 = vadd.f32 %v2616_v50, %v2350_v43  ;;  %v2352_v62 = vpop.f32.mrb[13].mxu1  ;;  %v2949_v43 = vmax.f32 %v6436_v3, 0.0  ;;  %v7322_v3 = vld [vmem:[#allocation20_spill] sm:$0xff] }
 0x45f   : > { %v2768_v19 = vadd.f32 %v2620_v36, %v2352_v62 }
 0x460   : > { %3306 = vmatmul.mubr.f32.gmra.mrb[160].mxu0 %v2941_v51  ;;  %v2895_v23 = vmax.f32 %v2767_v21, 0.0  ;;  %v2954_v21 = vmax.f32 %v6439_v58, 0.0 }
 0x461   : > { %v2896_v30 = vmax.f32 %v2768_v19, 0.0  ;;  %v2356_v54 = vpop.f32.mrb[14].mxu1  ;;  %3311 = vmatprep.mubr.f32.mxu0 %v2946_v33  ;;  %v2953_v33 = vmax.f32 %v6442_v11, 0.0  ;;  %v2957_v11 = vmax.f32 %v6462_v59, 0.0 }
 0x462   : > { %v2771_v52 = vadd.f32 %v2616_v50, %v2356_v54  ;;  %v2358_v9 = vpop.f32.mrb[15].mxu1  ;;  %v2958_v54 = vmax.f32 %v6459_v7, 0.0  ;;  %v2962_v7 = vmax.f32 %v6465_v37, 0.0 }
 0x463   : > { %v2772_v40 = vadd.f32 %v2620_v36, %v2358_v9  ;;  %3490 = vmatprep.mubr.f32.mxu1 %v2896_v30  ;;  %v2636_v9 = vrot.slane %v7322_v3, %v6270_v5 }
 0x464   : > { %3312 = vmatmul.mubr.f32.gmra.mrb[162].mxu0 %v2945_v38  ;;  %3491 = vmatmul.mubr.f32.vlgmr.msra.gmra.mrb[68].mxu1 %v2895_v23  ;;  %v2899_v29 = vmax.f32 %v2771_v52, 0.0  ;;  %v2632_v23 = vrot.slane %v7322_v3, %v7256_v48  ;;  %v2969_v3 = vmax.f32 %v6480_v44, 0.0  ;;  %v2973_v44 = vmax.f32 %v6499_v42, 0.0 }
 0x465   : > { %v2900_v63 = vmax.f32 %v2772_v40, 0.0  ;;  %v2362_v27 = vpop.f32.mrb[16].mxu1  ;;  %3317 = vmatprep.mubr.f32.mxu0 %v2950_v49 }
 0x466   : > { %v2775_v14 = vadd.f32 %v2616_v50, %v2362_v27  ;;  %v2364_v45 = vpop.f32.mrb[17].mxu1 }
 0x467   : > { %v2776_v62 = vadd.f32 %v2620_v36, %v2364_v45  ;;  %3496 = vmatprep.mubr.f32.mxu1 %v2900_v63  ;;  %v2961_v45 = vmax.f32 %v6468_v6, 0.0 }
 0x468   : > { %3318 = vmatmul.mubr.f32.gmra.mrb[164].mxu0 %v2949_v43  ;;  %3497 = vmatmul.mubr.f32.gmra.mrb[70].mxu1 %v2899_v29  ;;  %v2903_v25 = vmax.f32 %v2775_v14, 0.0 }
 0x469   : > { %v2904_v0 = vmax.f32 %v2776_v62, 0.0  ;;  %v2368_v51 = vpop.f32.mrb[18].mxu1  ;;  %3323 = vmatprep.mubr.f32.mxu0 %v2954_v21  ;;  %v2966_v62 = vmax.f32 %v6471_v26, 0.0 }
 0x46a   : > { %v2779_v10 = vadd.f32 %v2616_v50, %v2368_v51  ;;  %v2370_v19 = vpop.f32.mrb[19].mxu1 }
 0x46b   : > { %v2780_v30 = vadd.f32 %v2620_v36, %v2370_v19  ;;  %3502 = vmatprep.mubr.f32.mxu1 %v2904_v0  ;;  %v2970_v19 = vmax.f32 %v6477_v2, 0.0 }
 0x46c   : > { %3324 = vmatmul.mubr.f32.gmra.mrb[166].mxu0 %v2953_v33  ;;  %3503 = vmatmul.mubr.f32.gmra.mrb[72].mxu1 %v2903_v25  ;;  %v2907_v38 = vmax.f32 %v2779_v10, 0.0  ;;  %v2965_v25 = vmax.f32 %v6474_v61, 0.0  ;;  %v7323_v61 = vld [vmem:[#allocation48_spill] sm:$0xff] }
 0x46d   : > { %v2908_v58 = vmax.f32 %v2780_v30, 0.0  ;;  %v2374_v52 = vpop.f32.mrb[20].mxu1  ;;  %3329 = vmatprep.mubr.f32.mxu0 %v2958_v54 }
 0x46e   : > { %v2783_v50 = vadd.f32 %v2632_v23, %v2374_v52  ;;  %v2376_v40 = vpop.f32.mrb[21].mxu1  ;;  %v2974_v52 = vmax.f32 %v6496_v55, 0.0  ;;  %v2978_v55 = vmax.f32 %v6502_v57, 0.0 }
 0x46f   : > { %v2784_v36 = vadd.f32 %v2636_v9, %v2376_v40  ;;  %3508 = vmatprep.mubr.f32.mxu1 %v2908_v58  ;;  %v2652_v40 = vrot.slane %v7323_v61, %v6270_v5 }
 0x470   : > { %3330 = vmatmul.mubr.f32.gmra.mrb[168].mxu0 %v2957_v11  ;;  %3509 = vmatmul.mubr.f32.gmra.mrb[74].mxu1 %v2907_v38  ;;  %v2911_v27 = vmax.f32 %v2783_v50, 0.0  ;;  %v2648_v38 = vrot.slane %v7323_v61, %v7256_v48 }
 0x471   : > { %v2912_v49 = vmax.f32 %v2784_v36, 0.0  ;;  %v2380_v63 = vpop.f32.mrb[22].mxu1  ;;  %3335 = vmatprep.mubr.f32.mxu0 %v2962_v7 }
 0x472   : > { %v2787_v29 = vadd.f32 %v2632_v23, %v2380_v63  ;;  %v2382_v14 = vpop.f32.mrb[23].mxu1 }
 0x473   : > { %v2788_v43 = vadd.f32 %v2636_v9, %v2382_v14  ;;  %3514 = vmatprep.mubr.f32.mxu1 %v2912_v49  ;;  %v2977_v14 = vmax.f32 %v6505_v12, 0.0 }
 0x474   : > { %3336 = vmatmul.mubr.f32.gmra.mrb[170].mxu0 %v2961_v45  ;;  %3515 = vmatmul.mubr.f32.gmra.mrb[76].mxu1 %v2911_v27  ;;  %v2915_v37 = vmax.f32 %v2787_v29, 0.0 }
 0x475   : > { %v2916_v59 = vmax.f32 %v2788_v43, 0.0  ;;  %v2386_v21 = vpop.f32.mrb[24].mxu1  ;;  %3341 = vmatprep.mubr.f32.mxu0 %v2966_v62  ;;  %v2982_v43 = vmax.f32 %v6509_v24, 0.0 }
 0x476   : > { %v2791_v0 = vadd.f32 %v2632_v23, %v2386_v21  ;;  %v2388_v51 = vpop.f32.mrb[25].mxu1 }
 0x477   : > { %v2792_v10 = vadd.f32 %v2636_v9, %v2388_v51  ;;  %3520 = vmatprep.mubr.f32.mxu1 %v2916_v59  ;;  %v2986_v51 = vmax.f32 %v6515_v4, 0.0 }
 0x478   : > { %3342 = vmatmul.mubr.f32.gmra.mrb[172].mxu0 %v2965_v25  ;;  %3521 = vmatmul.mubr.f32.gmra.mrb[78].mxu1 %v2915_v37  ;;  %v2919_v26 = vmax.f32 %v2791_v0, 0.0  ;;  %v2981_v37 = vmax.f32 %v6512_v28, 0.0  ;;  %v7324_v28 = vld [vmem:[#allocation49_spill] sm:$0xff] }
 0x479   : > { %v2920_v6 = vmax.f32 %v2792_v10, 0.0  ;;  %v2392_v33 = vpop.f32.mrb[26].mxu1  ;;  %3347 = vmatprep.mubr.f32.mxu0 %v2970_v19 }
 0x47a   : > { %v2795_v30 = vadd.f32 %v2632_v23, %v2392_v33  ;;  %v2394_v54 = vpop.f32.mrb[27].mxu1 }
 0x47b   : > { %v2796_v58 = vadd.f32 %v2636_v9, %v2394_v54  ;;  %3526 = vmatprep.mubr.f32.mxu1 %v2920_v6  ;;  %v2985_v6 = vmax.f32 %v6518_v16, 0.0  ;;  %v2989_v16 = vmax.f32 %v6534_v15, 0.0 }
 0x47c   : > { %3348 = vmatmul.mubr.f32.gmra.mrb[174].mxu0 %v2969_v3  ;;  %3527 = vmatmul.mubr.f32.gmra.mrb[80].mxu1 %v2919_v26  ;;  %v2923_v11 = vmax.f32 %v2795_v30, 0.0  ;;  %v2990_v26 = vmax.f32 %v6531_v56, 0.0  ;;  %v2664_v30 = vrot.slane %v7324_v28, %v7256_v48  ;;  %v2668_v3 = vrot.slane %v7324_v28, %v6270_v5 }
 0x47d   : > { %v2924_v2 = vmax.f32 %v2796_v58, 0.0  ;;  %v2398_v50 = vpop.f32.mrb[28].mxu1  ;;  %3353 = vmatprep.mubr.f32.mxu0 %v2974_v52  ;;  %v2994_v56 = vmax.f32 %v6537_v53, 0.0  ;;  %v2888_v28 = vmax.f32 %v6590_v18, 0.0 }
 0x47e   : > { %v2799_v23 = vadd.f32 %v2648_v38, %v2398_v50  ;;  %v2400_v36 = vpop.f32.mrb[29].mxu1 }
 0x47f   : > { %v2800_v9 = vadd.f32 %v2652_v40, %v2400_v36  ;;  %3532 = vmatprep.mubr.f32.mxu1 %v2924_v2  ;;  %v2993_v36 = vmax.f32 %v6540_v31, 0.0 }
 0x480   : > { %3354 = vmatmul.mubr.f32.gmra.mrb[176].mxu0 %v2973_v44  ;;  %3533 = vmatmul.mubr.f32.gmra.mrb[82].mxu1 %v2923_v11  ;;  %v2927_v63 = vmax.f32 %v2799_v23, 0.0 }
 0x481   : > { %v2928_v7 = vmax.f32 %v2800_v9, 0.0  ;;  %v2404_v49 = vpop.f32.mrb[30].mxu1  ;;  %3359 = vmatprep.mubr.f32.mxu0 %v2978_v55  ;;  %v2998_v9 = vmax.f32 %v6543_v47, 0.0 }
 0x482   : > { %v2803_v27 = vadd.f32 %v2648_v38, %v2404_v49  ;;  %v2406_v29 = vpop.f32.mrb[31].mxu1 }
 0x483   : > { %v2804_v45 = vadd.f32 %v2652_v40, %v2406_v29  ;;  %3538 = vmatprep.mubr.f32.mxu1 %v2928_v7  ;;  %v3002_v29 = vmax.f32 %v6549_v8, 0.0 }
 0x484   : > { %3360 = vmatmul.mubr.f32.gmra.mrb[178].mxu0 %v2977_v14  ;;  %3539 = vmatmul.mubr.f32.gmra.mrb[84].mxu1 %v2927_v63  ;;  %v2931_v57 = vmax.f32 %v2803_v27, 0.0  ;;  %v2997_v63 = vmax.f32 %v6546_v35, 0.0  ;;  %v7325_v35 = vld [vmem:[#allocation50_spill] sm:$0xff] }
 0x485   : > { %v2932_v42 = vmax.f32 %v2804_v45, 0.0  ;;  %v2410_v62 = vpop.f32.mrb[32].mxu1  ;;  %3365 = vmatprep.mubr.f32.mxu0 %v2982_v43 }
 0x486   : > { %v2807_v59 = vadd.f32 %v2648_v38, %v2410_v62  ;;  %v2412_v21 = vpop.f32.mrb[33].mxu1  ;;  %v2880_v62 = vmax.f32 %v6574_v1, 0.0  ;;  %v2884_v1 = vmax.f32 %v6582_v17, 0.0 }
 0x487   : > { %v2808_v0 = vadd.f32 %v2652_v40, %v2412_v21  ;;  %3544 = vmatprep.mubr.f32.mxu1 %v2932_v42  ;;  %v3001_v42 = vmax.f32 %v6552_v60, 0.0 }
 0x488   : > { %3366 = vmatmul.mubr.f32.gmra.mrb[180].mxu0 %v2981_v37  ;;  %3545 = vmatmul.mubr.f32.gmra.mrb[86].mxu1 %v2931_v57  ;;  %v2935_v24 = vmax.f32 %v2807_v59, 0.0  ;;  %v2680_v59 = vrot.slane %v7325_v35, %v7256_v48  ;;  %v2684_v37 = vrot.slane %v7325_v35, %v6270_v5 }
 0x489   : > { %v2936_v12 = vmax.f32 %v2808_v0, 0.0  ;;  %v2416_v25 = vpop.f32.mrb[34].mxu1  ;;  %3371 = vmatprep.mubr.f32.mxu0 %v2986_v51  ;;  %v2879_v0 = vmax.f32 %v6570_v32, 0.0 }
 0x48a   : > { %v2811_v10 = vadd.f32 %v2648_v38, %v2416_v25  ;;  %v2418_v19 = vpop.f32.mrb[35].mxu1 }
 0x48b   : > { %v2812_v33 = vadd.f32 %v2652_v40, %v2418_v19  ;;  %3550 = vmatprep.mubr.f32.mxu1 %v2936_v12  ;;  %v2883_v19 = vmax.f32 %v6578_v22, 0.0 }
 0x48c   : > { %3372 = vmatmul.mubr.f32.gmra.mrb[182].mxu0 %v2985_v6  ;;  %3551 = vmatmul.mubr.f32.gmra.mrb[88].mxu1 %v2935_v24  ;;  %v2939_v58 = vmax.f32 %v2811_v10, 0.0 }
 0x48d   : > { %v2940_v4 = vmax.f32 %v2812_v33, 0.0  ;;  %v2422_v54 = vpop.f32.mrb[36].mxu1  ;;  %3377 = vmatprep.mubr.f32.mxu0 %v2990_v26 }
 0x48e   : > { %v2815_v52 = vadd.f32 %v2664_v30, %v2422_v54  ;;  %v2424_v61 = vpop.f32.mrb[37].mxu1 }
 0x48f   : > { %v2816_v38 = vadd.f32 %v2668_v3, %v2424_v61  ;;  %3556 = vmatprep.mubr.f32.mxu1 %v2940_v4  ;;  %v2887_v4 = vmax.f32 %v6586_v39, 0.0  ;;  %v7326_v39 = vld [vmem:[#allocation51_spill] sm:$0xff] }
 0x490   : > { %3378 = vmatmul.mubr.f32.gmra.mrb[184].mxu0 %v2989_v16  ;;  %3557 = vmatmul.mubr.f32.gmra.mrb[90].mxu1 %v2939_v58  ;;  %v2943_v40 = vmax.f32 %v2815_v52, 0.0  ;;  %v2892_v52 = vmax.f32 %v6598_v46, 0.0  ;;  %v2891_v16 = vmax.f32 %v6594_v41, 0.0 }
 0x491   : > { %v2944_v2 = vmax.f32 %v2816_v38, 0.0  ;;  %v2428_v50 = vpop.f32.mrb[38].mxu1  ;;  %3383 = vmatprep.mubr.f32.mxu0 %v2994_v56 }
 0x492   : > { %v2819_v11 = vadd.f32 %v2664_v30, %v2428_v50  ;;  %v2430_v23 = vpop.f32.mrb[39].mxu1 }
 0x493   : > { %v2820_v44 = vadd.f32 %v2668_v3, %v2430_v23  ;;  %3562 = vmatprep.mubr.f32.mxu1 %v2944_v2  ;;  %v2700_v23 = vrot.slane %v7326_v39, %v6270_v5 }
 0x494   : > { %3384 = vmatmul.mubr.f32.gmra.mrb[186].mxu0 %v2993_v36  ;;  %3563 = vmatmul.mubr.f32.gmra.mrb[92].mxu1 %v2943_v40  ;;  %v2947_v53 = vmax.f32 %v2819_v11, 0.0  ;;  %v2696_v40 = vrot.slane %v7326_v39, %v7256_v48 }
 0x495   : > { %v2948_v15 = vmax.f32 %v2820_v44, 0.0  ;;  %v2434_v55 = vpop.f32.mrb[40].mxu1  ;;  %3389 = vmatprep.mubr.f32.mxu0 %v2998_v9 }
 0x496   : > { %v2823_v7 = vadd.f32 %v2664_v30, %v2434_v55  ;;  %v2436_v49 = vpop.f32.mrb[41].mxu1 }
 0x497   : > { %v2824_v27 = vadd.f32 %v2668_v3, %v2436_v49  ;;  %3568 = vmatprep.mubr.f32.mxu1 %v2948_v15 }
 0x498   : > { %3390 = vmatmul.mubr.f32.gmra.mrb[188].mxu0 %v2997_v63  ;;  %3569 = vmatmul.mubr.f32.gmra.mrb[94].mxu1 %v2947_v53  ;;  %v2951_v47 = vmax.f32 %v2823_v7, 0.0 }
 0x499   : > { %v2952_v31 = vmax.f32 %v2824_v27, 0.0  ;;  %v2440_v14 = vpop.f32.mrb[42].mxu1  ;;  %3395 = vmatprep.mubr.f32.mxu0 %v3002_v29 }
 0x49a   : > { %v2827_v45 = vadd.f32 %v2664_v30, %v2440_v14  ;;  %v2442_v43 = vpop.f32.mrb[43].mxu1 }
 0x49b   : > { %v2828_v57 = vadd.f32 %v2668_v3, %v2442_v43  ;;  %3574 = vmatprep.mubr.f32.mxu1 %v2952_v31 }
 0x49c   : > { %3396 = vmatmul.mubr.f32.gmra.mrb[190].mxu0 %v3001_v42  ;;  %3575 = vmatmul.mubr.f32.gmra.mrb[96].mxu1 %v2951_v47  ;;  %v2955_v51 = vmax.f32 %v2827_v45, 0.0 }
 0x49d   : > { %v2956_v8 = vmax.f32 %v2828_v57, 0.0  ;;  %v2446_v21 = vpop.f32.mrb[44].mxu1  ;;  %3466 = vmatprep.mubr.f32.mxu0 %v2880_v62 }
 0x49e   : > { %v2831_v12 = vadd.f32 %v2680_v59, %v2446_v21  ;;  %v2448_v60 = vpop.f32.mrb[45].mxu1 }
 0x49f   : > { %v2832_v25 = vadd.f32 %v2684_v37, %v2448_v60  ;;  %3580 = vmatprep.mubr.f32.mxu1 %v2956_v8  ;;  %v2712_v8 = vrot.slane %v6493_v20, %v7256_v48 }
 0x4a0   : > { %3467 = vmatmul.mubr.f32.vlgmr.msra.gmra.mrb[128].mxu0 %v2879_v0  ;;  %3581 = vmatmul.mubr.f32.gmra.mrb[98].mxu1 %v2955_v51  ;;  %v2959_v6 = vmax.f32 %v2831_v12, 0.0  ;;  %v2716_v0 = vrot.slane %v6493_v20, %v6270_v5 }
 0x4a1   : > { %v2960_v24 = vmax.f32 %v2832_v25, 0.0  ;;  %v2452_v10 = vpop.f32.mrb[46].mxu1  ;;  %3472 = vmatprep.mubr.f32.mxu0 %v2884_v1 }
 0x4a2   : > { %v2835_v33 = vadd.f32 %v2680_v59, %v2452_v10  ;;  %v2454_v26 = vpop.f32.mrb[47].mxu1 }
 0x4a3   : > { %v2836_v32 = vadd.f32 %v2684_v37, %v2454_v26  ;;  %3586 = vmatprep.mubr.f32.mxu1 %v2960_v24 }
 0x4a4   : > { %3473 = vmatmul.mubr.f32.gmra.mrb[130].mxu0 %v2883_v19  ;;  %3587 = vmatmul.mubr.f32.gmra.mrb[100].mxu1 %v2959_v6  ;;  %v2963_v54 = vmax.f32 %v2835_v33, 0.0 }
 0x4a5   : > { %v2964_v30 = vmax.f32 %v2836_v32, 0.0  ;;  %v2458_v17 = vpop.f32.mrb[48].mxu1  ;;  %3478 = vmatprep.mubr.f32.mxu0 %v2888_v28 }
 0x4a6   : > { %v2839_v3 = vadd.f32 %v2680_v59, %v2458_v17  ;;  %v2460_v58 = vpop.f32.mrb[49].mxu1 }
 0x4a7   : > { %v2840_v22 = vadd.f32 %v2684_v37, %v2460_v58  ;;  %3592 = vmatprep.mubr.f32.mxu1 %v2964_v30 }
 0x4a8   : > { %3479 = vmatmul.mubr.f32.gmra.mrb[132].mxu0 %v2887_v4  ;;  %3593 = vmatmul.mubr.f32.gmra.mrb[102].mxu1 %v2963_v54  ;;  %v2967_v38 = vmax.f32 %v2839_v3, 0.0 }
 0x4a9   : > { %v2968_v61 = vmax.f32 %v2840_v22, 0.0  ;;  %v2464_v18 = vpop.f32.mrb[50].mxu1  ;;  %3484 = vmatprep.mubr.f32.mxu0 %v2892_v52 }
 0x4aa   : > { %v2843_v56 = vadd.f32 %v2680_v59, %v2464_v18  ;;  %v2466_v2 = vpop.f32.mrb[51].mxu1 }
 0x4ab   : > { %v2844_v50 = vadd.f32 %v2684_v37, %v2466_v2  ;;  %3598 = vmatprep.mubr.f32.mxu1 %v2968_v61 }
 0x4ac   : > { %3485 = vmatmul.mubr.f32.gmra.mrb[134].mxu0 %v2891_v16  ;;  %3599 = vmatmul.mubr.f32.gmra.mrb[104].mxu1 %v2967_v38  ;;  %v2971_v36 = vmax.f32 %v2843_v56, 0.0 }
 0x4ad   : > { %v2972_v46 = vmax.f32 %v2844_v50, 0.0  ;;  %v2470_v11 = vpop.f32.mrb[52].mxu1 }
 0x4ae   : > { %v2847_v44 = vadd.f32 %v2696_v40, %v2470_v11  ;;  %v2472_v9 = vpop.f32.mrb[53].mxu1 }
 0x4af   : > { %v2848_v15 = vadd.f32 %v2700_v23, %v2472_v9  ;;  %3604 = vmatprep.mubr.f32.mxu1 %v2972_v46 }
 0x4b0   : > { %3605 = vmatmul.mubr.f32.gmra.mrb[106].mxu1 %v2971_v36  ;;  %v2975_v53 = vmax.f32 %v2847_v44, 0.0 }
 0x4b1   : > { %v2976_v41 = vmax.f32 %v2848_v15, 0.0  ;;  %v2476_v55 = vpop.f32.mrb[54].mxu1 }
 0x4b2   : > { %v2851_v7 = vadd.f32 %v2696_v40, %v2476_v55  ;;  %v2478_v49 = vpop.f32.mrb[55].mxu1 }
 0x4b3   : > { %v2852_v63 = vadd.f32 %v2700_v23, %v2478_v49  ;;  %3610 = vmatprep.mubr.f32.mxu1 %v2976_v41 }
 0x4b4   : > { %3611 = vmatmul.mubr.f32.gmra.mrb[108].mxu1 %v2975_v53  ;;  %v2979_v31 = vmax.f32 %v2851_v7, 0.0 }
 0x4b5   : > { %v2980_v27 = vmax.f32 %v2852_v63, 0.0  ;;  %v2482_v29 = vpop.f32.mrb[56].mxu1 }
 0x4b6   : > { %v2855_v14 = vadd.f32 %v2696_v40, %v2482_v29  ;;  %v2484_v47 = vpop.f32.mrb[57].mxu1 }
 0x4b7   : > { %v2856_v45 = vadd.f32 %v2700_v23, %v2484_v47  ;;  %3616 = vmatprep.mubr.f32.mxu1 %v2980_v27  ;;  %v3133_v27 = vld [vmem:[%s7011_s9] sm:$0x3] }
 0x4b8   : > { %3617 = vmatmul.mubr.f32.gmra.mrb[110].mxu1 %v2979_v31  ;;  %v2983_v62 = vmax.f32 %v2855_v14, 0.0  ;;  %v6702_v14 = vrot.slane %v3133_v27, %v7234_v13  ;;  %v6705_v47 = vrot.slane %v3133_v27, %v7237_v34 }
 0x4b9   : > { %v2984_v43 = vmax.f32 %v2856_v45, 0.0  ;;  %v2488_v42 = vpop.f32.mrb[58].mxu1 }
 0x4ba   : > { %v2859_v57 = vadd.f32 %v2696_v40, %v2488_v42  ;;  %v2490_v35 = vpop.f32.mrb[59].mxu1 }
 0x4bb   : > { %v2860_v59 = vadd.f32 %v2700_v23, %v2490_v35  ;;  %3622 = vmatprep.mubr.f32.mxu1 %v2984_v43 }
 0x4bc   : > { %3623 = vmatmul.mubr.f32.gmra.mrb[112].mxu1 %v2983_v62  ;;  %v2987_v51 = vmax.f32 %v2859_v57, 0.0 }
 0x4bd   : > { %v2988_v21 = vmax.f32 %v2860_v59, 0.0  ;;  %v2494_v37 = vpop.f32.mrb[60].mxu1 }
 0x4be   : > { %v2863_v12 = vadd.f32 %v2712_v8, %v2494_v37  ;;  %v2496_v60 = vpop.f32.mrb[61].mxu1 }
 0x4bf   : > { %v2864_v1 = vadd.f32 %v2716_v0, %v2496_v60  ;;  %3628 = vmatprep.mubr.f32.mxu1 %v2988_v21 }
 0x4c0   : > { %3629 = vmatmul.mubr.f32.gmra.mrb[114].mxu1 %v2987_v51  ;;  %v2991_v10 = vmax.f32 %v2863_v12, 0.0 }
 0x4c1   : > { %v2992_v25 = vmax.f32 %v2864_v1, 0.0  ;;  %v2500_v24 = vpop.f32.mrb[62].mxu1 }
 0x4c2   : > { %v2867_v19 = vadd.f32 %v2712_v8, %v2500_v24  ;;  %v2502_v6 = vpop.f32.mrb[63].mxu1 }
 0x4c3   : > { %v2868_v33 = vadd.f32 %v2716_v0, %v2502_v6  ;;  %3634 = vmatprep.mubr.f32.mxu1 %v2992_v25 }
 0x4c4   : > { %3635 = vmatmul.mubr.f32.gmra.mrb[116].mxu1 %v2991_v10  ;;  %v2995_v28 = vmax.f32 %v2867_v19, 0.0 }
 0x4c5   : > { %v2996_v48 = vmax.f32 %v2868_v33, 0.0  ;;  %v2506_v26 = vpop.f32.mrb[64].mxu1 }
 0x4c6   : > { %v2871_v32 = vadd.f32 %v2712_v8, %v2506_v26  ;;  %v2508_v30 = vpop.f32.mrb[65].mxu1 }
 0x4c7   : > { %v2872_v5 = vadd.f32 %v2716_v0, %v2508_v30  ;;  %3640 = vmatprep.mubr.f32.mxu1 %v2996_v48 }
 0x4c8   : > { %3641 = vmatmul.mubr.f32.gmra.mrb[118].mxu1 %v2995_v28  ;;  %v2999_v4 = vmax.f32 %v2871_v32, 0.0 }
 0x4c9   : > { %v3000_v20 = vmax.f32 %v2872_v5, 0.0  ;;  %v2512_v17 = vpop.f32.mrb[66].mxu1 }
 0x4ca   : > { %v2875_v54 = vadd.f32 %v2712_v8, %v2512_v17  ;;  %v2514_v3 = vpop.f32.mrb[67].mxu1 }
 0x4cb   : > { %v2876_v58 = vadd.f32 %v2716_v0, %v2514_v3  ;;  %3646 = vmatprep.mubr.f32.mxu1 %v3000_v20 }
 0x4cc   : > { %3647 = vmatmul.mubr.f32.gmra.mrb[120].mxu1 %v2999_v4  ;;  %v3003_v22 = vmax.f32 %v2875_v54, 0.0 }
 0x4cd   : > { %v3004_v52 = vmax.f32 %v2876_v58, 0.0 }
 0x4cf   : > { %3652 = vmatprep.mubr.f32.mxu1 %v3004_v52 }
 0x4d0   : > { %3653 = vmatmul.mubr.f32.gmra.mrb[122].mxu1 %v3003_v22 }
 0x503   : > { %v3235_v61 = vpop.f32.mrb[136].mxu0 }
 0x504   : > { %v3237_v18 = vpop.f32.mrb[137].mxu0  ;;  %v3236_v42 = vadd.f32 %v3235_v61, %v6702_v14 }
 0x505   : > { %v3238_v62 = vadd.f32 %v3237_v18, %v6705_v47 }
 0x507   : > { %v3241_v16 = vpop.f32.mrb[138].mxu0 }
 0x508   : > { %v3243_v38 = vpop.f32.mrb[139].mxu0  ;;  %v3242_v37 = vadd.f32 %v3241_v16, %v6702_v14 }
 0x509   : > { %v3244_v34 = vadd.f32 %v3243_v38, %v6705_v47 }
 0x50b   : > { %v3247_v56 = vpop.f32.mrb[140].mxu0 }
 0x50c   : > { %v3249_v2 = vpop.f32.mrb[141].mxu0  ;;  %v3248_v24 = vadd.f32 %v3247_v56, %v6702_v14 }
 0x50d   : > { %v3250_v19 = vadd.f32 %v3249_v2, %v6705_v47 }
 0x50f   : > { %v3253_v50 = vpop.f32.mrb[142].mxu0 }
 0x510   : > { %v3255_v39 = vpop.f32.mrb[143].mxu0  ;;  %v3254_v5 = vadd.f32 %v3253_v50, %v6702_v14 }
 0x511   : > { %v3256_v17 = vadd.f32 %v3255_v39, %v6705_v47 }
 0x513   : > { %v3259_v40 = vpop.f32.mrb[144].mxu0 }
 0x514   : > { %v3261_v46 = vpop.f32.mrb[145].mxu0  ;;  %v3260_v18 = vadd.f32 %v3259_v40, %v6702_v14 }
 0x515   : > { %v3262_v38 = vadd.f32 %v3261_v46, %v6705_v47 }
 0x517   : > { %v6670_v11 = vpop.f32.mrb[146].mxu0 }
 0x518   : > { %v6672_v23 = vpop.f32.mrb[147].mxu0 }
 0x519   : > { %v3268_v40 = vadd.f32 %v6672_v23, %v6705_v47 }
 0x51b   : > { %v6674_v36 = vpop.f32.mrb[148].mxu0 }
 0x51c   : > { %v6676_v44 = vpop.f32.mrb[149].mxu0 }
 0x51f   : > { %v6678_v9 = vpop.f32.mrb[150].mxu0 }
 0x520   : > { %v6680_v15 = vpop.f32.mrb[151].mxu0 }
 0x523   : > { %v6682_v41 = vpop.f32.mrb[152].mxu0 }
 0x524   : > { %v6684_v55 = vpop.f32.mrb[153].mxu0 }
 0x527   : > { %v6686_v53 = vpop.f32.mrb[154].mxu0 }
 0x528   : > { %v6688_v7 = vpop.f32.mrb[155].mxu0 }
 0x52b   : > { %v6690_v49 = vpop.f32.mrb[156].mxu0 }
 0x52c   : > { %v6692_v63 = vpop.f32.mrb[157].mxu0 }
 0x52f   : > { %v6697_v29 = vpop.f32.mrb[158].mxu0 }
 0x530   : > { %v6699_v31 = vpop.f32.mrb[159].mxu0 }
 0x533   : > { %v6707_v45 = vpop.f32.mrb[160].mxu0 }
 0x534   : > { %v6709_v43 = vpop.f32.mrb[161].mxu0 }
 0x537   : > { %v6713_v57 = vpop.f32.mrb[162].mxu0  ;;  %v3492_v35 = vpop.f32.mrb[68].mxu1 }
 0x538   : > { %v3493_v59 = vadd.f32 %v3492_v35, %v3236_v42  ;;  %v6715_v8 = vpop.f32.mrb[163].mxu0  ;;  %v3494_v21 = vpop.f32.mrb[69].mxu1  ;;  %v3266_v35 = vadd.f32 %v6670_v11, %v6702_v14 }
 0x539   : > { %v3495_v13 = vadd.f32 %v3494_v21, %v3238_v62 }
 0x53b   : > { %v6719_v0 = vpop.f32.mrb[164].mxu0  ;;  %v3498_v51 = vpop.f32.mrb[70].mxu1 }
 0x53c   : > { %v3499_v12 = vadd.f32 %v3498_v51, %v3242_v37  ;;  %v6721_v60 = vpop.f32.mrb[165].mxu0  ;;  %v3500_v1 = vpop.f32.mrb[71].mxu1  ;;  %v3272_v51 = vadd.f32 %v6674_v36, %v6702_v14  ;;  %v3280_v36 = vadd.f32 %v6680_v15, %v6705_v47 }
 0x53d   : > { %v3501_v25 = vadd.f32 %v3500_v1, %v3244_v34  ;;  %v3274_v1 = vadd.f32 %v6676_v44, %v6705_v47 }
 0x53e   : > { %v3677_v10 = vmax.f32 %v3493_v59, %v3499_v12 }
 0x53f   : > { %v3686_v6 = vmax.f32 %v3495_v13, %v3501_v25  ;;  %v6725_v33 = vpop.f32.mrb[166].mxu0  ;;  %v3504_v48 = vpop.f32.mrb[72].mxu1 }
 0x540   : > { %v3505_v26 = vadd.f32 %v3504_v48, %v3248_v24  ;;  %v6727_v28 = vpop.f32.mrb[167].mxu0  ;;  %v3506_v32 = vpop.f32.mrb[73].mxu1  ;;  %v3278_v48 = vadd.f32 %v6678_v9, %v6702_v14  ;;  %v3286_v9 = vadd.f32 %v6684_v55, %v6705_v47 }
 0x541   : > { %v3507_v30 = vadd.f32 %v3506_v32, %v3250_v19 }
 0x542   : > { %v3678_v20 = vmax.f32 %v3677_v10, %v3505_v26 }
 0x543   : > { %v3687_v4 = vmax.f32 %v3686_v6, %v3507_v30  ;;  %v6731_v54 = vpop.f32.mrb[168].mxu0  ;;  %v3510_v3 = vpop.f32.mrb[74].mxu1 }
 0x544   : > { %v3511_v58 = vadd.f32 %v3510_v3, %v3254_v5  ;;  %v6733_v52 = vpop.f32.mrb[169].mxu0  ;;  %v3512_v22 = vpop.f32.mrb[75].mxu1  ;;  %v3284_v3 = vadd.f32 %v6682_v41, %v6702_v14  ;;  %v3292_v41 = vadd.f32 %v6688_v7, %v6705_v47 }
 0x545   : > { %v3513_v61 = vadd.f32 %v3512_v22, %v3256_v17 }
 0x546   : > { %v6736_v16 = vmax.f32 %v3678_v20, %v3511_v58 }
 0x547   : > { %v6739_v56 = vmax.f32 %v3687_v4, %v3513_v61  ;;  %v6741_v2 = vpop.f32.mrb[170].mxu0  ;;  %v3516_v50 = vpop.f32.mrb[76].mxu1 }
 0x548   : > { %v3517_v39 = vadd.f32 %v3516_v50, %v3260_v18  ;;  %v6743_v27 = vpop.f32.mrb[171].mxu0  ;;  %v3518_v42 = vpop.f32.mrb[77].mxu1 }
 0x549   : > { %v3519_v62 = vadd.f32 %v3518_v42, %v3262_v38  ;;  %v3290_v42 = vadd.f32 %v6686_v53, %v6702_v14 }
 0x54b   : > { %v6749_v59 = vpop.f32.mrb[172].mxu0  ;;  %v3522_v21 = vpop.f32.mrb[78].mxu1 }
 0x54c   : > { %v3523_v46 = vadd.f32 %v3522_v21, %v3266_v35  ;;  %v6751_v13 = vpop.f32.mrb[173].mxu0  ;;  %v3524_v37 = vpop.f32.mrb[79].mxu1 }
 0x54d   : > { %v3525_v34 = vadd.f32 %v3524_v37, %v3268_v40  ;;  %v3296_v37 = vadd.f32 %v6690_v49, %v6702_v14  ;;  %v3304_v49 = vadd.f32 %v6699_v31, %v6705_v47  ;;  %v3310_v31 = vadd.f32 %v6709_v43, %v6705_v47 }
 0x54e   : > { %v3695_v12 = vmax.f32 %v3517_v39, %v3523_v46  ;;  %v3316_v43 = vadd.f32 %v6715_v8, %v6705_v47 }
 0x54f   : > { %v3704_v25 = vmax.f32 %v3519_v62, %v3525_v34  ;;  %v6757_v11 = vpop.f32.mrb[174].mxu0  ;;  %v3528_v24 = vpop.f32.mrb[80].mxu1 }
 0x550   : > { %v3529_v23 = vadd.f32 %v3528_v24, %v3272_v51  ;;  %v6759_v10 = vpop.f32.mrb[175].mxu0  ;;  %v3530_v19 = vpop.f32.mrb[81].mxu1  ;;  %v3298_v51 = vadd.f32 %v6692_v63, %v6705_v47 }
 0x551   : > { %v3531_v6 = vadd.f32 %v3530_v19, %v3274_v1  ;;  %v3302_v19 = vadd.f32 %v6697_v29, %v6702_v14  ;;  %v3689_v29 = vrot.slane %v6739_v56, 4 }
 0x552   : > { %v3696_v26 = vmax.f32 %v3695_v12, %v3529_v23 }
 0x553   : > { %v3705_v32 = vmax.f32 %v3704_v25, %v3531_v6  ;;  %v6765_v30 = vpop.f32.mrb[176].mxu0  ;;  %v3534_v44 = vpop.f32.mrb[82].mxu1 }
 0x554   : > { %v3535_v5 = vadd.f32 %v3534_v44, %v3278_v48  ;;  %v6767_v20 = vpop.f32.mrb[177].mxu0  ;;  %v3536_v17 = vpop.f32.mrb[83].mxu1  ;;  %v3680_v48 = vrot.slane %v6736_v16, 4 }
 0x555   : > { %v3537_v4 = vadd.f32 %v3536_v17, %v3280_v36 }
 0x556   : > { %v6771_v58 = vmax.f32 %v3696_v26, %v3535_v5 }
 0x557   : > { %v6775_v22 = vmax.f32 %v3705_v32, %v3537_v4  ;;  %v6777_v15 = vpop.f32.mrb[178].mxu0  ;;  %v3540_v61 = vpop.f32.mrb[84].mxu1  ;;  %v3308_v4 = vadd.f32 %v6707_v45, %v6702_v14  ;;  %v3314_v45 = vadd.f32 %v6713_v57, %v6702_v14  ;;  %v3322_v57 = vadd.f32 %v6721_v60, %v6705_v47 }
 0x558   : > { %v3541_v18 = vadd.f32 %v3540_v61, %v3284_v3  ;;  %v6779_v38 = vpop.f32.mrb[179].mxu0  ;;  %v3542_v50 = vpop.f32.mrb[85].mxu1 }
 0x559   : > { %v3543_v39 = vadd.f32 %v3542_v50, %v3286_v9  ;;  %v3681_v9 = vmax.f32 %v6736_v16, %v3680_v48 }
 0x55b   : > { %v6785_v62 = vpop.f32.mrb[180].mxu0  ;;  %v3546_v35 = vpop.f32.mrb[86].mxu1 }
 0x55c   : > { %v3547_v55 = vadd.f32 %v3546_v35, %v3290_v42  ;;  %v6787_v40 = vpop.f32.mrb[181].mxu0  ;;  %v3548_v21 = vpop.f32.mrb[87].mxu1 }
 0x55d   : > { %v3549_v46 = vadd.f32 %v3548_v21, %v3292_v41  ;;  %v3682_v21 = vrot.slane %v3681_v9, 2 }
 0x55e   : > { %v3713_v34 = vmax.f32 %v3541_v18, %v3547_v55  ;;  %v3690_v55 = vmax.f32 %v6739_v56, %v3689_v29 }
 0x55f   : > { %v3722_v12 = vmax.f32 %v3543_v39, %v3549_v46  ;;  %v6793_v53 = vpop.f32.mrb[182].mxu0  ;;  %v3552_v1 = vpop.f32.mrb[88].mxu1  ;;  %v3683_v56 = vmax.f32 %v3681_v9, %v3682_v21  ;;  %v3334_v9 = vadd.f32 %v6733_v52, %v6705_v47  ;;  %v3707_v52 = vrot.slane %v6775_v22, 4 }
 0x560   : > { %v3553_v7 = vadd.f32 %v3552_v1, %v3296_v37  ;;  %v6795_v25 = vpop.f32.mrb[183].mxu0  ;;  %v3554_v24 = vpop.f32.mrb[89].mxu1  ;;  %v3320_v1 = vadd.f32 %v6719_v0, %v6702_v14 }
 0x561   : > { %v3555_v23 = vadd.f32 %v3554_v24, %v3298_v51 }
 0x562   : > { %v3714_v6 = vmax.f32 %v3713_v34, %v3553_v7  ;;  %v3691_v7 = vrot.slane %v3690_v55, 2 }
 0x563   : > { %v3723_v26 = vmax.f32 %v3722_v12, %v3555_v23  ;;  %v6802_v63 = vpop.f32.mrb[184].mxu0  ;;  %v3558_v36 = vpop.f32.mrb[90].mxu1 }
 0x564   : > { %v3559_v32 = vadd.f32 %v3558_v36, %v3302_v19  ;;  %v6804_v44 = vpop.f32.mrb[185].mxu0  ;;  %v3560_v5 = vpop.f32.mrb[91].mxu1  ;;  %v3326_v36 = vadd.f32 %v6725_v33, %v6702_v14 }
 0x565   : > { %v3561_v17 = vadd.f32 %v3560_v5, %v3304_v49  ;;  %v3328_v5 = vadd.f32 %v6727_v28, %v6705_v47  ;;  %v3340_v28 = vadd.f32 %v6743_v27, %v6705_v47 }
 0x566   : > { %v6809_v3 = vmax.f32 %v3714_v6, %v3559_v32  ;;  %v3692_v32 = vmax.f32 %v3690_v55, %v3691_v7 }
 0x567   : > { %v6814_v61 = vmax.f32 %v3723_v26, %v3561_v17  ;;  %v6816_v18 = vpop.f32.mrb[186].mxu0  ;;  %v3564_v50 = vpop.f32.mrb[92].mxu1  ;;  %v3684_v17 = vrot.slane %v3683_v56, 1 }
 0x568   : > { %v3565_v39 = vadd.f32 %v3564_v50, %v3308_v4  ;;  %v6818_v42 = vpop.f32.mrb[187].mxu0  ;;  %v3566_v41 = vpop.f32.mrb[93].mxu1  ;;  %v3698_v50 = vrot.slane %v6771_v58, 4 }
 0x569   : > { %v3567_v35 = vadd.f32 %v3566_v41, %v3310_v31  ;;  %v3332_v31 = vadd.f32 %v6731_v54, %v6702_v14  ;;  %v3346_v54 = vadd.f32 %v6751_v13, %v6705_v47 }
 0x56b   : > { %v6825_v16 = vpop.f32.mrb[188].mxu0  ;;  %v3570_v46 = vpop.f32.mrb[94].mxu1 }
 0x56c   : > { %v3571_v37 = vadd.f32 %v3570_v46, %v3314_v45  ;;  %v6827_v34 = vpop.f32.mrb[189].mxu0  ;;  %v3572_v51 = vpop.f32.mrb[95].mxu1  ;;  %v3344_v45 = vadd.f32 %v6749_v59, %v6702_v14  ;;  %v6855_v46 = vmax.f32 %v3683_v56, %v3684_v17  ;;  %v3716_v56 = vrot.slane %v6809_v3, 4 }
 0x56d   : > { %v3573_v12 = vadd.f32 %v3572_v51, %v3316_v43  ;;  %v3693_v43 = vrot.slane %v3692_v32, 1 }
 0x56e   : > { %v3731_v24 = vmax.f32 %v3565_v39, %v3571_v37  ;;  %v6859_v37 = vadd.f32 %v6757_v11, %v6702_v14 }
 0x56f   : > { %v3740_v23 = vmax.f32 %v3567_v35, %v3573_v12  ;;  %v6833_v8 = vpop.f32.mrb[190].mxu0  ;;  %v3576_v19 = vpop.f32.mrb[96].mxu1  ;;  %v3338_v35 = vadd.f32 %v6741_v2, %v6702_v14  ;;  %v6863_v2 = vadd.f32 %v6759_v10, %v6705_v47  ;;  %v3699_v12 = vmax.f32 %v6771_v58, %v3698_v50 }
 0x570   : > { %v3577_v6 = vadd.f32 %v3576_v19, %v3320_v1  ;;  %v6835_v49 = vpop.f32.mrb[191].mxu0  ;;  %v3578_v48 = vpop.f32.mrb[97].mxu1  ;;  %v6871_v19 = vmax.f32 %v3692_v32, %v3693_v43  ;;  %v3725_v58 = vrot.slane %v6814_v61, 4  ;;  %v6886_v50 = vadd.f32 %v6777_v15, %v6702_v14 }
 0x571   : > { %v3579_v26 = vadd.f32 %v3578_v48, %v3322_v57 }
 0x572   : > { %v3732_v0 = vmax.f32 %v3731_v24, %v3577_v6  ;;  %v3708_v6 = vmax.f32 %v6775_v22, %v3707_v52  ;;  %v6893_v52 = vadd.f32 %v6779_v38, %v6705_v47 }
 0x573   : > { %v3741_v60 = vmax.f32 %v3740_v23, %v3579_v26  ;;  %v3468_v4 = vpop.f32.mrb[128].mxu0  ;;  %v3582_v29 = vpop.f32.mrb[98].mxu1  ;;  %v6877_v26 = vadd.f32 %v6765_v30, %v6702_v14  ;;  %v3717_v30 = vmax.f32 %v6809_v3, %v3716_v56 }
 0x574   : > { %v3583_v39 = vadd.f32 %v3582_v29, %v3326_v36  ;;  %v3470_v41 = vpop.f32.mrb[129].mxu0  ;;  %v3584_v33 = vpop.f32.mrb[99].mxu1  ;;  %v4412_v13 = vadd.f32 %v3468_v4, %v6702_v14  ;;  %v6881_v36 = vadd.f32 %v6767_v20, %v6705_v47  ;;  %v3700_v4 = vrot.slane %v3699_v12, 2 }
 0x575   : > { %v3585_v55 = vadd.f32 %v3584_v33, %v3328_v5  ;;  %v4413_v11 = vadd.f32 %v3470_v41, %v6705_v47  ;;  %v3709_v41 = vrot.slane %v3708_v6, 2  ;;  %v3726_v33 = vmax.f32 %v6814_v61, %v3725_v58 }
 0x576   : > { %v3733_v21 = vmax.f32 %v3732_v0, %v3583_v39  ;;  %v6898_v61 = vadd.f32 %v6785_v62, %v6702_v14 }
 0x577   : > { %v3742_v27 = vmax.f32 %v3741_v60, %v3585_v55  ;;  %v3474_v59 = vpop.f32.mrb[130].mxu0  ;;  %v3588_v51 = vpop.f32.mrb[100].mxu1 }
 0x578   : > { %v4414_v1 = vadd.f32 %v3474_v59, %v6702_v14  ;;  %v3589_v7 = vadd.f32 %v3588_v51, %v3332_v31  ;;  %v3476_v24 = vpop.f32.mrb[131].mxu0  ;;  %v3590_v57 = vpop.f32.mrb[101].mxu1  ;;  %v3734_v0 = vrot.slane %v3733_v21, 4 }
 0x579   : > { %v4415_v23 = vadd.f32 %v3476_v24, %v6705_v47  ;;  %v3591_v10 = vadd.f32 %v3590_v57, %v3334_v9  ;;  %v3743_v32 = vrot.slane %v3742_v27, 4 }
 0x57a   : > { %v3659_v48 = vmax.f32 %v4412_v13, %v4414_v1  ;;  %v3701_v1 = vmax.f32 %v3699_v12, %v3700_v4 }
 0x57b   : > { %v3668_v5 = vmax.f32 %v4413_v11, %v4415_v23  ;;  %v3480_v17 = vpop.f32.mrb[132].mxu0  ;;  %v3594_v60 = vpop.f32.mrb[102].mxu1  ;;  %v3744_v24 = vmax.f32 %v3742_v27, %v3743_v32  ;;  %v3727_v23 = vrot.slane %v3726_v33, 2  ;;  %v6903_v27 = vadd.f32 %v6787_v40, %v6705_v47 }
 0x57c   : > { %v4416_v29 = vadd.f32 %v3480_v17, %v6702_v14  ;;  %v3595_v22 = vadd.f32 %v3594_v60, %v3338_v35  ;;  %v3482_v31 = vpop.f32.mrb[133].mxu0  ;;  %v3596_v9 = vpop.f32.mrb[103].mxu1  ;;  %v3735_v35 = vmax.f32 %v3733_v21, %v3734_v0  ;;  %v3710_v21 = vmax.f32 %v3708_v6, %v3709_v41 }
 0x57d   : > { %v4417_v20 = vadd.f32 %v3482_v31, %v6705_v47  ;;  %v3597_v39 = vadd.f32 %v3596_v9, %v3340_v28  ;;  %v3745_v17 = vrot.slane %v3744_v24, 2 }
 0x57e   : > { %v3660_v55 = vmax.f32 %v3659_v48, %v4416_v29  ;;  %v3749_v43 = vmax.f32 %v3589_v7, %v3595_v22  ;;  %v3718_v7 = vrot.slane %v3717_v30, 2  ;;  %v3736_v12 = vrot.slane %v3735_v35, 2 }
 0x57f   : > { %v3669_v59 = vmax.f32 %v3668_v5, %v4417_v20  ;;  %v3758_v51 = vmax.f32 %v3591_v10, %v3597_v39  ;;  %v3486_v13 = vpop.f32.mrb[134].mxu0  ;;  %v3600_v15 = vpop.f32.mrb[104].mxu1  ;;  %v3702_v5 = vrot.slane %v3701_v1, 1  ;;  %v3711_v40 = vrot.slane %v3710_v21, 1 }
 0x580   : > { %v4418_v3 = vadd.f32 %v3486_v13, %v6702_v14  ;;  %v3601_v57 = vadd.f32 %v3600_v15, %v3344_v45  ;;  %v3488_v28 = vpop.f32.mrb[135].mxu0  ;;  %v3602_v56 = vpop.f32.mrb[105].mxu1  ;;  %v3719_v6 = vmax.f32 %v3717_v30, %v3718_v7  ;;  %v3728_v22 = vmax.f32 %v3726_v33, %v3727_v23 }
 0x581   : > { %v4419_v38 = vadd.f32 %v3488_v28, %v6705_v47  ;;  %v3603_v11 = vadd.f32 %v3602_v56, %v3346_v54  ;;  %v6908_v54 = vadd.f32 %v6793_v53, %v6702_v14  ;;  %v6913_v20 = vadd.f32 %v6795_v25, %v6705_v47 }
 0x582   : > { %v3661_v10 = vmax.f32 %v3660_v55, %v4418_v3  ;;  %v3750_v58 = vmax.f32 %v3749_v43, %v3601_v57  ;;  %v3737_v39 = vmax.f32 %v3735_v35, %v3736_v12  ;;  %v3746_v43 = vmax.f32 %v3744_v24, %v3745_v17 }
 0x583   : > { %v3670_v45 = vmax.f32 %v3669_v59, %v4419_v38  ;;  %v3759_v48 = vmax.f32 %v3758_v51, %v3603_v11  ;;  %v3606_v0 = vpop.f32.mrb[106].mxu1  ;;  %v3720_v13 = vrot.slane %v3719_v6, 1  ;;  %v3703_v3 = vmax.f32 %v3701_v1, %v3702_v5 }
 0x584   : > { %v3662_v62 = vrot.slane %v3661_v10, 4  ;;  %v3607_v60 = vadd.f32 %v3606_v0, %v6859_v37  ;;  %v3608_v4 = vpop.f32.mrb[107].mxu1  ;;  %v3729_v57 = vrot.slane %v3728_v22, 1  ;;  %v3712_v56 = vmax.f32 %v3710_v21, %v3711_v40 }
 0x585   : > { %v3671_v32 = vrot.slane %v3670_v45, 4  ;;  %v3609_v29 = vadd.f32 %v3608_v4, %v6863_v2  ;;  %v3738_v35 = vrot.slane %v3737_v39, 1  ;;  %v3747_v24 = vrot.slane %v3746_v43, 1 }
 0x586   : > { %v3663_v31 = vmax.f32 %v3661_v10, %v3662_v62  ;;  %v3751_v9 = vmax.f32 %v3750_v58, %v3607_v60  ;;  %v3721_v12 = vmax.f32 %v3719_v6, %v3720_v13  ;;  %v3730_v1 = vmax.f32 %v3728_v22, %v3729_v57 }
 0x587   : > { %v3672_v41 = vmax.f32 %v3670_v45, %v3671_v32  ;;  %v3760_v37 = vmax.f32 %v3759_v48, %v3609_v29  ;;  %v3612_v55 = vpop.f32.mrb[108].mxu1  ;;  %v3739_v21 = vmax.f32 %v3737_v39, %v3738_v35  ;;  %v3748_v29 = vmax.f32 %v3746_v43, %v3747_v24 }
 0x588   : > { %v3664_v59 = vrot.slane %v3663_v31, 2  ;;  %v3752_v53 = vrot.slane %v3751_v9, 4  ;;  %v3613_v30 = vadd.f32 %v3612_v55, %v6877_v26  ;;  %v3614_v51 = vpop.f32.mrb[109].mxu1  ;;  %v3382_v57 = vadd.f32 %v6804_v44, %v6705_v47 }
 0x589   : > { %v3673_v2 = vrot.slane %v3672_v41, 2  ;;  %v3761_v15 = vrot.slane %v3760_v37, 4  ;;  %v3615_v33 = vadd.f32 %v3614_v51, %v6881_v36 }
 0x58a   : > { %v3665_v28 = vmax.f32 %v3663_v31, %v3664_v59  ;;  %v3753_v25 = vmax.f32 %v3751_v9, %v3752_v53 }
 0x58b   : > { %v3674_v7 = vmax.f32 %v3672_v41, %v3673_v2  ;;  %v3762_v38 = vmax.f32 %v3760_v37, %v3761_v15  ;;  %v3618_v11 = vpop.f32.mrb[110].mxu1 }
 0x58c   : > { %v3666_v23 = vrot.slane %v3665_v28, 1  ;;  %v3754_v10 = vrot.slane %v3753_v25, 2  ;;  %v3619_v26 = vadd.f32 %v3618_v11, %v6886_v50  ;;  %v3620_v58 = vpop.f32.mrb[111].mxu1 }
 0x58d   : > { %v3675_v45 = vrot.slane %v3674_v7, 1  ;;  %v3763_v48 = vrot.slane %v3762_v38, 2  ;;  %v3621_v36 = vadd.f32 %v3620_v58, %v6893_v52 }
 0x58e   : > { %v3667_v0 = vmax.f32 %v3665_v28, %v3666_v23  ;;  %v3755_v5 = vmax.f32 %v3753_v25, %v3754_v10  ;;  %v3767_v17 = vmax.f32 %v3613_v30, %v3619_v26 }
 0x58f   : > { %v3676_v62 = vmax.f32 %v3674_v7, %v3675_v45  ;;  %v3764_v60 = vmax.f32 %v3762_v38, %v3763_v48  ;;  %v3776_v4 = vmax.f32 %v3615_v33, %v3621_v36  ;;  %v3624_v32 = vpop.f32.mrb[112].mxu1  ;;  %v3380_v33 = vadd.f32 %v6802_v63, %v6702_v14 }
 0x590   : > { %v3819_v40 = vsel %vm1710_vm0, %v6855_v46, %v3667_v0  ;;  %v3756_v50 = vrot.slane %v3755_v5, 1  ;;  %v3625_v6 = vadd.f32 %v3624_v32, %v6898_v61  ;;  %v3626_v31 = vpop.f32.mrb[113].mxu1  ;;  %v3392_v45 = vadd.f32 %v6825_v16, %v6702_v14 }
 0x591   : > { %v3820_v9 = vsel %vm1712_vm1, %v3703_v3, %v3819_v40  ;;  %v3826_v52 = vsel %vm1710_vm0, %v6871_v19, %v3676_v62  ;;  %v3765_v22 = vrot.slane %v3764_v60, 1  ;;  %v3627_v39 = vadd.f32 %v3626_v31, %v6903_v27 }
 0x592   : > { %v3827_v41 = vsel %vm1712_vm1, %v3712_v56, %v3826_v52  ;;  %v3757_v37 = vmax.f32 %v3755_v5, %v3756_v50  ;;  %v3821_v55 = vsel %vm1714_vm2, %v3721_v12, %v3820_v9  ;;  %v3768_v43 = vmax.f32 %v3767_v17, %v3625_v6 }
 0x593   : > { %v3822_v46 = vsel %vm1716_vm3, %v3739_v21, %v3821_v55  ;;  %v3766_v59 = vmax.f32 %v3764_v60, %v3765_v22  ;;  %v3828_v61 = vsel %vm1714_vm2, %v3730_v1, %v3827_v41  ;;  %v3777_v53 = vmax.f32 %v3776_v4, %v3627_v39  ;;  %v3630_v30 = vpop.f32.mrb[114].mxu1 }
 0x594   : > { %v3823_v51 = vsel %vm1718_vm4, %v3757_v37, %v3822_v46  ;;  %v3829_v19 = vsel %vm1716_vm3, %v3748_v29, %v3828_v61  ;;  %v3631_v13 = vadd.f32 %v3630_v30, %v6908_v54  ;;  %v3632_v27 = vpop.f32.mrb[115].mxu1  ;;  %v3386_v54 = vadd.f32 %v6816_v18, %v6702_v14 }
 0x595   : > { %v3830_v2 = vsel %vm1718_vm4, %v3766_v59, %v3829_v19  ;;  %v3633_v15 = vadd.f32 %v3632_v27, %v6913_v20  ;;  %v3388_v20 = vadd.f32 %v6818_v42, %v6705_v47  ;;  %v3394_v1 = vadd.f32 %v6827_v34, %v6705_v47 }
 0x596   : > { %v3769_v3 = vmax.f32 %v3768_v43, %v3631_v13  ;;  %v3398_v4 = vadd.f32 %v6833_v8, %v6702_v14  ;;  %v3400_v16 = vadd.f32 %v6835_v49, %v6705_v47 }
 0x597   : > { %v3778_v28 = vmax.f32 %v3777_v53, %v3633_v15  ;;  %v3636_v25 = vpop.f32.mrb[116].mxu1 }
 0x598   : > { %v3770_v56 = vrot.slane %v3769_v3, 4  ;;  %v3637_v35 = vadd.f32 %v3636_v25, %v3380_v33  ;;  %v3638_v7 = vpop.f32.mrb[117].mxu1 }
 0x599   : > { %v3779_v38 = vrot.slane %v3778_v28, 4  ;;  %v3639_v11 = vadd.f32 %v3638_v7, %v3382_v57 }
 0x59a   : > { %v3771_v24 = vmax.f32 %v3769_v3, %v3770_v56 }
 0x59b   : > { %v3780_v23 = vmax.f32 %v3778_v28, %v3779_v38  ;;  %v3642_v63 = vpop.f32.mrb[118].mxu1 }
 0x59c   : > { %v3772_v10 = vrot.slane %v3771_v24, 2  ;;  %v3643_v26 = vadd.f32 %v3642_v63, %v3386_v54  ;;  %v3644_v58 = vpop.f32.mrb[119].mxu1 }
 0x59d   : > { %v3781_v44 = vrot.slane %v3780_v23, 2  ;;  %v3645_v12 = vadd.f32 %v3644_v58, %v3388_v20 }
 0x59e   : > { %v3773_v48 = vmax.f32 %v3771_v24, %v3772_v10  ;;  %v3785_v36 = vmax.f32 %v3637_v35, %v3643_v26 }
 0x59f   : > { %v3782_v18 = vmax.f32 %v3780_v23, %v3781_v44  ;;  %v3794_v0 = vmax.f32 %v3639_v11, %v3645_v12  ;;  %v3648_v5 = vpop.f32.mrb[120].mxu1 }
 0x5a0   : > { %v3774_v17 = vrot.slane %v3773_v48, 1  ;;  %v3649_v42 = vadd.f32 %v3648_v5, %v3392_v45  ;;  %v3650_v21 = vpop.f32.mrb[121].mxu1 }
 0x5a1   : > { %v3783_v62 = vrot.slane %v3782_v18, 1  ;;  %v3651_v60 = vadd.f32 %v3650_v21, %v3394_v1 }
 0x5a2   : > { %v3775_v32 = vmax.f32 %v3773_v48, %v3774_v17  ;;  %v3786_v29 = vmax.f32 %v3785_v36, %v3649_v42 }
 0x5a3   : > { %v3784_v40 = vmax.f32 %v3782_v18, %v3783_v62  ;;  %v3795_v50 = vmax.f32 %v3794_v0, %v3651_v60  ;;  %v3654_v34 = vpop.f32.mrb[122].mxu1 }
 0x5a4   : > { %v3655_v6 = vadd.f32 %v3654_v34, %v3398_v4  ;;  %v3656_v31 = vpop.f32.mrb[123].mxu1  ;;  %v3824_v9 = vsel %vm1720_vm5, %v3775_v32, %v3823_v51 }
 0x5a5   : > { %v3657_v52 = vadd.f32 %v3656_v31, %v3400_v16  ;;  %v3831_v22 = vsel %vm1720_vm5, %v3784_v40, %v3830_v2 }
 0x5a6   : > { %v3787_v39 = vmax.f32 %v3786_v29, %v3655_v6 }
 0x5a7   : > { %v3796_v41 = vmax.f32 %v3795_v50, %v3657_v52 }
 0x5a8   : > { %v3788_v37 = vrot.slane %v3787_v39, 4 }
 0x5a9   : > { %v3797_v14 = vrot.slane %v3796_v41, 4 }
 0x5aa   : > { %v3789_v8 = vmax.f32 %v3787_v39, %v3788_v37 }
 0x5ab   : > { %v3798_v55 = vmax.f32 %v3796_v41, %v3797_v14 }
 0x5ac   : > { %v3790_v47 = vrot.slane %v3789_v8, 2 }
 0x5ad   : > { %v3799_v49 = vrot.slane %v3798_v55, 2 }
 0x5ae   : > { %v3791_v43 = vmax.f32 %v3789_v8, %v3790_v47 }
 0x5af   : > { %v3800_v46 = vmax.f32 %v3798_v55, %v3799_v49 }
 0x5b0   : > { %v3792_v59 = vrot.slane %v3791_v43, 1 }
 0x5b1   : > { %v3801_v61 = vrot.slane %v3800_v46, 1 }
 0x5b2   : > { %v3793_v53 = vmax.f32 %v3791_v43, %v3792_v59 }
 0x5b3   : > { %v3802_v30 = vmax.f32 %v3800_v46, %v3801_v61 }
 0x5b4   : > { %v3825_v51 = vsel %vm1722_vm6, %v3793_v53, %v3824_v9 }
 0x5b5   : > { %v3832_v19 = vsel %vm1722_vm6, %v3802_v30, %v3831_v22  ;;  %3835 = vst [vmem:[%s399_s28] sm:$0xff] %v3825_v51 }
 0x5b6   : > { %3836 = vst [vmem:[%s399_s28 + $0x8] sm:$0xff] %v3832_v19 }
 0x5b7   : > { %4784 = shalt.err (!%p4781_p9)
}
 0x5b8   : > { %s4785_s22 = scalar_lea.hbm %s6959_s21, 256  ;;  %s4789_s18 = scalar_lea.hbm %s7012_s10, 512 }
 0x5b9   : > { %p4786_p2 = scmp.ne.s32.totalorder %s6959_s21, %s4785_s22  ;;  %p4790_p5 = scmp.lt.u32.totalorder %s6959_s21, %s7012_s10 }
 0x5ba   : > { %p4791_p10 = scmp.lt.u32.totalorder %s4789_s18, %s4785_s22  ;;  %p4793_p4 = scmp.lt.u32.totalorder %s4785_s22, %s6959_s21 }
 0x5bb   : > { %p4787_p3 = pnand %p4786_p2, %p7327_p7 }
 0x5bc   : > { %p4792_p12 = por %p4791_p10, %p4790_p5 }
 0x5bd   : > { %p4788_p0 = pneg %p4787_p3 }
 0x5be   : > { %p4794_p8 = por %p4793_p4, %p4792_p12 }
 0x5c0   : > { %p4795_p11 = pnand %p4794_p8, %p4788_p0 }
 0x5c2   : > { %4798 = shalt.err (!%p4795_p11)
}
 0x5c3   : > { %4552 = dma.vmem_to_hbm [thread:$0]  (%p7327_p7), %s6961_s12, 256, %s6959_s21, %s3838_s17  }
 0x5c4 PF: > { %s7328_s15 = sld [smem:[#allocation14_spill]]  ;;  %s7329_s25 = sld [smem:[#allocation12_spill]] }
 0x5c5   : > { %s7330_s28 = sld [smem:[#allocation17_spill]] }
 0x5ca   : > { %p4574_p13 = scmp.ge.s32.totalorder %s7328_s15, 2  ;;  %s3864_s19 = sand.u32 1, %s7329_s25  }
 0x5cb   : > { %p7331_p1 = scmp.ne.s32.totalorder %s7330_s28, 0  ;;  %s3865_s24 = scalar_lea.sflag [#allocation4], %s3864_s19 }
 0x5cd   : > { %p4565_p6 = pnand %p4574_p13, %p7331_p1 }
 0x5cf   : > { %4824 = dma.done.wait (!%p4565_p6), %s3865_s24, 256  }
 0x5d0   : > { %4826 = vsyncadd (!%p4565_p6), %s3865_s24, 4294967040  ;;  %s7332_s16 = sld [smem:[#allocation15_spill]]  ;;  %s7333_s26 = sld [smem:[#allocation13_spill]] }
 0x5d1   : > { %s7334_s15 = sld [smem:[#allocation16_spill]]  ;;  %s7335_s13 = smov %s4833_s14 }
 0x5d6   : > { %p22_p9 = scmp.ge.s32.totalorder %s7332_s16, 4   ;;  %s7336_s14 = smov %s7333_s26 }
 0x5d8   :  { %24 = sbr.rel (!%p22_p9) target bundleno = 5 (0x5), region = 108 }
 0x5df   :  { %3870 = vsyncpa [#allocation3], 1 }
 0x5e0   :  { %3872 = vsyncpa [#allocation3 + $0x1], 1 }
 0x5e1   :  { %3873 = vsyncpa [#allocation6], 1 }
 0x5e2   :  { %3874 = vsyncpa [#allocation4], 1 }
 0x5e3   :  { %3876 = vsyncpa [#allocation4 + $0x1], 1 }

</bundles_post_ra>
